<compile_context>
chip_gen: v7x
topology: tpu7x:2x2x1
jax: 0.10.0
libtpu: 0.0.40
codegen_flags: <defaults>
</compile_context>

<pallas_src>
import jax
import jax.numpy as jnp
from jax import lax
from jax.experimental import pallas as pl
from jax.experimental.pallas import tpu as pltpu

LANE = 128        # per-gate output lane block
SUB = 8           # sublane group size -> recurrence unroll / store block
SEQ_CHUNK = 512   # max timesteps resident in VMEM per grid step


def _round_up(n, m):
    return ((n + m - 1) // m) * m


# ----------------------------------------------------------------------------
# Fused Pallas kernel: gru1 -> gru2 -> gru3 -> fc1   (one chunk per grid step)
# ----------------------------------------------------------------------------
def _fused_gru_kernel(x_ref,
                      wih1_ref, whh1_ref, bx1_ref, bhn1_ref,
                      wih2_ref, whh2_ref, bx2_ref, bhn2_ref,
                      wih3_ref, whh3_ref, bx3_ref, bhn3_ref,
                      fcw_ref, fcb_ref,
                      out_ref,
                      xg_ref, hseq_ref, h1_ref, h2_ref, h3_ref):
    """All refs hold compact-contraction, gate-major, 128-lane-output f32 slabs.

    x_ref    : (CHUNK, IC)    padded input chunk (IC = round_up(input, 8))
    wihX_ref : (KC, 3*GP)     input->gates weights, contraction padded to 8-mult
    whhX_ref : (HC, 3*GP)     hidden->gates weights, contraction padded to 8-mult
    bxX_ref  : (1, 3*GP)      folded bias (b_ir+b_hr | b_iz+b_hz | b_in)
    bhnX_ref : (1, GP)        b_hn (must stay inside the recurrence)
    fcw_ref  : (HC, LANE)     fc1 weight in column 0, rest zero
    fcb_ref  : (1,) SMEM      fc1 bias scalar
    out_ref  : (CHUNK, LANE)  fc1 result in lane 0
    xg_ref   : (CHUNK, 3*GP)  scratch: input projections (reused per layer)
    hseq_ref : (CHUNK, GP)    scratch: layer output slab (reused per layer)
    hX_ref   : (1, GP)        scratch: hidden state carried across chunks
    """
    CHUNK, GP = hseq_ref.shape
    HC = whh1_ref.shape[0]
    n_groups = CHUNK // SUB

    # Initialize the carried hidden states on the first sequence chunk only.
    @pl.when(pl.program_id(0) == 0)
    def _init():
        h1_ref[...] = jnp.zeros_like(h1_ref)
        h2_ref[...] = jnp.zeros_like(h2_ref)
        h3_ref[...] = jnp.zeros_like(h3_ref)

    # Loop-invariant row-select masks for the register accumulator (hoisted).
    row_ids = lax.broadcasted_iota(jnp.int32, (SUB, GP), 0)
    masks = [row_ids == i for i in range(SUB)]

    def run_layer(inp, wih_ref, whh_ref, bx_ref, bhn_ref, hc_ref):
        # Input projection for ALL timesteps of the chunk in one MXU matmul
        # (b_ih plus the r/z parts of b_hh are folded into bx).
        # NOTE: `inp` is fully read before any hseq_ref write below, so reusing
        # hseq_ref as both the layer input and output slab is safe.
        xg_ref[...] = (
            jnp.dot(inp, wih_ref[...], preferred_element_type=jnp.float32)
            + bx_ref[...]
        )
        # Hoist the loop-invariant MXU RHS and bias out of the recurrence so
        # the weight stays a single value across all unrolled steps and all
        # fori_loop group iterations.
        whh = whh_ref[...]          # (HC, 3*GP)
        bhn = bhn_ref[...]          # (1, GP)

        def group(g, h):
            base = pl.multiple_of(g * SUB, SUB)
            xg_g = xg_ref[pl.ds(base, SUB), :]      # one dense (SUB, 3GP) load
            acc = jnp.zeros((SUB, GP), jnp.float32)
            # Fully unrolled recurrence inside one sublane group: lets the
            # scheduler overlap the EUP sigmoid/tanh with the tiny per-step
            # (1, HC) MXU pass.
            for i in range(SUB):
                xg_t = xg_g[i:i + 1, :]             # static sublane slice
                hg = jnp.dot(h[:, :HC], whh,
                             preferred_element_type=jnp.float32)   # (1, 3GP)
                # 128-lane-aligned gate slices; r and z share one sigmoid.
                rz = jax.nn.sigmoid(xg_t[:, :2 * GP] + hg[:, :2 * GP])
                r = rz[:, :GP]
                z = rz[:, GP:]
                n = jnp.tanh(xg_t[:, 2 * GP:] + r * (hg[:, 2 * GP:] + bhn))
                h = (1.0 - z) * n + z * h
                acc = jnp.where(masks[i], h, acc)
            # Single (SUB, GP) lane-dense store per group.
            hseq_ref[pl.ds(base, SUB), :] = acc
            return h

        hc_ref[...] = lax.fori_loop(0, n_groups, group, hc_ref[...])

    run_layer(x_ref[...], wih1_ref, whh1_ref, bx1_ref, bhn1_ref, h1_ref)
    # dropout_hidden -> identity (eval mode)
    run_layer(hseq_ref[...][:, :HC], wih2_ref, whh2_ref, bx2_ref, bhn2_ref, h2_ref)
    run_layer(hseq_ref[...][:, :HC], wih3_ref, whh3_ref, bx3_ref, bhn3_ref, h3_ref)

    # fc1 fused epilogue: lane-dense (CHUNK, LANE) output, result in lane 0.
    out_ref[...] = (
        jnp.dot(hseq_ref[...][:, :HC], fcw_ref[...],
                preferred_element_type=jnp.float32)
        + fcb_ref[0]
    )


# ----------------------------------------------------------------------------
# Parameter init (PyTorch layout) and one-time packing
# ----------------------------------------------------------------------------
def init_params(key, input_size, hidden_size, hidden_size2, hidden_size3):
    """PyTorch-layout params with nn.GRU / nn.Linear default init U(-k, k)."""
    params = {}

    def gru_params(key, in_dim, h_dim, name):
        k = 1.0 / jnp.sqrt(h_dim)
        ks = jax.random.split(key, 4)
        params[name] = dict(
            w_ih=jax.random.uniform(ks[0], (3 * h_dim, in_dim), jnp.float32, -k, k),
            w_hh=jax.random.uniform(ks[1], (3 * h_dim, h_dim), jnp.float32, -k, k),
            b_ih=jax.random.uniform(ks[2], (3 * h_dim,), jnp.float32, -k, k),
            b_hh=jax.random.uniform(ks[3], (3 * h_dim,), jnp.float32, -k, k),
        )

    k1, k2, k3, k4 = jax.random.split(key, 4)
    gru_params(k1, input_size, hidden_size, "gru1")
    gru_params(k2, hidden_size, hidden_size2, "gru2")
    gru_params(k3, hidden_size2, hidden_size3, "gru3")

    kf = 1.0 / jnp.sqrt(hidden_size3)
    kw, kb = jax.random.split(k4)
    params["fc1"] = dict(
        w=jax.random.uniform(kw, (1, hidden_size3), jnp.float32, -kf, kf),
        b=jax.random.uniform(kb, (1,), jnp.float32, -kf, kf),
    )
    return params


def pack_params(params):
    """One-time layout prep: transpose, compact-pad contraction dims to 8-mults,
    pad each gate's output block to 128 lanes, fold b_hr/b_hz into the input
    bias.  All padded weight rows/columns and padded bias lanes are EXACTLY
    zero -- correctness of the padded lanes relies on this."""
    H1 = params["gru1"]["w_hh"].shape[1]
    H2 = params["gru2"]["w_hh"].shape[1]
    H3 = params["gru3"]["w_hh"].shape[1]
    I = params["gru1"]["w_ih"].shape[1]
    GP = _round_up(max(H1, H2, H3), LANE)   # per-gate output lane block
    HC = _round_up(max(H1, H2, H3), SUB)    # compact hidden contraction width
    IC = _round_up(I, SUB)                  # compact input contraction width

    def pack_gru(p, k_pad):
        w_ih, w_hh = p["w_ih"], p["w_hh"]
        b_ih, b_hh = p["b_ih"], p["b_hh"]
        H = w_hh.shape[1]

        def pack_w(w, kp):
            # (3H, K) -> (kp, 3*GP): per-gate transpose, zero-pad, concat lanes.
            wg = w.reshape(3, H, w.shape[1]).astype(jnp.float32)
            blocks = [jnp.pad(wg[g].T, ((0, kp - w.shape[1]), (0, GP - H)))
                      for g in range(3)]
            return jnp.concatenate(blocks, axis=1)

        bi = b_ih.reshape(3, H).astype(jnp.float32)
        bh = b_hh.reshape(3, H).astype(jnp.float32)
        pad_row = lambda v: jnp.pad(v.reshape(1, H), ((0, 0), (0, GP - H)))
        bx = jnp.concatenate(
            [pad_row(bi[0] + bh[0]),      # r: b_ir + b_hr folded
             pad_row(bi[1] + bh[1]),      # z: b_iz + b_hz folded
             pad_row(bi[2])], axis=1)     # n: b_in only (b_hn stays in loop)
        return dict(wih=pack_w(w_ih, k_pad), whh=pack_w(w_hh, HC),
                    bx=bx, bhn=pad_row(bh[2]))

    fw = params["fc1"]["w"].astype(jnp.float32)   # (1, H3)
    fcw = jnp.zeros((HC, LANE), jnp.float32).at[:H3, 0].set(fw[0])
    return dict(
        gru1=pack_gru(params["gru1"], IC),
        gru2=pack_gru(params["gru2"], HC),
        gru3=pack_gru(params["gru3"], HC),
        fc_w=fcw,
        fc_b=params["fc1"]["b"].astype(jnp.float32),   # (1,), goes to SMEM
    )


# ----------------------------------------------------------------------------
# Forward wrapper
# ----------------------------------------------------------------------------
@jax.jit
def gru_forward(packed, x):
    """x: (seq_len, input_size) f32. Returns (seq_len, 1, 1) to match PyTorch."""
    S, I = x.shape
    IC = packed["gru1"]["wih"].shape[0]
    HC = packed["gru1"]["whh"].shape[0]
    GP = packed["gru1"]["bhn"].shape[1]

    chunk = min(_round_up(S, SUB), SEQ_CHUNK)   # multiple of SUB
    Sp = _round_up(S, chunk)
    num_chunks = Sp // chunk

    # Trailing timestep padding is safe: padded rows come after all real rows
    # and their (garbage) outputs are sliced off below.
    x_pad = jnp.pad(x.astype(jnp.float32), ((0, Sp - S), (0, IC - I)))

    def const_spec(arr):
        # Constant block index: weight DMA'd once, kept resident across chunks.
        return pl.BlockSpec(arr.shape, lambda c: (0,) * arr.ndim)

    g1, g2, g3 = packed["gru1"], packed["gru2"], packed["gru3"]
    out = pl.pallas_call(
        _fused_gru_kernel,
        out_shape=jax.ShapeDtypeStruct((Sp, LANE), jnp.float32),
        grid=(num_chunks,),
        in_specs=[
            pl.BlockSpec((chunk, IC), lambda c: (c, 0)),
            const_spec(g1["wih"]), const_spec(g1["whh"]),
            const_spec(g1["bx"]), const_spec(g1["bhn"]),
            const_spec(g2["wih"]), const_spec(g2["whh"]),
            const_spec(g2["bx"]), const_spec(g2["bhn"]),
            const_spec(g3["wih"]), const_spec(g3["whh"]),
            const_spec(g3["bx"]), const_spec(g3["bhn"]),
            const_spec(packed["fc_w"]),
            pl.BlockSpec(memory_space=pltpu.MemorySpace.SMEM),   # fc bias scalar
        ],
        out_specs=pl.BlockSpec((chunk, LANE), lambda c: (c, 0)),
        scratch_shapes=[
            pltpu.VMEM((chunk, 3 * GP), jnp.float32),   # xg: input projections
            pltpu.VMEM((chunk, GP), jnp.float32),       # hseq: layer output slab
            pltpu.VMEM((1, GP), jnp.float32),           # h1 carry across chunks
            pltpu.VMEM((1, GP), jnp.float32),           # h2 carry
            pltpu.VMEM((1, GP), jnp.float32),           # h3 carry
        ],
        compiler_params=pltpu.CompilerParams(
            dimension_semantics=("arbitrary",)),        # serial over seq chunks
    )(x_pad,
      g1["wih"], g1["whh"], g1["bx"], g1["bhn"],
      g2["wih"], g2["whh"], g2["bx"], g2["bhn"],
      g3["wih"], g3["whh"], g3["bx"], g3["bhn"],
      packed["fc_w"], packed["fc_b"])

    return out[:S, 0].reshape(S, 1, 1)


# ----------------------------------------------------------------------------
# Pure-JAX reference (PyTorch semantics) for correctness checking
# ----------------------------------------------------------------------------
def _gru_layer_ref(x, w_ih, w_hh, b_ih, b_hh):
    H = w_hh.shape[1]

    def step(h, x_t):
        gi = x_t @ w_ih.T + b_ih
        gh = h @ w_hh.T + b_hh
        r = jax.nn.sigmoid(gi[0:H] + gh[0:H])
        z = jax.nn.sigmoid(gi[H:2 * H] + gh[H:2 * H])
        n = jnp.tanh(gi[2 * H:] + r * gh[2 * H:])
        h_new = (1.0 - z) * n + z * h
        return h_new, h_new

    _, ys = lax.scan(step, jnp.zeros((H,), jnp.float32), x)
    return ys


def gru_forward_ref(params, x):
    h = x
    for name in ("gru1", "gru2", "gru3"):
        p = params[name]
        h = _gru_layer_ref(h, p["w_ih"], p["w_hh"], p["b_ih"], p["b_hh"])
    y = h @ params["fc1"]["w"].T + params["fc1"]["b"]
    return y.reshape(-1, 1, 1)


if __name__ == "__main__":
    seq_len = 8
    input_size = 16
    hidden_size = 32
    hidden_size2 = 32
    hidden_size3 = 32

    key = jax.random.PRNGKey(0)
    kp, kx = jax.random.split(key)
    params = init_params(kp, input_size, hidden_size, hidden_size2, hidden_size3)
    packed = pack_params(params)
    x = jax.random.normal(kx, (seq_len, input_size), jnp.float32)

    y = gru_forward(packed, x)
    jax.block_until_ready(y)
    assert y.shape == (seq_len, 1, 1)

    y_ref = gru_forward_ref(params, x)
    err = float(jnp.max(jnp.abs(y - y_ref)))
    assert err < 1e-2, f"max abs err vs reference: {err}"
    print("KERNEL_OK")
</pallas_src>

<mosaic_0001>
module attributes {stable_mosaic.version = 11 : i64} {
  func.func @_fused_gru_kernel(%arg0: i32, %arg1: memref<8x16xf32, #tpu.memory_space<vmem>>, %arg2: memref<16x384xf32, #tpu.memory_space<vmem>>, %arg3: memref<32x384xf32, #tpu.memory_space<vmem>>, %arg4: memref<1x384xf32, #tpu.memory_space<vmem>>, %arg5: memref<1x128xf32, #tpu.memory_space<vmem>>, %arg6: memref<32x384xf32, #tpu.memory_space<vmem>>, %arg7: memref<32x384xf32, #tpu.memory_space<vmem>>, %arg8: memref<1x384xf32, #tpu.memory_space<vmem>>, %arg9: memref<1x128xf32, #tpu.memory_space<vmem>>, %arg10: memref<32x384xf32, #tpu.memory_space<vmem>>, %arg11: memref<32x384xf32, #tpu.memory_space<vmem>>, %arg12: memref<1x384xf32, #tpu.memory_space<vmem>>, %arg13: memref<1x128xf32, #tpu.memory_space<vmem>>, %arg14: memref<32x128xf32, #tpu.memory_space<vmem>>, %arg15: memref<1xf32, #tpu.memory_space<smem>>, %arg16: memref<8x128xf32, #tpu.memory_space<vmem>>, %arg17: memref<8x384xf32, #tpu.memory_space<vmem>>, %arg18: memref<8x128xf32, #tpu.memory_space<vmem>>, %arg19: memref<1x128xf32, #tpu.memory_space<vmem>>, %arg20: memref<1x128xf32, #tpu.memory_space<vmem>>, %arg21: memref<1x128xf32, #tpu.memory_space<vmem>>) attributes {dimension_semantics = [#tpu.dimension_semantics<arbitrary>], iteration_bounds = array<i64: 1>, scalar_prefetch = 0 : i64, scratch_operands = 5 : i64, tpu.core_type = #tpu.core_type<tc>, window_params = [{transform_indices = @transform_0, window_bounds = array<i64: 8, 16>}, {pipeline_mode = #tpu.pipeline_mode<synchronous>, transform_indices = @transform_1, window_bounds = array<i64: 16, 384>}, {pipeline_mode = #tpu.pipeline_mode<synchronous>, transform_indices = @transform_2, window_bounds = array<i64: 32, 384>}, {pipeline_mode = #tpu.pipeline_mode<synchronous>, transform_indices = @transform_3, window_bounds = array<i64: 1, 384>}, {pipeline_mode = #tpu.pipeline_mode<synchronous>, transform_indices = @transform_4, window_bounds = array<i64: 1, 128>}, {pipeline_mode = #tpu.pipeline_mode<synchronous>, transform_indices = @transform_5, window_bounds = array<i64: 32, 384>}, {pipeline_mode = #tpu.pipeline_mode<synchronous>, transform_indices = @transform_6, window_bounds = array<i64: 32, 384>}, {pipeline_mode = #tpu.pipeline_mode<synchronous>, transform_indices = @transform_7, window_bounds = array<i64: 1, 384>}, {pipeline_mode = #tpu.pipeline_mode<synchronous>, transform_indices = @transform_8, window_bounds = array<i64: 1, 128>}, {pipeline_mode = #tpu.pipeline_mode<synchronous>, transform_indices = @transform_9, window_bounds = array<i64: 32, 384>}, {pipeline_mode = #tpu.pipeline_mode<synchronous>, transform_indices = @transform_10, window_bounds = array<i64: 32, 384>}, {pipeline_mode = #tpu.pipeline_mode<synchronous>, transform_indices = @transform_11, window_bounds = array<i64: 1, 384>}, {pipeline_mode = #tpu.pipeline_mode<synchronous>, transform_indices = @transform_12, window_bounds = array<i64: 1, 128>}, {pipeline_mode = #tpu.pipeline_mode<synchronous>, transform_indices = @transform_13, window_bounds = array<i64: 32, 128>}, {transform_indices = @transform_14, window_bounds = array<i64: 1>}, {transform_indices = @transform_15, window_bounds = array<i64: 8, 128>}]} {
    %c0_i32 = arith.constant 0 : i32
    %0 = arith.cmpi eq, %arg0, %c0_i32 : i32
    %1 = arith.extui %0 : i1 to i32
    %c0_i32_0 = arith.constant 0 : i32
    %2 = arith.cmpi ne, %1, %c0_i32_0 : i32
    scf.if %2 {
      %cst_148 = arith.constant 0.000000e+00 : f32
      %732 = vector.broadcast %cst_148 : f32 to vector<1x128xf32>
      %c0_149 = arith.constant 0 : index
      %c0_150 = arith.constant 0 : index
      %733 = vector.load %arg19[%c0_149, %c0_150] : memref<1x128xf32, #tpu.memory_space<vmem>>, vector<1x128xf32>
      tpu.vector_store %arg19[%c0_149, %c0_150], %732 {strides = array<i32>} : memref<1x128xf32, #tpu.memory_space<vmem>>, vector<1x128xf32>,
      %cst_151 = arith.constant 0.000000e+00 : f32
      %734 = vector.broadcast %cst_151 : f32 to vector<1x128xf32>
      %c0_152 = arith.constant 0 : index
      %c0_153 = arith.constant 0 : index
      %735 = vector.load %arg20[%c0_152, %c0_153] : memref<1x128xf32, #tpu.memory_space<vmem>>, vector<1x128xf32>
      tpu.vector_store %arg20[%c0_152, %c0_153], %734 {strides = array<i32>} : memref<1x128xf32, #tpu.memory_space<vmem>>, vector<1x128xf32>,
      %cst_154 = arith.constant 0.000000e+00 : f32
      %736 = vector.broadcast %cst_154 : f32 to vector<1x128xf32>
      %c0_155 = arith.constant 0 : index
      %c0_156 = arith.constant 0 : index
      %737 = vector.load %arg21[%c0_155, %c0_156] : memref<1x128xf32, #tpu.memory_space<vmem>>, vector<1x128xf32>
      tpu.vector_store %arg21[%c0_155, %c0_156], %736 {strides = array<i32>} : memref<1x128xf32, #tpu.memory_space<vmem>>, vector<1x128xf32>,
    } else {
    }
    %3 = tpu.iota {dimensions = array<i32: 0>} : vector<8x128xi32>
    %c0_i32_1 = arith.constant 0 : i32
    %4 = vector.broadcast %c0_i32_1 : i32 to vector<8x128xi32>
    %5 = arith.cmpi eq, %3, %4 : vector<8x128xi32>
    %c1_i32 = arith.constant 1 : i32
    %6 = vector.broadcast %c1_i32 : i32 to vector<8x128xi32>
    %7 = arith.cmpi eq, %3, %6 : vector<8x128xi32>
    %c2_i32 = arith.constant 2 : i32
    %8 = vector.broadcast %c2_i32 : i32 to vector<8x128xi32>
    %9 = arith.cmpi eq, %3, %8 : vector<8x128xi32>
    %c3_i32 = arith.constant 3 : i32
    %10 = vector.broadcast %c3_i32 : i32 to vector<8x128xi32>
    %11 = arith.cmpi eq, %3, %10 : vector<8x128xi32>
    %c4_i32 = arith.constant 4 : i32
    %12 = vector.broadcast %c4_i32 : i32 to vector<8x128xi32>
    %13 = arith.cmpi eq, %3, %12 : vector<8x128xi32>
    %c5_i32 = arith.constant 5 : i32
    %14 = vector.broadcast %c5_i32 : i32 to vector<8x128xi32>
    %15 = arith.cmpi eq, %3, %14 : vector<8x128xi32>
    %c6_i32 = arith.constant 6 : i32
    %16 = vector.broadcast %c6_i32 : i32 to vector<8x128xi32>
    %17 = arith.cmpi eq, %3, %16 : vector<8x128xi32>
    %c7_i32 = arith.constant 7 : i32
    %18 = vector.broadcast %c7_i32 : i32 to vector<8x128xi32>
    %19 = arith.cmpi eq, %3, %18 : vector<8x128xi32>
    %c0 = arith.constant 0 : index
    %c0_2 = arith.constant 0 : index
    %20 = vector.load %arg1[%c0, %c0_2] : memref<8x16xf32, #tpu.memory_space<vmem>>, vector<8x16xf32>
    %c0_3 = arith.constant 0 : index
    %c0_4 = arith.constant 0 : index
    %21 = vector.load %arg2[%c0_3, %c0_4] : memref<16x384xf32, #tpu.memory_space<vmem>>, vector<16x384xf32>
    %cst = arith.constant dense<0.000000e+00> : vector<8x384xf32>
    %22 = tpu.matmul %20, %21, %cst {dimension_numbers = #tpu.dot_dimension_numbers<[1], [0], [0], [1], [0, 0, 1, 1], [], []>} : vector<8x16xf32>, vector<16x384xf32>, vector<8x384xf32> -> vector<8x384xf32>
    %c0_5 = arith.constant 0 : index
    %c0_6 = arith.constant 0 : index
    %23 = vector.load %arg4[%c0_5, %c0_6] : memref<1x384xf32, #tpu.memory_space<vmem>>, vector<1x384xf32>
    %24 = vector.broadcast %23 : vector<1x384xf32> to vector<8x384xf32>
    %25 = arith.addf %22, %24 : vector<8x384xf32>
    %c0_7 = arith.constant 0 : index
    %c0_8 = arith.constant 0 : index
    %26 = vector.load %arg17[%c0_7, %c0_8] : memref<8x384xf32, #tpu.memory_space<vmem>>, vector<8x384xf32>
    tpu.vector_store %arg17[%c0_7, %c0_8], %25 {strides = array<i32>} : memref<8x384xf32, #tpu.memory_space<vmem>>, vector<8x384xf32>,
    %c0_9 = arith.constant 0 : index
    %c0_10 = arith.constant 0 : index
    %27 = vector.load %arg3[%c0_9, %c0_10] : memref<32x384xf32, #tpu.memory_space<vmem>>, vector<32x384xf32>
    %c0_11 = arith.constant 0 : index
    %c0_12 = arith.constant 0 : index
    %28 = vector.load %arg5[%c0_11, %c0_12] : memref<1x128xf32, #tpu.memory_space<vmem>>, vector<1x128xf32>
    %c0_13 = arith.constant 0 : index
    %c0_14 = arith.constant 0 : index
    %29 = vector.load %arg19[%c0_13, %c0_14] : memref<1x128xf32, #tpu.memory_space<vmem>>, vector<1x128xf32>
    %c0_i32_15 = arith.constant 0 : i32
    %c8_i32 = arith.constant 8 : i32
    %30 = arith.muli %c0_i32_15, %c8_i32 : i32
    %31 = tpu.assume_multiple %30, 8 : i32
    %32 = arith.index_cast %31 : i32 to index
    %c0_16 = arith.constant 0 : index
    %33 = vector.load %arg17[%32, %c0_16] : memref<8x384xf32, #tpu.memory_space<vmem>>, vector<8x384xf32>
    %cst_17 = arith.constant 0.000000e+00 : f32
    %34 = vector.broadcast %cst_17 : f32 to vector<8x128xf32>
    %35 = vector.extract_strided_slice %33 {offsets = [0, 0], sizes = [1, 384], strides = [1, 1]} : vector<8x384xf32> to vector<1x384xf32>
    %36 = vector.extract_strided_slice %29 {offsets = [0, 0], sizes = [1, 32], strides = [1, 1]} : vector<1x128xf32> to vector<1x32xf32>
    %cst_18 = arith.constant dense<0.000000e+00> : vector<1x384xf32>
    %37 = tpu.matmul %36, %27, %cst_18 {dimension_numbers = #tpu.dot_dimension_numbers<[1], [0], [0], [1], [0, 0, 1, 1], [], []>} : vector<1x32xf32>, vector<32x384xf32>, vector<1x384xf32> -> vector<1x384xf32>
    %38 = vector.extract_strided_slice %35 {offsets = [0, 0], sizes = [1, 256], strides = [1, 1]} : vector<1x384xf32> to vector<1x256xf32>
    %39 = vector.extract_strided_slice %37 {offsets = [0, 0], sizes = [1, 256], strides = [1, 1]} : vector<1x384xf32> to vector<1x256xf32>
    %40 = arith.addf %38, %39 : vector<1x256xf32>
    %41 = arith.negf %40 : vector<1x256xf32>
    %42 = math.exp %41 : vector<1x256xf32>
    %cst_19 = arith.constant 1.000000e+00 : f32
    %43 = vector.broadcast %cst_19 : f32 to vector<1x256xf32>
    %44 = arith.addf %43, %42 : vector<1x256xf32>
    %45 = arith.divf %43, %44 : vector<1x256xf32>
    %46 = vector.extract_strided_slice %45 {offsets = [0, 0], sizes = [1, 128], strides = [1, 1]} : vector<1x256xf32> to vector<1x128xf32>
    %47 = vector.extract_strided_slice %45 {offsets = [0, 128], sizes = [1, 128], strides = [1, 1]} : vector<1x256xf32> to vector<1x128xf32>
    %48 = vector.extract_strided_slice %35 {offsets = [0, 256], sizes = [1, 128], strides = [1, 1]} : vector<1x384xf32> to vector<1x128xf32>
    %49 = vector.extract_strided_slice %37 {offsets = [0, 256], sizes = [1, 128], strides = [1, 1]} : vector<1x384xf32> to vector<1x128xf32>
    %50 = arith.addf %49, %28 : vector<1x128xf32>
    %51 = arith.mulf %46, %50 : vector<1x128xf32>
    %52 = arith.addf %48, %51 : vector<1x128xf32>
    %53 = math.tanh %52 : vector<1x128xf32>
    %cst_20 = arith.constant 1.000000e+00 : f32
    %54 = vector.broadcast %cst_20 : f32 to vector<1x128xf32>
    %55 = arith.subf %54, %47 : vector<1x128xf32>
    %56 = arith.mulf %55, %53 : vector<1x128xf32>
    %57 = arith.mulf %47, %29 : vector<1x128xf32>
    %58 = arith.addf %56, %57 : vector<1x128xf32>
    %59 = vector.shape_cast %58 : vector<1x128xf32> to vector<1x128xf32>
    %60 = vector.broadcast %59 : vector<1x128xf32> to vector<8x128xf32>
    %61 = arith.select %5, %60, %34 : vector<8x128xi1>, vector<8x128xf32>
    %62 = vector.extract_strided_slice %33 {offsets = [1, 0], sizes = [1, 384], strides = [1, 1]} : vector<8x384xf32> to vector<1x384xf32>
    %63 = vector.extract_strided_slice %58 {offsets = [0, 0], sizes = [1, 32], strides = [1, 1]} : vector<1x128xf32> to vector<1x32xf32>
    %cst_21 = arith.constant dense<0.000000e+00> : vector<1x384xf32>
    %64 = tpu.matmul %63, %27, %cst_21 {dimension_numbers = #tpu.dot_dimension_numbers<[1], [0], [0], [1], [0, 0, 1, 1], [], []>} : vector<1x32xf32>, vector<32x384xf32>, vector<1x384xf32> -> vector<1x384xf32>
    %65 = vector.extract_strided_slice %62 {offsets = [0, 0], sizes = [1, 256], strides = [1, 1]} : vector<1x384xf32> to vector<1x256xf32>
    %66 = vector.extract_strided_slice %64 {offsets = [0, 0], sizes = [1, 256], strides = [1, 1]} : vector<1x384xf32> to vector<1x256xf32>
    %67 = arith.addf %65, %66 : vector<1x256xf32>
    %68 = arith.negf %67 : vector<1x256xf32>
    %69 = math.exp %68 : vector<1x256xf32>
    %cst_22 = arith.constant 1.000000e+00 : f32
    %70 = vector.broadcast %cst_22 : f32 to vector<1x256xf32>
    %71 = arith.addf %70, %69 : vector<1x256xf32>
    %72 = arith.divf %70, %71 : vector<1x256xf32>
    %73 = vector.extract_strided_slice %72 {offsets = [0, 0], sizes = [1, 128], strides = [1, 1]} : vector<1x256xf32> to vector<1x128xf32>
    %74 = vector.extract_strided_slice %72 {offsets = [0, 128], sizes = [1, 128], strides = [1, 1]} : vector<1x256xf32> to vector<1x128xf32>
    %75 = vector.extract_strided_slice %62 {offsets = [0, 256], sizes = [1, 128], strides = [1, 1]} : vector<1x384xf32> to vector<1x128xf32>
    %76 = vector.extract_strided_slice %64 {offsets = [0, 256], sizes = [1, 128], strides = [1, 1]} : vector<1x384xf32> to vector<1x128xf32>
    %77 = arith.addf %76, %28 : vector<1x128xf32>
    %78 = arith.mulf %73, %77 : vector<1x128xf32>
    %79 = arith.addf %75, %78 : vector<1x128xf32>
    %80 = math.tanh %79 : vector<1x128xf32>
    %cst_23 = arith.constant 1.000000e+00 : f32
    %81 = vector.broadcast %cst_23 : f32 to vector<1x128xf32>
    %82 = arith.subf %81, %74 : vector<1x128xf32>
    %83 = arith.mulf %82, %80 : vector<1x128xf32>
    %84 = arith.mulf %74, %58 : vector<1x128xf32>
    %85 = arith.addf %83, %84 : vector<1x128xf32>
    %86 = vector.shape_cast %85 : vector<1x128xf32> to vector<1x128xf32>
    %87 = vector.broadcast %86 : vector<1x128xf32> to vector<8x128xf32>
    %88 = arith.select %7, %87, %61 : vector<8x128xi1>, vector<8x128xf32>
    %89 = vector.extract_strided_slice %33 {offsets = [2, 0], sizes = [1, 384], strides = [1, 1]} : vector<8x384xf32> to vector<1x384xf32>
    %90 = vector.extract_strided_slice %85 {offsets = [0, 0], sizes = [1, 32], strides = [1, 1]} : vector<1x128xf32> to vector<1x32xf32>
    %cst_24 = arith.constant dense<0.000000e+00> : vector<1x384xf32>
    %91 = tpu.matmul %90, %27, %cst_24 {dimension_numbers = #tpu.dot_dimension_numbers<[1], [0], [0], [1], [0, 0, 1, 1], [], []>} : vector<1x32xf32>, vector<32x384xf32>, vector<1x384xf32> -> vector<1x384xf32>
    %92 = vector.extract_strided_slice %89 {offsets = [0, 0], sizes = [1, 256], strides = [1, 1]} : vector<1x384xf32> to vector<1x256xf32>
    %93 = vector.extract_strided_slice %91 {offsets = [0, 0], sizes = [1, 256], strides = [1, 1]} : vector<1x384xf32> to vector<1x256xf32>
    %94 = arith.addf %92, %93 : vector<1x256xf32>
    %95 = arith.negf %94 : vector<1x256xf32>
    %96 = math.exp %95 : vector<1x256xf32>
    %cst_25 = arith.constant 1.000000e+00 : f32
    %97 = vector.broadcast %cst_25 : f32 to vector<1x256xf32>
    %98 = arith.addf %97, %96 : vector<1x256xf32>
    %99 = arith.divf %97, %98 : vector<1x256xf32>
    %100 = vector.extract_strided_slice %99 {offsets = [0, 0], sizes = [1, 128], strides = [1, 1]} : vector<1x256xf32> to vector<1x128xf32>
    %101 = vector.extract_strided_slice %99 {offsets = [0, 128], sizes = [1, 128], strides = [1, 1]} : vector<1x256xf32> to vector<1x128xf32>
    %102 = vector.extract_strided_slice %89 {offsets = [0, 256], sizes = [1, 128], strides = [1, 1]} : vector<1x384xf32> to vector<1x128xf32>
    %103 = vector.extract_strided_slice %91 {offsets = [0, 256], sizes = [1, 128], strides = [1, 1]} : vector<1x384xf32> to vector<1x128xf32>
    %104 = arith.addf %103, %28 : vector<1x128xf32>
    %105 = arith.mulf %100, %104 : vector<1x128xf32>
    %106 = arith.addf %102, %105 : vector<1x128xf32>
    %107 = math.tanh %106 : vector<1x128xf32>
    %cst_26 = arith.constant 1.000000e+00 : f32
    %108 = vector.broadcast %cst_26 : f32 to vector<1x128xf32>
    %109 = arith.subf %108, %101 : vector<1x128xf32>
    %110 = arith.mulf %109, %107 : vector<1x128xf32>
    %111 = arith.mulf %101, %85 : vector<1x128xf32>
    %112 = arith.addf %110, %111 : vector<1x128xf32>
    %113 = vector.shape_cast %112 : vector<1x128xf32> to vector<1x128xf32>
    %114 = vector.broadcast %113 : vector<1x128xf32> to vector<8x128xf32>
    %115 = arith.select %9, %114, %88 : vector<8x128xi1>, vector<8x128xf32>
    %116 = vector.extract_strided_slice %33 {offsets = [3, 0], sizes = [1, 384], strides = [1, 1]} : vector<8x384xf32> to vector<1x384xf32>
    %117 = vector.extract_strided_slice %112 {offsets = [0, 0], sizes = [1, 32], strides = [1, 1]} : vector<1x128xf32> to vector<1x32xf32>
    %cst_27 = arith.constant dense<0.000000e+00> : vector<1x384xf32>
    %118 = tpu.matmul %117, %27, %cst_27 {dimension_numbers = #tpu.dot_dimension_numbers<[1], [0], [0], [1], [0, 0, 1, 1], [], []>} : vector<1x32xf32>, vector<32x384xf32>, vector<1x384xf32> -> vector<1x384xf32>
    %119 = vector.extract_strided_slice %116 {offsets = [0, 0], sizes = [1, 256], strides = [1, 1]} : vector<1x384xf32> to vector<1x256xf32>
    %120 = vector.extract_strided_slice %118 {offsets = [0, 0], sizes = [1, 256], strides = [1, 1]} : vector<1x384xf32> to vector<1x256xf32>
    %121 = arith.addf %119, %120 : vector<1x256xf32>
    %122 = arith.negf %121 : vector<1x256xf32>
    %123 = math.exp %122 : vector<1x256xf32>
    %cst_28 = arith.constant 1.000000e+00 : f32
    %124 = vector.broadcast %cst_28 : f32 to vector<1x256xf32>
    %125 = arith.addf %124, %123 : vector<1x256xf32>
    %126 = arith.divf %124, %125 : vector<1x256xf32>
    %127 = vector.extract_strided_slice %126 {offsets = [0, 0], sizes = [1, 128], strides = [1, 1]} : vector<1x256xf32> to vector<1x128xf32>
    %128 = vector.extract_strided_slice %126 {offsets = [0, 128], sizes = [1, 128], strides = [1, 1]} : vector<1x256xf32> to vector<1x128xf32>
    %129 = vector.extract_strided_slice %116 {offsets = [0, 256], sizes = [1, 128], strides = [1, 1]} : vector<1x384xf32> to vector<1x128xf32>
    %130 = vector.extract_strided_slice %118 {offsets = [0, 256], sizes = [1, 128], strides = [1, 1]} : vector<1x384xf32> to vector<1x128xf32>
    %131 = arith.addf %130, %28 : vector<1x128xf32>
    %132 = arith.mulf %127, %131 : vector<1x128xf32>
    %133 = arith.addf %129, %132 : vector<1x128xf32>
    %134 = math.tanh %133 : vector<1x128xf32>
    %cst_29 = arith.constant 1.000000e+00 : f32
    %135 = vector.broadcast %cst_29 : f32 to vector<1x128xf32>
    %136 = arith.subf %135, %128 : vector<1x128xf32>
    %137 = arith.mulf %136, %134 : vector<1x128xf32>
    %138 = arith.mulf %128, %112 : vector<1x128xf32>
    %139 = arith.addf %137, %138 : vector<1x128xf32>
    %140 = vector.shape_cast %139 : vector<1x128xf32> to vector<1x128xf32>
    %141 = vector.broadcast %140 : vector<1x128xf32> to vector<8x128xf32>
    %142 = arith.select %11, %141, %115 : vector<8x128xi1>, vector<8x128xf32>
    %143 = vector.extract_strided_slice %33 {offsets = [4, 0], sizes = [1, 384], strides = [1, 1]} : vector<8x384xf32> to vector<1x384xf32>
    %144 = vector.extract_strided_slice %139 {offsets = [0, 0], sizes = [1, 32], strides = [1, 1]} : vector<1x128xf32> to vector<1x32xf32>
    %cst_30 = arith.constant dense<0.000000e+00> : vector<1x384xf32>
    %145 = tpu.matmul %144, %27, %cst_30 {dimension_numbers = #tpu.dot_dimension_numbers<[1], [0], [0], [1], [0, 0, 1, 1], [], []>} : vector<1x32xf32>, vector<32x384xf32>, vector<1x384xf32> -> vector<1x384xf32>
    %146 = vector.extract_strided_slice %143 {offsets = [0, 0], sizes = [1, 256], strides = [1, 1]} : vector<1x384xf32> to vector<1x256xf32>
    %147 = vector.extract_strided_slice %145 {offsets = [0, 0], sizes = [1, 256], strides = [1, 1]} : vector<1x384xf32> to vector<1x256xf32>
    %148 = arith.addf %146, %147 : vector<1x256xf32>
    %149 = arith.negf %148 : vector<1x256xf32>
    %150 = math.exp %149 : vector<1x256xf32>
    %cst_31 = arith.constant 1.000000e+00 : f32
    %151 = vector.broadcast %cst_31 : f32 to vector<1x256xf32>
    %152 = arith.addf %151, %150 : vector<1x256xf32>
    %153 = arith.divf %151, %152 : vector<1x256xf32>
    %154 = vector.extract_strided_slice %153 {offsets = [0, 0], sizes = [1, 128], strides = [1, 1]} : vector<1x256xf32> to vector<1x128xf32>
    %155 = vector.extract_strided_slice %153 {offsets = [0, 128], sizes = [1, 128], strides = [1, 1]} : vector<1x256xf32> to vector<1x128xf32>
    %156 = vector.extract_strided_slice %143 {offsets = [0, 256], sizes = [1, 128], strides = [1, 1]} : vector<1x384xf32> to vector<1x128xf32>
    %157 = vector.extract_strided_slice %145 {offsets = [0, 256], sizes = [1, 128], strides = [1, 1]} : vector<1x384xf32> to vector<1x128xf32>
    %158 = arith.addf %157, %28 : vector<1x128xf32>
    %159 = arith.mulf %154, %158 : vector<1x128xf32>
    %160 = arith.addf %156, %159 : vector<1x128xf32>
    %161 = math.tanh %160 : vector<1x128xf32>
    %cst_32 = arith.constant 1.000000e+00 : f32
    %162 = vector.broadcast %cst_32 : f32 to vector<1x128xf32>
    %163 = arith.subf %162, %155 : vector<1x128xf32>
    %164 = arith.mulf %163, %161 : vector<1x128xf32>
    %165 = arith.mulf %155, %139 : vector<1x128xf32>
    %166 = arith.addf %164, %165 : vector<1x128xf32>
    %167 = vector.shape_cast %166 : vector<1x128xf32> to vector<1x128xf32>
    %168 = vector.broadcast %167 : vector<1x128xf32> to vector<8x128xf32>
    %169 = arith.select %13, %168, %142 : vector<8x128xi1>, vector<8x128xf32>
    %170 = vector.extract_strided_slice %33 {offsets = [5, 0], sizes = [1, 384], strides = [1, 1]} : vector<8x384xf32> to vector<1x384xf32>
    %171 = vector.extract_strided_slice %166 {offsets = [0, 0], sizes = [1, 32], strides = [1, 1]} : vector<1x128xf32> to vector<1x32xf32>
    %cst_33 = arith.constant dense<0.000000e+00> : vector<1x384xf32>
    %172 = tpu.matmul %171, %27, %cst_33 {dimension_numbers = #tpu.dot_dimension_numbers<[1], [0], [0], [1], [0, 0, 1, 1], [], []>} : vector<1x32xf32>, vector<32x384xf32>, vector<1x384xf32> -> vector<1x384xf32>
    %173 = vector.extract_strided_slice %170 {offsets = [0, 0], sizes = [1, 256], strides = [1, 1]} : vector<1x384xf32> to vector<1x256xf32>
    %174 = vector.extract_strided_slice %172 {offsets = [0, 0], sizes = [1, 256], strides = [1, 1]} : vector<1x384xf32> to vector<1x256xf32>
    %175 = arith.addf %173, %174 : vector<1x256xf32>
    %176 = arith.negf %175 : vector<1x256xf32>
    %177 = math.exp %176 : vector<1x256xf32>
    %cst_34 = arith.constant 1.000000e+00 : f32
    %178 = vector.broadcast %cst_34 : f32 to vector<1x256xf32>
    %179 = arith.addf %178, %177 : vector<1x256xf32>
    %180 = arith.divf %178, %179 : vector<1x256xf32>
    %181 = vector.extract_strided_slice %180 {offsets = [0, 0], sizes = [1, 128], strides = [1, 1]} : vector<1x256xf32> to vector<1x128xf32>
    %182 = vector.extract_strided_slice %180 {offsets = [0, 128], sizes = [1, 128], strides = [1, 1]} : vector<1x256xf32> to vector<1x128xf32>
    %183 = vector.extract_strided_slice %170 {offsets = [0, 256], sizes = [1, 128], strides = [1, 1]} : vector<1x384xf32> to vector<1x128xf32>
    %184 = vector.extract_strided_slice %172 {offsets = [0, 256], sizes = [1, 128], strides = [1, 1]} : vector<1x384xf32> to vector<1x128xf32>
    %185 = arith.addf %184, %28 : vector<1x128xf32>
    %186 = arith.mulf %181, %185 : vector<1x128xf32>
    %187 = arith.addf %183, %186 : vector<1x128xf32>
    %188 = math.tanh %187 : vector<1x128xf32>
    %cst_35 = arith.constant 1.000000e+00 : f32
    %189 = vector.broadcast %cst_35 : f32 to vector<1x128xf32>
    %190 = arith.subf %189, %182 : vector<1x128xf32>
    %191 = arith.mulf %190, %188 : vector<1x128xf32>
    %192 = arith.mulf %182, %166 : vector<1x128xf32>
    %193 = arith.addf %191, %192 : vector<1x128xf32>
    %194 = vector.shape_cast %193 : vector<1x128xf32> to vector<1x128xf32>
    %195 = vector.broadcast %194 : vector<1x128xf32> to vector<8x128xf32>
    %196 = arith.select %15, %195, %169 : vector<8x128xi1>, vector<8x128xf32>
    %197 = vector.extract_strided_slice %33 {offsets = [6, 0], sizes = [1, 384], strides = [1, 1]} : vector<8x384xf32> to vector<1x384xf32>
    %198 = vector.extract_strided_slice %193 {offsets = [0, 0], sizes = [1, 32], strides = [1, 1]} : vector<1x128xf32> to vector<1x32xf32>
    %cst_36 = arith.constant dense<0.000000e+00> : vector<1x384xf32>
    %199 = tpu.matmul %198, %27, %cst_36 {dimension_numbers = #tpu.dot_dimension_numbers<[1], [0], [0], [1], [0, 0, 1, 1], [], []>} : vector<1x32xf32>, vector<32x384xf32>, vector<1x384xf32> -> vector<1x384xf32>
    %200 = vector.extract_strided_slice %197 {offsets = [0, 0], sizes = [1, 256], strides = [1, 1]} : vector<1x384xf32> to vector<1x256xf32>
    %201 = vector.extract_strided_slice %199 {offsets = [0, 0], sizes = [1, 256], strides = [1, 1]} : vector<1x384xf32> to vector<1x256xf32>
    %202 = arith.addf %200, %201 : vector<1x256xf32>
    %203 = arith.negf %202 : vector<1x256xf32>
    %204 = math.exp %203 : vector<1x256xf32>
    %cst_37 = arith.constant 1.000000e+00 : f32
    %205 = vector.broadcast %cst_37 : f32 to vector<1x256xf32>
    %206 = arith.addf %205, %204 : vector<1x256xf32>
    %207 = arith.divf %205, %206 : vector<1x256xf32>
    %208 = vector.extract_strided_slice %207 {offsets = [0, 0], sizes = [1, 128], strides = [1, 1]} : vector<1x256xf32> to vector<1x128xf32>
    %209 = vector.extract_strided_slice %207 {offsets = [0, 128], sizes = [1, 128], strides = [1, 1]} : vector<1x256xf32> to vector<1x128xf32>
    %210 = vector.extract_strided_slice %197 {offsets = [0, 256], sizes = [1, 128], strides = [1, 1]} : vector<1x384xf32> to vector<1x128xf32>
    %211 = vector.extract_strided_slice %199 {offsets = [0, 256], sizes = [1, 128], strides = [1, 1]} : vector<1x384xf32> to vector<1x128xf32>
    %212 = arith.addf %211, %28 : vector<1x128xf32>
    %213 = arith.mulf %208, %212 : vector<1x128xf32>
    %214 = arith.addf %210, %213 : vector<1x128xf32>
    %215 = math.tanh %214 : vector<1x128xf32>
    %cst_38 = arith.constant 1.000000e+00 : f32
    %216 = vector.broadcast %cst_38 : f32 to vector<1x128xf32>
    %217 = arith.subf %216, %209 : vector<1x128xf32>
    %218 = arith.mulf %217, %215 : vector<1x128xf32>
    %219 = arith.mulf %209, %193 : vector<1x128xf32>
    %220 = arith.addf %218, %219 : vector<1x128xf32>
    %221 = vector.shape_cast %220 : vector<1x128xf32> to vector<1x128xf32>
    %222 = vector.broadcast %221 : vector<1x128xf32> to vector<8x128xf32>
    %223 = arith.select %17, %222, %196 : vector<8x128xi1>, vector<8x128xf32>
    %224 = vector.extract_strided_slice %33 {offsets = [7, 0], sizes = [1, 384], strides = [1, 1]} : vector<8x384xf32> to vector<1x384xf32>
    %225 = vector.extract_strided_slice %220 {offsets = [0, 0], sizes = [1, 32], strides = [1, 1]} : vector<1x128xf32> to vector<1x32xf32>
    %cst_39 = arith.constant dense<0.000000e+00> : vector<1x384xf32>
    %226 = tpu.matmul %225, %27, %cst_39 {dimension_numbers = #tpu.dot_dimension_numbers<[1], [0], [0], [1], [0, 0, 1, 1], [], []>} : vector<1x32xf32>, vector<32x384xf32>, vector<1x384xf32> -> vector<1x384xf32>
    %227 = vector.extract_strided_slice %224 {offsets = [0, 0], sizes = [1, 256], strides = [1, 1]} : vector<1x384xf32> to vector<1x256xf32>
    %228 = vector.extract_strided_slice %226 {offsets = [0, 0], sizes = [1, 256], strides = [1, 1]} : vector<1x384xf32> to vector<1x256xf32>
    %229 = arith.addf %227, %228 : vector<1x256xf32>
    %230 = arith.negf %229 : vector<1x256xf32>
    %231 = math.exp %230 : vector<1x256xf32>
    %cst_40 = arith.constant 1.000000e+00 : f32
    %232 = vector.broadcast %cst_40 : f32 to vector<1x256xf32>
    %233 = arith.addf %232, %231 : vector<1x256xf32>
    %234 = arith.divf %232, %233 : vector<1x256xf32>
    %235 = vector.extract_strided_slice %234 {offsets = [0, 0], sizes = [1, 128], strides = [1, 1]} : vector<1x256xf32> to vector<1x128xf32>
    %236 = vector.extract_strided_slice %234 {offsets = [0, 128], sizes = [1, 128], strides = [1, 1]} : vector<1x256xf32> to vector<1x128xf32>
    %237 = vector.extract_strided_slice %224 {offsets = [0, 256], sizes = [1, 128], strides = [1, 1]} : vector<1x384xf32> to vector<1x128xf32>
    %238 = vector.extract_strided_slice %226 {offsets = [0, 256], sizes = [1, 128], strides = [1, 1]} : vector<1x384xf32> to vector<1x128xf32>
    %239 = arith.addf %238, %28 : vector<1x128xf32>
    %240 = arith.mulf %235, %239 : vector<1x128xf32>
    %241 = arith.addf %237, %240 : vector<1x128xf32>
    %242 = math.tanh %241 : vector<1x128xf32>
    %cst_41 = arith.constant 1.000000e+00 : f32
    %243 = vector.broadcast %cst_41 : f32 to vector<1x128xf32>
    %244 = arith.subf %243, %236 : vector<1x128xf32>
    %245 = arith.mulf %244, %242 : vector<1x128xf32>
    %246 = arith.mulf %236, %220 : vector<1x128xf32>
    %247 = arith.addf %245, %246 : vector<1x128xf32>
    %248 = vector.shape_cast %247 : vector<1x128xf32> to vector<1x128xf32>
    %249 = vector.broadcast %248 : vector<1x128xf32> to vector<8x128xf32>
    %250 = arith.select %19, %249, %223 : vector<8x128xi1>, vector<8x128xf32>
    %251 = arith.index_cast %31 : i32 to index
    %c0_42 = arith.constant 0 : index
    %252 = vector.load %arg18[%251, %c0_42] : memref<8x128xf32, #tpu.memory_space<vmem>>, vector<8x128xf32>
    tpu.vector_store %arg18[%251, %c0_42], %250 {strides = array<i32>} : memref<8x128xf32, #tpu.memory_space<vmem>>, vector<8x128xf32>,
    %c1_i32_43 = arith.constant 1 : i32
    %c0_44 = arith.constant 0 : index
    %c0_45 = arith.constant 0 : index
    %253 = vector.load %arg19[%c0_44, %c0_45] : memref<1x128xf32, #tpu.memory_space<vmem>>, vector<1x128xf32>
    tpu.vector_store %arg19[%c0_44, %c0_45], %247 {strides = array<i32>} : memref<1x128xf32, #tpu.memory_space<vmem>>, vector<1x128xf32>,
    %c0_46 = arith.constant 0 : index
    %c0_47 = arith.constant 0 : index
    %254 = vector.load %arg18[%c0_46, %c0_47] : memref<8x128xf32, #tpu.memory_space<vmem>>, vector<8x128xf32>
    %255 = vector.extract_strided_slice %254 {offsets = [0, 0], sizes = [8, 32], strides = [1, 1]} : vector<8x128xf32> to vector<8x32xf32>
    %c0_48 = arith.constant 0 : index
    %c0_49 = arith.constant 0 : index
    %256 = vector.load %arg6[%c0_48, %c0_49] : memref<32x384xf32, #tpu.memory_space<vmem>>, vector<32x384xf32>
    %cst_50 = arith.constant dense<0.000000e+00> : vector<8x384xf32>
    %257 = tpu.matmul %255, %256, %cst_50 {dimension_numbers = #tpu.dot_dimension_numbers<[1], [0], [0], [1], [0, 0, 1, 1], [], []>} : vector<8x32xf32>, vector<32x384xf32>, vector<8x384xf32> -> vector<8x384xf32>
    %c0_51 = arith.constant 0 : index
    %c0_52 = arith.constant 0 : index
    %258 = vector.load %arg8[%c0_51, %c0_52] : memref<1x384xf32, #tpu.memory_space<vmem>>, vector<1x384xf32>
    %259 = vector.broadcast %258 : vector<1x384xf32> to vector<8x384xf32>
    %260 = arith.addf %257, %259 : vector<8x384xf32>
    %c0_53 = arith.constant 0 : index
    %c0_54 = arith.constant 0 : index
    %261 = vector.load %arg17[%c0_53, %c0_54] : memref<8x384xf32, #tpu.memory_space<vmem>>, vector<8x384xf32>
    tpu.vector_store %arg17[%c0_53, %c0_54], %260 {strides = array<i32>} : memref<8x384xf32, #tpu.memory_space<vmem>>, vector<8x384xf32>,
    %c0_55 = arith.constant 0 : index
    %c0_56 = arith.constant 0 : index
    %262 = vector.load %arg7[%c0_55, %c0_56] : memref<32x384xf32, #tpu.memory_space<vmem>>, vector<32x384xf32>
    %c0_57 = arith.constant 0 : index
    %c0_58 = arith.constant 0 : index
    %263 = vector.load %arg9[%c0_57, %c0_58] : memref<1x128xf32, #tpu.memory_space<vmem>>, vector<1x128xf32>
    %c0_59 = arith.constant 0 : index
    %c0_60 = arith.constant 0 : index
    %264 = vector.load %arg20[%c0_59, %c0_60] : memref<1x128xf32, #tpu.memory_space<vmem>>, vector<1x128xf32>
    %c0_i32_61 = arith.constant 0 : i32
    %c8_i32_62 = arith.constant 8 : i32
    %265 = arith.muli %c0_i32_61, %c8_i32_62 : i32
    %266 = tpu.assume_multiple %265, 8 : i32
    %267 = arith.index_cast %266 : i32 to index
    %c0_63 = arith.constant 0 : index
    %268 = vector.load %arg17[%267, %c0_63] : memref<8x384xf32, #tpu.memory_space<vmem>>, vector<8x384xf32>
    %cst_64 = arith.constant 0.000000e+00 : f32
    %269 = vector.broadcast %cst_64 : f32 to vector<8x128xf32>
    %270 = vector.extract_strided_slice %268 {offsets = [0, 0], sizes = [1, 384], strides = [1, 1]} : vector<8x384xf32> to vector<1x384xf32>
    %271 = vector.extract_strided_slice %264 {offsets = [0, 0], sizes = [1, 32], strides = [1, 1]} : vector<1x128xf32> to vector<1x32xf32>
    %cst_65 = arith.constant dense<0.000000e+00> : vector<1x384xf32>
    %272 = tpu.matmul %271, %262, %cst_65 {dimension_numbers = #tpu.dot_dimension_numbers<[1], [0], [0], [1], [0, 0, 1, 1], [], []>} : vector<1x32xf32>, vector<32x384xf32>, vector<1x384xf32> -> vector<1x384xf32>
    %273 = vector.extract_strided_slice %270 {offsets = [0, 0], sizes = [1, 256], strides = [1, 1]} : vector<1x384xf32> to vector<1x256xf32>
    %274 = vector.extract_strided_slice %272 {offsets = [0, 0], sizes = [1, 256], strides = [1, 1]} : vector<1x384xf32> to vector<1x256xf32>
    %275 = arith.addf %273, %274 : vector<1x256xf32>
    %276 = arith.negf %275 : vector<1x256xf32>
    %277 = math.exp %276 : vector<1x256xf32>
    %cst_66 = arith.constant 1.000000e+00 : f32
    %278 = vector.broadcast %cst_66 : f32 to vector<1x256xf32>
    %279 = arith.addf %278, %277 : vector<1x256xf32>
    %280 = arith.divf %278, %279 : vector<1x256xf32>
    %281 = vector.extract_strided_slice %280 {offsets = [0, 0], sizes = [1, 128], strides = [1, 1]} : vector<1x256xf32> to vector<1x128xf32>
    %282 = vector.extract_strided_slice %280 {offsets = [0, 128], sizes = [1, 128], strides = [1, 1]} : vector<1x256xf32> to vector<1x128xf32>
    %283 = vector.extract_strided_slice %270 {offsets = [0, 256], sizes = [1, 128], strides = [1, 1]} : vector<1x384xf32> to vector<1x128xf32>
    %284 = vector.extract_strided_slice %272 {offsets = [0, 256], sizes = [1, 128], strides = [1, 1]} : vector<1x384xf32> to vector<1x128xf32>
    %285 = arith.addf %284, %263 : vector<1x128xf32>
    %286 = arith.mulf %281, %285 : vector<1x128xf32>
    %287 = arith.addf %283, %286 : vector<1x128xf32>
    %288 = math.tanh %287 : vector<1x128xf32>
    %cst_67 = arith.constant 1.000000e+00 : f32
    %289 = vector.broadcast %cst_67 : f32 to vector<1x128xf32>
    %290 = arith.subf %289, %282 : vector<1x128xf32>
    %291 = arith.mulf %290, %288 : vector<1x128xf32>
    %292 = arith.mulf %282, %264 : vector<1x128xf32>
    %293 = arith.addf %291, %292 : vector<1x128xf32>
    %294 = vector.shape_cast %293 : vector<1x128xf32> to vector<1x128xf32>
    %295 = vector.broadcast %294 : vector<1x128xf32> to vector<8x128xf32>
    %296 = arith.select %5, %295, %269 : vector<8x128xi1>, vector<8x128xf32>
    %297 = vector.extract_strided_slice %268 {offsets = [1, 0], sizes = [1, 384], strides = [1, 1]} : vector<8x384xf32> to vector<1x384xf32>
    %298 = vector.extract_strided_slice %293 {offsets = [0, 0], sizes = [1, 32], strides = [1, 1]} : vector<1x128xf32> to vector<1x32xf32>
    %cst_68 = arith.constant dense<0.000000e+00> : vector<1x384xf32>
    %299 = tpu.matmul %298, %262, %cst_68 {dimension_numbers = #tpu.dot_dimension_numbers<[1], [0], [0], [1], [0, 0, 1, 1], [], []>} : vector<1x32xf32>, vector<32x384xf32>, vector<1x384xf32> -> vector<1x384xf32>
    %300 = vector.extract_strided_slice %297 {offsets = [0, 0], sizes = [1, 256], strides = [1, 1]} : vector<1x384xf32> to vector<1x256xf32>
    %301 = vector.extract_strided_slice %299 {offsets = [0, 0], sizes = [1, 256], strides = [1, 1]} : vector<1x384xf32> to vector<1x256xf32>
    %302 = arith.addf %300, %301 : vector<1x256xf32>
    %303 = arith.negf %302 : vector<1x256xf32>
    %304 = math.exp %303 : vector<1x256xf32>
    %cst_69 = arith.constant 1.000000e+00 : f32
    %305 = vector.broadcast %cst_69 : f32 to vector<1x256xf32>
    %306 = arith.addf %305, %304 : vector<1x256xf32>
    %307 = arith.divf %305, %306 : vector<1x256xf32>
    %308 = vector.extract_strided_slice %307 {offsets = [0, 0], sizes = [1, 128], strides = [1, 1]} : vector<1x256xf32> to vector<1x128xf32>
    %309 = vector.extract_strided_slice %307 {offsets = [0, 128], sizes = [1, 128], strides = [1, 1]} : vector<1x256xf32> to vector<1x128xf32>
    %310 = vector.extract_strided_slice %297 {offsets = [0, 256], sizes = [1, 128], strides = [1, 1]} : vector<1x384xf32> to vector<1x128xf32>
    %311 = vector.extract_strided_slice %299 {offsets = [0, 256], sizes = [1, 128], strides = [1, 1]} : vector<1x384xf32> to vector<1x128xf32>
    %312 = arith.addf %311, %263 : vector<1x128xf32>
    %313 = arith.mulf %308, %312 : vector<1x128xf32>
    %314 = arith.addf %310, %313 : vector<1x128xf32>
    %315 = math.tanh %314 : vector<1x128xf32>
    %cst_70 = arith.constant 1.000000e+00 : f32
    %316 = vector.broadcast %cst_70 : f32 to vector<1x128xf32>
    %317 = arith.subf %316, %309 : vector<1x128xf32>
    %318 = arith.mulf %317, %315 : vector<1x128xf32>
    %319 = arith.mulf %309, %293 : vector<1x128xf32>
    %320 = arith.addf %318, %319 : vector<1x128xf32>
    %321 = vector.shape_cast %320 : vector<1x128xf32> to vector<1x128xf32>
    %322 = vector.broadcast %321 : vector<1x128xf32> to vector<8x128xf32>
    %323 = arith.select %7, %322, %296 : vector<8x128xi1>, vector<8x128xf32>
    %324 = vector.extract_strided_slice %268 {offsets = [2, 0], sizes = [1, 384], strides = [1, 1]} : vector<8x384xf32> to vector<1x384xf32>
    %325 = vector.extract_strided_slice %320 {offsets = [0, 0], sizes = [1, 32], strides = [1, 1]} : vector<1x128xf32> to vector<1x32xf32>
    %cst_71 = arith.constant dense<0.000000e+00> : vector<1x384xf32>
    %326 = tpu.matmul %325, %262, %cst_71 {dimension_numbers = #tpu.dot_dimension_numbers<[1], [0], [0], [1], [0, 0, 1, 1], [], []>} : vector<1x32xf32>, vector<32x384xf32>, vector<1x384xf32> -> vector<1x384xf32>
    %327 = vector.extract_strided_slice %324 {offsets = [0, 0], sizes = [1, 256], strides = [1, 1]} : vector<1x384xf32> to vector<1x256xf32>
    %328 = vector.extract_strided_slice %326 {offsets = [0, 0], sizes = [1, 256], strides = [1, 1]} : vector<1x384xf32> to vector<1x256xf32>
    %329 = arith.addf %327, %328 : vector<1x256xf32>
    %330 = arith.negf %329 : vector<1x256xf32>
    %331 = math.exp %330 : vector<1x256xf32>
    %cst_72 = arith.constant 1.000000e+00 : f32
    %332 = vector.broadcast %cst_72 : f32 to vector<1x256xf32>
    %333 = arith.addf %332, %331 : vector<1x256xf32>
    %334 = arith.divf %332, %333 : vector<1x256xf32>
    %335 = vector.extract_strided_slice %334 {offsets = [0, 0], sizes = [1, 128], strides = [1, 1]} : vector<1x256xf32> to vector<1x128xf32>
    %336 = vector.extract_strided_slice %334 {offsets = [0, 128], sizes = [1, 128], strides = [1, 1]} : vector<1x256xf32> to vector<1x128xf32>
    %337 = vector.extract_strided_slice %324 {offsets = [0, 256], sizes = [1, 128], strides = [1, 1]} : vector<1x384xf32> to vector<1x128xf32>
    %338 = vector.extract_strided_slice %326 {offsets = [0, 256], sizes = [1, 128], strides = [1, 1]} : vector<1x384xf32> to vector<1x128xf32>
    %339 = arith.addf %338, %263 : vector<1x128xf32>
    %340 = arith.mulf %335, %339 : vector<1x128xf32>
    %341 = arith.addf %337, %340 : vector<1x128xf32>
    %342 = math.tanh %341 : vector<1x128xf32>
    %cst_73 = arith.constant 1.000000e+00 : f32
    %343 = vector.broadcast %cst_73 : f32 to vector<1x128xf32>
    %344 = arith.subf %343, %336 : vector<1x128xf32>
    %345 = arith.mulf %344, %342 : vector<1x128xf32>
    %346 = arith.mulf %336, %320 : vector<1x128xf32>
    %347 = arith.addf %345, %346 : vector<1x128xf32>
    %348 = vector.shape_cast %347 : vector<1x128xf32> to vector<1x128xf32>
    %349 = vector.broadcast %348 : vector<1x128xf32> to vector<8x128xf32>
    %350 = arith.select %9, %349, %323 : vector<8x128xi1>, vector<8x128xf32>
    %351 = vector.extract_strided_slice %268 {offsets = [3, 0], sizes = [1, 384], strides = [1, 1]} : vector<8x384xf32> to vector<1x384xf32>
    %352 = vector.extract_strided_slice %347 {offsets = [0, 0], sizes = [1, 32], strides = [1, 1]} : vector<1x128xf32> to vector<1x32xf32>
    %cst_74 = arith.constant dense<0.000000e+00> : vector<1x384xf32>
    %353 = tpu.matmul %352, %262, %cst_74 {dimension_numbers = #tpu.dot_dimension_numbers<[1], [0], [0], [1], [0, 0, 1, 1], [], []>} : vector<1x32xf32>, vector<32x384xf32>, vector<1x384xf32> -> vector<1x384xf32>
    %354 = vector.extract_strided_slice %351 {offsets = [0, 0], sizes = [1, 256], strides = [1, 1]} : vector<1x384xf32> to vector<1x256xf32>
    %355 = vector.extract_strided_slice %353 {offsets = [0, 0], sizes = [1, 256], strides = [1, 1]} : vector<1x384xf32> to vector<1x256xf32>
    %356 = arith.addf %354, %355 : vector<1x256xf32>
    %357 = arith.negf %356 : vector<1x256xf32>
    %358 = math.exp %357 : vector<1x256xf32>
    %cst_75 = arith.constant 1.000000e+00 : f32
    %359 = vector.broadcast %cst_75 : f32 to vector<1x256xf32>
    %360 = arith.addf %359, %358 : vector<1x256xf32>
    %361 = arith.divf %359, %360 : vector<1x256xf32>
    %362 = vector.extract_strided_slice %361 {offsets = [0, 0], sizes = [1, 128], strides = [1, 1]} : vector<1x256xf32> to vector<1x128xf32>
    %363 = vector.extract_strided_slice %361 {offsets = [0, 128], sizes = [1, 128], strides = [1, 1]} : vector<1x256xf32> to vector<1x128xf32>
    %364 = vector.extract_strided_slice %351 {offsets = [0, 256], sizes = [1, 128], strides = [1, 1]} : vector<1x384xf32> to vector<1x128xf32>
    %365 = vector.extract_strided_slice %353 {offsets = [0, 256], sizes = [1, 128], strides = [1, 1]} : vector<1x384xf32> to vector<1x128xf32>
    %366 = arith.addf %365, %263 : vector<1x128xf32>
    %367 = arith.mulf %362, %366 : vector<1x128xf32>
    %368 = arith.addf %364, %367 : vector<1x128xf32>
    %369 = math.tanh %368 : vector<1x128xf32>
    %cst_76 = arith.constant 1.000000e+00 : f32
    %370 = vector.broadcast %cst_76 : f32 to vector<1x128xf32>
    %371 = arith.subf %370, %363 : vector<1x128xf32>
    %372 = arith.mulf %371, %369 : vector<1x128xf32>
    %373 = arith.mulf %363, %347 : vector<1x128xf32>
    %374 = arith.addf %372, %373 : vector<1x128xf32>
    %375 = vector.shape_cast %374 : vector<1x128xf32> to vector<1x128xf32>
    %376 = vector.broadcast %375 : vector<1x128xf32> to vector<8x128xf32>
    %377 = arith.select %11, %376, %350 : vector<8x128xi1>, vector<8x128xf32>
    %378 = vector.extract_strided_slice %268 {offsets = [4, 0], sizes = [1, 384], strides = [1, 1]} : vector<8x384xf32> to vector<1x384xf32>
    %379 = vector.extract_strided_slice %374 {offsets = [0, 0], sizes = [1, 32], strides = [1, 1]} : vector<1x128xf32> to vector<1x32xf32>
    %cst_77 = arith.constant dense<0.000000e+00> : vector<1x384xf32>
    %380 = tpu.matmul %379, %262, %cst_77 {dimension_numbers = #tpu.dot_dimension_numbers<[1], [0], [0], [1], [0, 0, 1, 1], [], []>} : vector<1x32xf32>, vector<32x384xf32>, vector<1x384xf32> -> vector<1x384xf32>
    %381 = vector.extract_strided_slice %378 {offsets = [0, 0], sizes = [1, 256], strides = [1, 1]} : vector<1x384xf32> to vector<1x256xf32>
    %382 = vector.extract_strided_slice %380 {offsets = [0, 0], sizes = [1, 256], strides = [1, 1]} : vector<1x384xf32> to vector<1x256xf32>
    %383 = arith.addf %381, %382 : vector<1x256xf32>
    %384 = arith.negf %383 : vector<1x256xf32>
    %385 = math.exp %384 : vector<1x256xf32>
    %cst_78 = arith.constant 1.000000e+00 : f32
    %386 = vector.broadcast %cst_78 : f32 to vector<1x256xf32>
    %387 = arith.addf %386, %385 : vector<1x256xf32>
    %388 = arith.divf %386, %387 : vector<1x256xf32>
    %389 = vector.extract_strided_slice %388 {offsets = [0, 0], sizes = [1, 128], strides = [1, 1]} : vector<1x256xf32> to vector<1x128xf32>
    %390 = vector.extract_strided_slice %388 {offsets = [0, 128], sizes = [1, 128], strides = [1, 1]} : vector<1x256xf32> to vector<1x128xf32>
    %391 = vector.extract_strided_slice %378 {offsets = [0, 256], sizes = [1, 128], strides = [1, 1]} : vector<1x384xf32> to vector<1x128xf32>
    %392 = vector.extract_strided_slice %380 {offsets = [0, 256], sizes = [1, 128], strides = [1, 1]} : vector<1x384xf32> to vector<1x128xf32>
    %393 = arith.addf %392, %263 : vector<1x128xf32>
    %394 = arith.mulf %389, %393 : vector<1x128xf32>
    %395 = arith.addf %391, %394 : vector<1x128xf32>
    %396 = math.tanh %395 : vector<1x128xf32>
    %cst_79 = arith.constant 1.000000e+00 : f32
    %397 = vector.broadcast %cst_79 : f32 to vector<1x128xf32>
    %398 = arith.subf %397, %390 : vector<1x128xf32>
    %399 = arith.mulf %398, %396 : vector<1x128xf32>
    %400 = arith.mulf %390, %374 : vector<1x128xf32>
    %401 = arith.addf %399, %400 : vector<1x128xf32>
    %402 = vector.shape_cast %401 : vector<1x128xf32> to vector<1x128xf32>
    %403 = vector.broadcast %402 : vector<1x128xf32> to vector<8x128xf32>
    %404 = arith.select %13, %403, %377 : vector<8x128xi1>, vector<8x128xf32>
    %405 = vector.extract_strided_slice %268 {offsets = [5, 0], sizes = [1, 384], strides = [1, 1]} : vector<8x384xf32> to vector<1x384xf32>
    %406 = vector.extract_strided_slice %401 {offsets = [0, 0], sizes = [1, 32], strides = [1, 1]} : vector<1x128xf32> to vector<1x32xf32>
    %cst_80 = arith.constant dense<0.000000e+00> : vector<1x384xf32>
    %407 = tpu.matmul %406, %262, %cst_80 {dimension_numbers = #tpu.dot_dimension_numbers<[1], [0], [0], [1], [0, 0, 1, 1], [], []>} : vector<1x32xf32>, vector<32x384xf32>, vector<1x384xf32> -> vector<1x384xf32>
    %408 = vector.extract_strided_slice %405 {offsets = [0, 0], sizes = [1, 256], strides = [1, 1]} : vector<1x384xf32> to vector<1x256xf32>
    %409 = vector.extract_strided_slice %407 {offsets = [0, 0], sizes = [1, 256], strides = [1, 1]} : vector<1x384xf32> to vector<1x256xf32>
    %410 = arith.addf %408, %409 : vector<1x256xf32>
    %411 = arith.negf %410 : vector<1x256xf32>
    %412 = math.exp %411 : vector<1x256xf32>
    %cst_81 = arith.constant 1.000000e+00 : f32
    %413 = vector.broadcast %cst_81 : f32 to vector<1x256xf32>
    %414 = arith.addf %413, %412 : vector<1x256xf32>
    %415 = arith.divf %413, %414 : vector<1x256xf32>
    %416 = vector.extract_strided_slice %415 {offsets = [0, 0], sizes = [1, 128], strides = [1, 1]} : vector<1x256xf32> to vector<1x128xf32>
    %417 = vector.extract_strided_slice %415 {offsets = [0, 128], sizes = [1, 128], strides = [1, 1]} : vector<1x256xf32> to vector<1x128xf32>
    %418 = vector.extract_strided_slice %405 {offsets = [0, 256], sizes = [1, 128], strides = [1, 1]} : vector<1x384xf32> to vector<1x128xf32>
    %419 = vector.extract_strided_slice %407 {offsets = [0, 256], sizes = [1, 128], strides = [1, 1]} : vector<1x384xf32> to vector<1x128xf32>
    %420 = arith.addf %419, %263 : vector<1x128xf32>
    %421 = arith.mulf %416, %420 : vector<1x128xf32>
    %422 = arith.addf %418, %421 : vector<1x128xf32>
    %423 = math.tanh %422 : vector<1x128xf32>
    %cst_82 = arith.constant 1.000000e+00 : f32
    %424 = vector.broadcast %cst_82 : f32 to vector<1x128xf32>
    %425 = arith.subf %424, %417 : vector<1x128xf32>
    %426 = arith.mulf %425, %423 : vector<1x128xf32>
    %427 = arith.mulf %417, %401 : vector<1x128xf32>
    %428 = arith.addf %426, %427 : vector<1x128xf32>
    %429 = vector.shape_cast %428 : vector<1x128xf32> to vector<1x128xf32>
    %430 = vector.broadcast %429 : vector<1x128xf32> to vector<8x128xf32>
    %431 = arith.select %15, %430, %404 : vector<8x128xi1>, vector<8x128xf32>
    %432 = vector.extract_strided_slice %268 {offsets = [6, 0], sizes = [1, 384], strides = [1, 1]} : vector<8x384xf32> to vector<1x384xf32>
    %433 = vector.extract_strided_slice %428 {offsets = [0, 0], sizes = [1, 32], strides = [1, 1]} : vector<1x128xf32> to vector<1x32xf32>
    %cst_83 = arith.constant dense<0.000000e+00> : vector<1x384xf32>
    %434 = tpu.matmul %433, %262, %cst_83 {dimension_numbers = #tpu.dot_dimension_numbers<[1], [0], [0], [1], [0, 0, 1, 1], [], []>} : vector<1x32xf32>, vector<32x384xf32>, vector<1x384xf32> -> vector<1x384xf32>
    %435 = vector.extract_strided_slice %432 {offsets = [0, 0], sizes = [1, 256], strides = [1, 1]} : vector<1x384xf32> to vector<1x256xf32>
    %436 = vector.extract_strided_slice %434 {offsets = [0, 0], sizes = [1, 256], strides = [1, 1]} : vector<1x384xf32> to vector<1x256xf32>
    %437 = arith.addf %435, %436 : vector<1x256xf32>
    %438 = arith.negf %437 : vector<1x256xf32>
    %439 = math.exp %438 : vector<1x256xf32>
    %cst_84 = arith.constant 1.000000e+00 : f32
    %440 = vector.broadcast %cst_84 : f32 to vector<1x256xf32>
    %441 = arith.addf %440, %439 : vector<1x256xf32>
    %442 = arith.divf %440, %441 : vector<1x256xf32>
    %443 = vector.extract_strided_slice %442 {offsets = [0, 0], sizes = [1, 128], strides = [1, 1]} : vector<1x256xf32> to vector<1x128xf32>
    %444 = vector.extract_strided_slice %442 {offsets = [0, 128], sizes = [1, 128], strides = [1, 1]} : vector<1x256xf32> to vector<1x128xf32>
    %445 = vector.extract_strided_slice %432 {offsets = [0, 256], sizes = [1, 128], strides = [1, 1]} : vector<1x384xf32> to vector<1x128xf32>
    %446 = vector.extract_strided_slice %434 {offsets = [0, 256], sizes = [1, 128], strides = [1, 1]} : vector<1x384xf32> to vector<1x128xf32>
    %447 = arith.addf %446, %263 : vector<1x128xf32>
    %448 = arith.mulf %443, %447 : vector<1x128xf32>
    %449 = arith.addf %445, %448 : vector<1x128xf32>
    %450 = math.tanh %449 : vector<1x128xf32>
    %cst_85 = arith.constant 1.000000e+00 : f32
    %451 = vector.broadcast %cst_85 : f32 to vector<1x128xf32>
    %452 = arith.subf %451, %444 : vector<1x128xf32>
    %453 = arith.mulf %452, %450 : vector<1x128xf32>
    %454 = arith.mulf %444, %428 : vector<1x128xf32>
    %455 = arith.addf %453, %454 : vector<1x128xf32>
    %456 = vector.shape_cast %455 : vector<1x128xf32> to vector<1x128xf32>
    %457 = vector.broadcast %456 : vector<1x128xf32> to vector<8x128xf32>
    %458 = arith.select %17, %457, %431 : vector<8x128xi1>, vector<8x128xf32>
    %459 = vector.extract_strided_slice %268 {offsets = [7, 0], sizes = [1, 384], strides = [1, 1]} : vector<8x384xf32> to vector<1x384xf32>
    %460 = vector.extract_strided_slice %455 {offsets = [0, 0], sizes = [1, 32], strides = [1, 1]} : vector<1x128xf32> to vector<1x32xf32>
    %cst_86 = arith.constant dense<0.000000e+00> : vector<1x384xf32>
    %461 = tpu.matmul %460, %262, %cst_86 {dimension_numbers = #tpu.dot_dimension_numbers<[1], [0], [0], [1], [0, 0, 1, 1], [], []>} : vector<1x32xf32>, vector<32x384xf32>, vector<1x384xf32> -> vector<1x384xf32>
    %462 = vector.extract_strided_slice %459 {offsets = [0, 0], sizes = [1, 256], strides = [1, 1]} : vector<1x384xf32> to vector<1x256xf32>
    %463 = vector.extract_strided_slice %461 {offsets = [0, 0], sizes = [1, 256], strides = [1, 1]} : vector<1x384xf32> to vector<1x256xf32>
    %464 = arith.addf %462, %463 : vector<1x256xf32>
    %465 = arith.negf %464 : vector<1x256xf32>
    %466 = math.exp %465 : vector<1x256xf32>
    %cst_87 = arith.constant 1.000000e+00 : f32
    %467 = vector.broadcast %cst_87 : f32 to vector<1x256xf32>
    %468 = arith.addf %467, %466 : vector<1x256xf32>
    %469 = arith.divf %467, %468 : vector<1x256xf32>
    %470 = vector.extract_strided_slice %469 {offsets = [0, 0], sizes = [1, 128], strides = [1, 1]} : vector<1x256xf32> to vector<1x128xf32>
    %471 = vector.extract_strided_slice %469 {offsets = [0, 128], sizes = [1, 128], strides = [1, 1]} : vector<1x256xf32> to vector<1x128xf32>
    %472 = vector.extract_strided_slice %459 {offsets = [0, 256], sizes = [1, 128], strides = [1, 1]} : vector<1x384xf32> to vector<1x128xf32>
    %473 = vector.extract_strided_slice %461 {offsets = [0, 256], sizes = [1, 128], strides = [1, 1]} : vector<1x384xf32> to vector<1x128xf32>
    %474 = arith.addf %473, %263 : vector<1x128xf32>
    %475 = arith.mulf %470, %474 : vector<1x128xf32>
    %476 = arith.addf %472, %475 : vector<1x128xf32>
    %477 = math.tanh %476 : vector<1x128xf32>
    %cst_88 = arith.constant 1.000000e+00 : f32
    %478 = vector.broadcast %cst_88 : f32 to vector<1x128xf32>
    %479 = arith.subf %478, %471 : vector<1x128xf32>
    %480 = arith.mulf %479, %477 : vector<1x128xf32>
    %481 = arith.mulf %471, %455 : vector<1x128xf32>
    %482 = arith.addf %480, %481 : vector<1x128xf32>
    %483 = vector.shape_cast %482 : vector<1x128xf32> to vector<1x128xf32>
    %484 = vector.broadcast %483 : vector<1x128xf32> to vector<8x128xf32>
    %485 = arith.select %19, %484, %458 : vector<8x128xi1>, vector<8x128xf32>
    %486 = arith.index_cast %266 : i32 to index
    %c0_89 = arith.constant 0 : index
    %487 = vector.load %arg18[%486, %c0_89] : memref<8x128xf32, #tpu.memory_space<vmem>>, vector<8x128xf32>
    tpu.vector_store %arg18[%486, %c0_89], %485 {strides = array<i32>} : memref<8x128xf32, #tpu.memory_space<vmem>>, vector<8x128xf32>,
    %c1_i32_90 = arith.constant 1 : i32
    %c0_91 = arith.constant 0 : index
    %c0_92 = arith.constant 0 : index
    %488 = vector.load %arg20[%c0_91, %c0_92] : memref<1x128xf32, #tpu.memory_space<vmem>>, vector<1x128xf32>
    tpu.vector_store %arg20[%c0_91, %c0_92], %482 {strides = array<i32>} : memref<1x128xf32, #tpu.memory_space<vmem>>, vector<1x128xf32>,
    %c0_93 = arith.constant 0 : index
    %c0_94 = arith.constant 0 : index
    %489 = vector.load %arg18[%c0_93, %c0_94] : memref<8x128xf32, #tpu.memory_space<vmem>>, vector<8x128xf32>
    %490 = vector.extract_strided_slice %489 {offsets = [0, 0], sizes = [8, 32], strides = [1, 1]} : vector<8x128xf32> to vector<8x32xf32>
    %c0_95 = arith.constant 0 : index
    %c0_96 = arith.constant 0 : index
    %491 = vector.load %arg10[%c0_95, %c0_96] : memref<32x384xf32, #tpu.memory_space<vmem>>, vector<32x384xf32>
    %cst_97 = arith.constant dense<0.000000e+00> : vector<8x384xf32>
    %492 = tpu.matmul %490, %491, %cst_97 {dimension_numbers = #tpu.dot_dimension_numbers<[1], [0], [0], [1], [0, 0, 1, 1], [], []>} : vector<8x32xf32>, vector<32x384xf32>, vector<8x384xf32> -> vector<8x384xf32>
    %c0_98 = arith.constant 0 : index
    %c0_99 = arith.constant 0 : index
    %493 = vector.load %arg12[%c0_98, %c0_99] : memref<1x384xf32, #tpu.memory_space<vmem>>, vector<1x384xf32>
    %494 = vector.broadcast %493 : vector<1x384xf32> to vector<8x384xf32>
    %495 = arith.addf %492, %494 : vector<8x384xf32>
    %c0_100 = arith.constant 0 : index
    %c0_101 = arith.constant 0 : index
    %496 = vector.load %arg17[%c0_100, %c0_101] : memref<8x384xf32, #tpu.memory_space<vmem>>, vector<8x384xf32>
    tpu.vector_store %arg17[%c0_100, %c0_101], %495 {strides = array<i32>} : memref<8x384xf32, #tpu.memory_space<vmem>>, vector<8x384xf32>,
    %c0_102 = arith.constant 0 : index
    %c0_103 = arith.constant 0 : index
    %497 = vector.load %arg11[%c0_102, %c0_103] : memref<32x384xf32, #tpu.memory_space<vmem>>, vector<32x384xf32>
    %c0_104 = arith.constant 0 : index
    %c0_105 = arith.constant 0 : index
    %498 = vector.load %arg13[%c0_104, %c0_105] : memref<1x128xf32, #tpu.memory_space<vmem>>, vector<1x128xf32>
    %c0_106 = arith.constant 0 : index
    %c0_107 = arith.constant 0 : index
    %499 = vector.load %arg21[%c0_106, %c0_107] : memref<1x128xf32, #tpu.memory_space<vmem>>, vector<1x128xf32>
    %c0_i32_108 = arith.constant 0 : i32
    %c8_i32_109 = arith.constant 8 : i32
    %500 = arith.muli %c0_i32_108, %c8_i32_109 : i32
    %501 = tpu.assume_multiple %500, 8 : i32
    %502 = arith.index_cast %501 : i32 to index
    %c0_110 = arith.constant 0 : index
    %503 = vector.load %arg17[%502, %c0_110] : memref<8x384xf32, #tpu.memory_space<vmem>>, vector<8x384xf32>
    %cst_111 = arith.constant 0.000000e+00 : f32
    %504 = vector.broadcast %cst_111 : f32 to vector<8x128xf32>
    %505 = vector.extract_strided_slice %503 {offsets = [0, 0], sizes = [1, 384], strides = [1, 1]} : vector<8x384xf32> to vector<1x384xf32>
    %506 = vector.extract_strided_slice %499 {offsets = [0, 0], sizes = [1, 32], strides = [1, 1]} : vector<1x128xf32> to vector<1x32xf32>
    %cst_112 = arith.constant dense<0.000000e+00> : vector<1x384xf32>
    %507 = tpu.matmul %506, %497, %cst_112 {dimension_numbers = #tpu.dot_dimension_numbers<[1], [0], [0], [1], [0, 0, 1, 1], [], []>} : vector<1x32xf32>, vector<32x384xf32>, vector<1x384xf32> -> vector<1x384xf32>
    %508 = vector.extract_strided_slice %505 {offsets = [0, 0], sizes = [1, 256], strides = [1, 1]} : vector<1x384xf32> to vector<1x256xf32>
    %509 = vector.extract_strided_slice %507 {offsets = [0, 0], sizes = [1, 256], strides = [1, 1]} : vector<1x384xf32> to vector<1x256xf32>
    %510 = arith.addf %508, %509 : vector<1x256xf32>
    %511 = arith.negf %510 : vector<1x256xf32>
    %512 = math.exp %511 : vector<1x256xf32>
    %cst_113 = arith.constant 1.000000e+00 : f32
    %513 = vector.broadcast %cst_113 : f32 to vector<1x256xf32>
    %514 = arith.addf %513, %512 : vector<1x256xf32>
    %515 = arith.divf %513, %514 : vector<1x256xf32>
    %516 = vector.extract_strided_slice %515 {offsets = [0, 0], sizes = [1, 128], strides = [1, 1]} : vector<1x256xf32> to vector<1x128xf32>
    %517 = vector.extract_strided_slice %515 {offsets = [0, 128], sizes = [1, 128], strides = [1, 1]} : vector<1x256xf32> to vector<1x128xf32>
    %518 = vector.extract_strided_slice %505 {offsets = [0, 256], sizes = [1, 128], strides = [1, 1]} : vector<1x384xf32> to vector<1x128xf32>
    %519 = vector.extract_strided_slice %507 {offsets = [0, 256], sizes = [1, 128], strides = [1, 1]} : vector<1x384xf32> to vector<1x128xf32>
    %520 = arith.addf %519, %498 : vector<1x128xf32>
    %521 = arith.mulf %516, %520 : vector<1x128xf32>
    %522 = arith.addf %518, %521 : vector<1x128xf32>
    %523 = math.tanh %522 : vector<1x128xf32>
    %cst_114 = arith.constant 1.000000e+00 : f32
    %524 = vector.broadcast %cst_114 : f32 to vector<1x128xf32>
    %525 = arith.subf %524, %517 : vector<1x128xf32>
    %526 = arith.mulf %525, %523 : vector<1x128xf32>
    %527 = arith.mulf %517, %499 : vector<1x128xf32>
    %528 = arith.addf %526, %527 : vector<1x128xf32>
    %529 = vector.shape_cast %528 : vector<1x128xf32> to vector<1x128xf32>
    %530 = vector.broadcast %529 : vector<1x128xf32> to vector<8x128xf32>
    %531 = arith.select %5, %530, %504 : vector<8x128xi1>, vector<8x128xf32>
    %532 = vector.extract_strided_slice %503 {offsets = [1, 0], sizes = [1, 384], strides = [1, 1]} : vector<8x384xf32> to vector<1x384xf32>
    %533 = vector.extract_strided_slice %528 {offsets = [0, 0], sizes = [1, 32], strides = [1, 1]} : vector<1x128xf32> to vector<1x32xf32>
    %cst_115 = arith.constant dense<0.000000e+00> : vector<1x384xf32>
    %534 = tpu.matmul %533, %497, %cst_115 {dimension_numbers = #tpu.dot_dimension_numbers<[1], [0], [0], [1], [0, 0, 1, 1], [], []>} : vector<1x32xf32>, vector<32x384xf32>, vector<1x384xf32> -> vector<1x384xf32>
    %535 = vector.extract_strided_slice %532 {offsets = [0, 0], sizes = [1, 256], strides = [1, 1]} : vector<1x384xf32> to vector<1x256xf32>
    %536 = vector.extract_strided_slice %534 {offsets = [0, 0], sizes = [1, 256], strides = [1, 1]} : vector<1x384xf32> to vector<1x256xf32>
    %537 = arith.addf %535, %536 : vector<1x256xf32>
    %538 = arith.negf %537 : vector<1x256xf32>
    %539 = math.exp %538 : vector<1x256xf32>
    %cst_116 = arith.constant 1.000000e+00 : f32
    %540 = vector.broadcast %cst_116 : f32 to vector<1x256xf32>
    %541 = arith.addf %540, %539 : vector<1x256xf32>
    %542 = arith.divf %540, %541 : vector<1x256xf32>
    %543 = vector.extract_strided_slice %542 {offsets = [0, 0], sizes = [1, 128], strides = [1, 1]} : vector<1x256xf32> to vector<1x128xf32>
    %544 = vector.extract_strided_slice %542 {offsets = [0, 128], sizes = [1, 128], strides = [1, 1]} : vector<1x256xf32> to vector<1x128xf32>
    %545 = vector.extract_strided_slice %532 {offsets = [0, 256], sizes = [1, 128], strides = [1, 1]} : vector<1x384xf32> to vector<1x128xf32>
    %546 = vector.extract_strided_slice %534 {offsets = [0, 256], sizes = [1, 128], strides = [1, 1]} : vector<1x384xf32> to vector<1x128xf32>
    %547 = arith.addf %546, %498 : vector<1x128xf32>
    %548 = arith.mulf %543, %547 : vector<1x128xf32>
    %549 = arith.addf %545, %548 : vector<1x128xf32>
    %550 = math.tanh %549 : vector<1x128xf32>
    %cst_117 = arith.constant 1.000000e+00 : f32
    %551 = vector.broadcast %cst_117 : f32 to vector<1x128xf32>
    %552 = arith.subf %551, %544 : vector<1x128xf32>
    %553 = arith.mulf %552, %550 : vector<1x128xf32>
    %554 = arith.mulf %544, %528 : vector<1x128xf32>
    %555 = arith.addf %553, %554 : vector<1x128xf32>
    %556 = vector.shape_cast %555 : vector<1x128xf32> to vector<1x128xf32>
    %557 = vector.broadcast %556 : vector<1x128xf32> to vector<8x128xf32>
    %558 = arith.select %7, %557, %531 : vector<8x128xi1>, vector<8x128xf32>
    %559 = vector.extract_strided_slice %503 {offsets = [2, 0], sizes = [1, 384], strides = [1, 1]} : vector<8x384xf32> to vector<1x384xf32>
    %560 = vector.extract_strided_slice %555 {offsets = [0, 0], sizes = [1, 32], strides = [1, 1]} : vector<1x128xf32> to vector<1x32xf32>
    %cst_118 = arith.constant dense<0.000000e+00> : vector<1x384xf32>
    %561 = tpu.matmul %560, %497, %cst_118 {dimension_numbers = #tpu.dot_dimension_numbers<[1], [0], [0], [1], [0, 0, 1, 1], [], []>} : vector<1x32xf32>, vector<32x384xf32>, vector<1x384xf32> -> vector<1x384xf32>
    %562 = vector.extract_strided_slice %559 {offsets = [0, 0], sizes = [1, 256], strides = [1, 1]} : vector<1x384xf32> to vector<1x256xf32>
    %563 = vector.extract_strided_slice %561 {offsets = [0, 0], sizes = [1, 256], strides = [1, 1]} : vector<1x384xf32> to vector<1x256xf32>
    %564 = arith.addf %562, %563 : vector<1x256xf32>
    %565 = arith.negf %564 : vector<1x256xf32>
    %566 = math.exp %565 : vector<1x256xf32>
    %cst_119 = arith.constant 1.000000e+00 : f32
    %567 = vector.broadcast %cst_119 : f32 to vector<1x256xf32>
    %568 = arith.addf %567, %566 : vector<1x256xf32>
    %569 = arith.divf %567, %568 : vector<1x256xf32>
    %570 = vector.extract_strided_slice %569 {offsets = [0, 0], sizes = [1, 128], strides = [1, 1]} : vector<1x256xf32> to vector<1x128xf32>
    %571 = vector.extract_strided_slice %569 {offsets = [0, 128], sizes = [1, 128], strides = [1, 1]} : vector<1x256xf32> to vector<1x128xf32>
    %572 = vector.extract_strided_slice %559 {offsets = [0, 256], sizes = [1, 128], strides = [1, 1]} : vector<1x384xf32> to vector<1x128xf32>
    %573 = vector.extract_strided_slice %561 {offsets = [0, 256], sizes = [1, 128], strides = [1, 1]} : vector<1x384xf32> to vector<1x128xf32>
    %574 = arith.addf %573, %498 : vector<1x128xf32>
    %575 = arith.mulf %570, %574 : vector<1x128xf32>
    %576 = arith.addf %572, %575 : vector<1x128xf32>
    %577 = math.tanh %576 : vector<1x128xf32>
    %cst_120 = arith.constant 1.000000e+00 : f32
    %578 = vector.broadcast %cst_120 : f32 to vector<1x128xf32>
    %579 = arith.subf %578, %571 : vector<1x128xf32>
    %580 = arith.mulf %579, %577 : vector<1x128xf32>
    %581 = arith.mulf %571, %555 : vector<1x128xf32>
    %582 = arith.addf %580, %581 : vector<1x128xf32>
    %583 = vector.shape_cast %582 : vector<1x128xf32> to vector<1x128xf32>
    %584 = vector.broadcast %583 : vector<1x128xf32> to vector<8x128xf32>
    %585 = arith.select %9, %584, %558 : vector<8x128xi1>, vector<8x128xf32>
    %586 = vector.extract_strided_slice %503 {offsets = [3, 0], sizes = [1, 384], strides = [1, 1]} : vector<8x384xf32> to vector<1x384xf32>
    %587 = vector.extract_strided_slice %582 {offsets = [0, 0], sizes = [1, 32], strides = [1, 1]} : vector<1x128xf32> to vector<1x32xf32>
    %cst_121 = arith.constant dense<0.000000e+00> : vector<1x384xf32>
    %588 = tpu.matmul %587, %497, %cst_121 {dimension_numbers = #tpu.dot_dimension_numbers<[1], [0], [0], [1], [0, 0, 1, 1], [], []>} : vector<1x32xf32>, vector<32x384xf32>, vector<1x384xf32> -> vector<1x384xf32>
    %589 = vector.extract_strided_slice %586 {offsets = [0, 0], sizes = [1, 256], strides = [1, 1]} : vector<1x384xf32> to vector<1x256xf32>
    %590 = vector.extract_strided_slice %588 {offsets = [0, 0], sizes = [1, 256], strides = [1, 1]} : vector<1x384xf32> to vector<1x256xf32>
    %591 = arith.addf %589, %590 : vector<1x256xf32>
    %592 = arith.negf %591 : vector<1x256xf32>
    %593 = math.exp %592 : vector<1x256xf32>
    %cst_122 = arith.constant 1.000000e+00 : f32
    %594 = vector.broadcast %cst_122 : f32 to vector<1x256xf32>
    %595 = arith.addf %594, %593 : vector<1x256xf32>
    %596 = arith.divf %594, %595 : vector<1x256xf32>
    %597 = vector.extract_strided_slice %596 {offsets = [0, 0], sizes = [1, 128], strides = [1, 1]} : vector<1x256xf32> to vector<1x128xf32>
    %598 = vector.extract_strided_slice %596 {offsets = [0, 128], sizes = [1, 128], strides = [1, 1]} : vector<1x256xf32> to vector<1x128xf32>
    %599 = vector.extract_strided_slice %586 {offsets = [0, 256], sizes = [1, 128], strides = [1, 1]} : vector<1x384xf32> to vector<1x128xf32>
    %600 = vector.extract_strided_slice %588 {offsets = [0, 256], sizes = [1, 128], strides = [1, 1]} : vector<1x384xf32> to vector<1x128xf32>
    %601 = arith.addf %600, %498 : vector<1x128xf32>
    %602 = arith.mulf %597, %601 : vector<1x128xf32>
    %603 = arith.addf %599, %602 : vector<1x128xf32>
    %604 = math.tanh %603 : vector<1x128xf32>
    %cst_123 = arith.constant 1.000000e+00 : f32
    %605 = vector.broadcast %cst_123 : f32 to vector<1x128xf32>
    %606 = arith.subf %605, %598 : vector<1x128xf32>
    %607 = arith.mulf %606, %604 : vector<1x128xf32>
    %608 = arith.mulf %598, %582 : vector<1x128xf32>
    %609 = arith.addf %607, %608 : vector<1x128xf32>
    %610 = vector.shape_cast %609 : vector<1x128xf32> to vector<1x128xf32>
    %611 = vector.broadcast %610 : vector<1x128xf32> to vector<8x128xf32>
    %612 = arith.select %11, %611, %585 : vector<8x128xi1>, vector<8x128xf32>
    %613 = vector.extract_strided_slice %503 {offsets = [4, 0], sizes = [1, 384], strides = [1, 1]} : vector<8x384xf32> to vector<1x384xf32>
    %614 = vector.extract_strided_slice %609 {offsets = [0, 0], sizes = [1, 32], strides = [1, 1]} : vector<1x128xf32> to vector<1x32xf32>
    %cst_124 = arith.constant dense<0.000000e+00> : vector<1x384xf32>
    %615 = tpu.matmul %614, %497, %cst_124 {dimension_numbers = #tpu.dot_dimension_numbers<[1], [0], [0], [1], [0, 0, 1, 1], [], []>} : vector<1x32xf32>, vector<32x384xf32>, vector<1x384xf32> -> vector<1x384xf32>
    %616 = vector.extract_strided_slice %613 {offsets = [0, 0], sizes = [1, 256], strides = [1, 1]} : vector<1x384xf32> to vector<1x256xf32>
    %617 = vector.extract_strided_slice %615 {offsets = [0, 0], sizes = [1, 256], strides = [1, 1]} : vector<1x384xf32> to vector<1x256xf32>
    %618 = arith.addf %616, %617 : vector<1x256xf32>
    %619 = arith.negf %618 : vector<1x256xf32>
    %620 = math.exp %619 : vector<1x256xf32>
    %cst_125 = arith.constant 1.000000e+00 : f32
    %621 = vector.broadcast %cst_125 : f32 to vector<1x256xf32>
    %622 = arith.addf %621, %620 : vector<1x256xf32>
    %623 = arith.divf %621, %622 : vector<1x256xf32>
    %624 = vector.extract_strided_slice %623 {offsets = [0, 0], sizes = [1, 128], strides = [1, 1]} : vector<1x256xf32> to vector<1x128xf32>
    %625 = vector.extract_strided_slice %623 {offsets = [0, 128], sizes = [1, 128], strides = [1, 1]} : vector<1x256xf32> to vector<1x128xf32>
    %626 = vector.extract_strided_slice %613 {offsets = [0, 256], sizes = [1, 128], strides = [1, 1]} : vector<1x384xf32> to vector<1x128xf32>
    %627 = vector.extract_strided_slice %615 {offsets = [0, 256], sizes = [1, 128], strides = [1, 1]} : vector<1x384xf32> to vector<1x128xf32>
    %628 = arith.addf %627, %498 : vector<1x128xf32>
    %629 = arith.mulf %624, %628 : vector<1x128xf32>
    %630 = arith.addf %626, %629 : vector<1x128xf32>
    %631 = math.tanh %630 : vector<1x128xf32>
    %cst_126 = arith.constant 1.000000e+00 : f32
    %632 = vector.broadcast %cst_126 : f32 to vector<1x128xf32>
    %633 = arith.subf %632, %625 : vector<1x128xf32>
    %634 = arith.mulf %633, %631 : vector<1x128xf32>
    %635 = arith.mulf %625, %609 : vector<1x128xf32>
    %636 = arith.addf %634, %635 : vector<1x128xf32>
    %637 = vector.shape_cast %636 : vector<1x128xf32> to vector<1x128xf32>
    %638 = vector.broadcast %637 : vector<1x128xf32> to vector<8x128xf32>
    %639 = arith.select %13, %638, %612 : vector<8x128xi1>, vector<8x128xf32>
    %640 = vector.extract_strided_slice %503 {offsets = [5, 0], sizes = [1, 384], strides = [1, 1]} : vector<8x384xf32> to vector<1x384xf32>
    %641 = vector.extract_strided_slice %636 {offsets = [0, 0], sizes = [1, 32], strides = [1, 1]} : vector<1x128xf32> to vector<1x32xf32>
    %cst_127 = arith.constant dense<0.000000e+00> : vector<1x384xf32>
    %642 = tpu.matmul %641, %497, %cst_127 {dimension_numbers = #tpu.dot_dimension_numbers<[1], [0], [0], [1], [0, 0, 1, 1], [], []>} : vector<1x32xf32>, vector<32x384xf32>, vector<1x384xf32> -> vector<1x384xf32>
    %643 = vector.extract_strided_slice %640 {offsets = [0, 0], sizes = [1, 256], strides = [1, 1]} : vector<1x384xf32> to vector<1x256xf32>
    %644 = vector.extract_strided_slice %642 {offsets = [0, 0], sizes = [1, 256], strides = [1, 1]} : vector<1x384xf32> to vector<1x256xf32>
    %645 = arith.addf %643, %644 : vector<1x256xf32>
    %646 = arith.negf %645 : vector<1x256xf32>
    %647 = math.exp %646 : vector<1x256xf32>
    %cst_128 = arith.constant 1.000000e+00 : f32
    %648 = vector.broadcast %cst_128 : f32 to vector<1x256xf32>
    %649 = arith.addf %648, %647 : vector<1x256xf32>
    %650 = arith.divf %648, %649 : vector<1x256xf32>
    %651 = vector.extract_strided_slice %650 {offsets = [0, 0], sizes = [1, 128], strides = [1, 1]} : vector<1x256xf32> to vector<1x128xf32>
    %652 = vector.extract_strided_slice %650 {offsets = [0, 128], sizes = [1, 128], strides = [1, 1]} : vector<1x256xf32> to vector<1x128xf32>
    %653 = vector.extract_strided_slice %640 {offsets = [0, 256], sizes = [1, 128], strides = [1, 1]} : vector<1x384xf32> to vector<1x128xf32>
    %654 = vector.extract_strided_slice %642 {offsets = [0, 256], sizes = [1, 128], strides = [1, 1]} : vector<1x384xf32> to vector<1x128xf32>
    %655 = arith.addf %654, %498 : vector<1x128xf32>
    %656 = arith.mulf %651, %655 : vector<1x128xf32>
    %657 = arith.addf %653, %656 : vector<1x128xf32>
    %658 = math.tanh %657 : vector<1x128xf32>
    %cst_129 = arith.constant 1.000000e+00 : f32
    %659 = vector.broadcast %cst_129 : f32 to vector<1x128xf32>
    %660 = arith.subf %659, %652 : vector<1x128xf32>
    %661 = arith.mulf %660, %658 : vector<1x128xf32>
    %662 = arith.mulf %652, %636 : vector<1x128xf32>
    %663 = arith.addf %661, %662 : vector<1x128xf32>
    %664 = vector.shape_cast %663 : vector<1x128xf32> to vector<1x128xf32>
    %665 = vector.broadcast %664 : vector<1x128xf32> to vector<8x128xf32>
    %666 = arith.select %15, %665, %639 : vector<8x128xi1>, vector<8x128xf32>
    %667 = vector.extract_strided_slice %503 {offsets = [6, 0], sizes = [1, 384], strides = [1, 1]} : vector<8x384xf32> to vector<1x384xf32>
    %668 = vector.extract_strided_slice %663 {offsets = [0, 0], sizes = [1, 32], strides = [1, 1]} : vector<1x128xf32> to vector<1x32xf32>
    %cst_130 = arith.constant dense<0.000000e+00> : vector<1x384xf32>
    %669 = tpu.matmul %668, %497, %cst_130 {dimension_numbers = #tpu.dot_dimension_numbers<[1], [0], [0], [1], [0, 0, 1, 1], [], []>} : vector<1x32xf32>, vector<32x384xf32>, vector<1x384xf32> -> vector<1x384xf32>
    %670 = vector.extract_strided_slice %667 {offsets = [0, 0], sizes = [1, 256], strides = [1, 1]} : vector<1x384xf32> to vector<1x256xf32>
    %671 = vector.extract_strided_slice %669 {offsets = [0, 0], sizes = [1, 256], strides = [1, 1]} : vector<1x384xf32> to vector<1x256xf32>
    %672 = arith.addf %670, %671 : vector<1x256xf32>
    %673 = arith.negf %672 : vector<1x256xf32>
    %674 = math.exp %673 : vector<1x256xf32>
    %cst_131 = arith.constant 1.000000e+00 : f32
    %675 = vector.broadcast %cst_131 : f32 to vector<1x256xf32>
    %676 = arith.addf %675, %674 : vector<1x256xf32>
    %677 = arith.divf %675, %676 : vector<1x256xf32>
    %678 = vector.extract_strided_slice %677 {offsets = [0, 0], sizes = [1, 128], strides = [1, 1]} : vector<1x256xf32> to vector<1x128xf32>
    %679 = vector.extract_strided_slice %677 {offsets = [0, 128], sizes = [1, 128], strides = [1, 1]} : vector<1x256xf32> to vector<1x128xf32>
    %680 = vector.extract_strided_slice %667 {offsets = [0, 256], sizes = [1, 128], strides = [1, 1]} : vector<1x384xf32> to vector<1x128xf32>
    %681 = vector.extract_strided_slice %669 {offsets = [0, 256], sizes = [1, 128], strides = [1, 1]} : vector<1x384xf32> to vector<1x128xf32>
    %682 = arith.addf %681, %498 : vector<1x128xf32>
    %683 = arith.mulf %678, %682 : vector<1x128xf32>
    %684 = arith.addf %680, %683 : vector<1x128xf32>
    %685 = math.tanh %684 : vector<1x128xf32>
    %cst_132 = arith.constant 1.000000e+00 : f32
    %686 = vector.broadcast %cst_132 : f32 to vector<1x128xf32>
    %687 = arith.subf %686, %679 : vector<1x128xf32>
    %688 = arith.mulf %687, %685 : vector<1x128xf32>
    %689 = arith.mulf %679, %663 : vector<1x128xf32>
    %690 = arith.addf %688, %689 : vector<1x128xf32>
    %691 = vector.shape_cast %690 : vector<1x128xf32> to vector<1x128xf32>
    %692 = vector.broadcast %691 : vector<1x128xf32> to vector<8x128xf32>
    %693 = arith.select %17, %692, %666 : vector<8x128xi1>, vector<8x128xf32>
    %694 = vector.extract_strided_slice %503 {offsets = [7, 0], sizes = [1, 384], strides = [1, 1]} : vector<8x384xf32> to vector<1x384xf32>
    %695 = vector.extract_strided_slice %690 {offsets = [0, 0], sizes = [1, 32], strides = [1, 1]} : vector<1x128xf32> to vector<1x32xf32>
    %cst_133 = arith.constant dense<0.000000e+00> : vector<1x384xf32>
    %696 = tpu.matmul %695, %497, %cst_133 {dimension_numbers = #tpu.dot_dimension_numbers<[1], [0], [0], [1], [0, 0, 1, 1], [], []>} : vector<1x32xf32>, vector<32x384xf32>, vector<1x384xf32> -> vector<1x384xf32>
    %697 = vector.extract_strided_slice %694 {offsets = [0, 0], sizes = [1, 256], strides = [1, 1]} : vector<1x384xf32> to vector<1x256xf32>
    %698 = vector.extract_strided_slice %696 {offsets = [0, 0], sizes = [1, 256], strides = [1, 1]} : vector<1x384xf32> to vector<1x256xf32>
    %699 = arith.addf %697, %698 : vector<1x256xf32>
    %700 = arith.negf %699 : vector<1x256xf32>
    %701 = math.exp %700 : vector<1x256xf32>
    %cst_134 = arith.constant 1.000000e+00 : f32
    %702 = vector.broadcast %cst_134 : f32 to vector<1x256xf32>
    %703 = arith.addf %702, %701 : vector<1x256xf32>
    %704 = arith.divf %702, %703 : vector<1x256xf32>
    %705 = vector.extract_strided_slice %704 {offsets = [0, 0], sizes = [1, 128], strides = [1, 1]} : vector<1x256xf32> to vector<1x128xf32>
    %706 = vector.extract_strided_slice %704 {offsets = [0, 128], sizes = [1, 128], strides = [1, 1]} : vector<1x256xf32> to vector<1x128xf32>
    %707 = vector.extract_strided_slice %694 {offsets = [0, 256], sizes = [1, 128], strides = [1, 1]} : vector<1x384xf32> to vector<1x128xf32>
    %708 = vector.extract_strided_slice %696 {offsets = [0, 256], sizes = [1, 128], strides = [1, 1]} : vector<1x384xf32> to vector<1x128xf32>
    %709 = arith.addf %708, %498 : vector<1x128xf32>
    %710 = arith.mulf %705, %709 : vector<1x128xf32>
    %711 = arith.addf %707, %710 : vector<1x128xf32>
    %712 = math.tanh %711 : vector<1x128xf32>
    %cst_135 = arith.constant 1.000000e+00 : f32
    %713 = vector.broadcast %cst_135 : f32 to vector<1x128xf32>
    %714 = arith.subf %713, %706 : vector<1x128xf32>
    %715 = arith.mulf %714, %712 : vector<1x128xf32>
    %716 = arith.mulf %706, %690 : vector<1x128xf32>
    %717 = arith.addf %715, %716 : vector<1x128xf32>
    %718 = vector.shape_cast %717 : vector<1x128xf32> to vector<1x128xf32>
    %719 = vector.broadcast %718 : vector<1x128xf32> to vector<8x128xf32>
    %720 = arith.select %19, %719, %693 : vector<8x128xi1>, vector<8x128xf32>
    %721 = arith.index_cast %501 : i32 to index
    %c0_136 = arith.constant 0 : index
    %722 = vector.load %arg18[%721, %c0_136] : memref<8x128xf32, #tpu.memory_space<vmem>>, vector<8x128xf32>
    tpu.vector_store %arg18[%721, %c0_136], %720 {strides = array<i32>} : memref<8x128xf32, #tpu.memory_space<vmem>>, vector<8x128xf32>,
    %c1_i32_137 = arith.constant 1 : i32
    %c0_138 = arith.constant 0 : index
    %c0_139 = arith.constant 0 : index
    %723 = vector.load %arg21[%c0_138, %c0_139] : memref<1x128xf32, #tpu.memory_space<vmem>>, vector<1x128xf32>
    tpu.vector_store %arg21[%c0_138, %c0_139], %717 {strides = array<i32>} : memref<1x128xf32, #tpu.memory_space<vmem>>, vector<1x128xf32>,
    %c0_140 = arith.constant 0 : index
    %c0_141 = arith.constant 0 : index
    %724 = vector.load %arg18[%c0_140, %c0_141] : memref<8x128xf32, #tpu.memory_space<vmem>>, vector<8x128xf32>
    %725 = vector.extract_strided_slice %724 {offsets = [0, 0], sizes = [8, 32], strides = [1, 1]} : vector<8x128xf32> to vector<8x32xf32>
    %c0_142 = arith.constant 0 : index
    %c0_143 = arith.constant 0 : index
    %726 = vector.load %arg14[%c0_142, %c0_143] : memref<32x128xf32, #tpu.memory_space<vmem>>, vector<32x128xf32>
    %cst_144 = arith.constant dense<0.000000e+00> : vector<8x128xf32>
    %727 = tpu.matmul %725, %726, %cst_144 {dimension_numbers = #tpu.dot_dimension_numbers<[1], [0], [0], [1], [0, 0, 1, 1], [], []>} : vector<8x32xf32>, vector<32x128xf32>, vector<8x128xf32> -> vector<8x128xf32>
    %c0_145 = arith.constant 0 : index
    %728 = memref.load %arg15[%c0_145] : memref<1xf32, #tpu.memory_space<smem>>
    %729 = vector.broadcast %728 : f32 to vector<8x128xf32>
    %730 = arith.addf %727, %729 : vector<8x128xf32>
    %c0_146 = arith.constant 0 : index
    %c0_147 = arith.constant 0 : index
    %731 = vector.load %arg16[%c0_146, %c0_147] : memref<8x128xf32, #tpu.memory_space<vmem>>, vector<8x128xf32>
    tpu.vector_store %arg16[%c0_146, %c0_147], %730 {strides = array<i32>} : memref<8x128xf32, #tpu.memory_space<vmem>>, vector<8x128xf32>,
    return
  }
  func.func @transform_0(%arg0: i32) -> (i32, i32) {
    %c0_i32 = arith.constant 0 : i32
    %c0_i32_0 = arith.constant 0 : i32
    return %arg0, %c0_i32 : i32, i32
  }
  func.func @transform_1(%arg0: i32) -> (i32, i32) {
    %c0_i32 = arith.constant 0 : i32
    %c0_i32_0 = arith.constant 0 : i32
    %c0_i32_1 = arith.constant 0 : i32
    return %c0_i32, %c0_i32_0 : i32, i32
  }
  func.func @transform_2(%arg0: i32) -> (i32, i32) {
    %c0_i32 = arith.constant 0 : i32
    %c0_i32_0 = arith.constant 0 : i32
    %c0_i32_1 = arith.constant 0 : i32
    return %c0_i32, %c0_i32_0 : i32, i32
  }
  func.func @transform_3(%arg0: i32) -> (i32, i32) {
    %c0_i32 = arith.constant 0 : i32
    %c0_i32_0 = arith.constant 0 : i32
    %c0_i32_1 = arith.constant 0 : i32
    return %c0_i32, %c0_i32_0 : i32, i32
  }
  func.func @transform_4(%arg0: i32) -> (i32, i32) {
    %c0_i32 = arith.constant 0 : i32
    %c0_i32_0 = arith.constant 0 : i32
    %c0_i32_1 = arith.constant 0 : i32
    return %c0_i32, %c0_i32_0 : i32, i32
  }
  func.func @transform_5(%arg0: i32) -> (i32, i32) {
    %c0_i32 = arith.constant 0 : i32
    %c0_i32_0 = arith.constant 0 : i32
    %c0_i32_1 = arith.constant 0 : i32
    return %c0_i32, %c0_i32_0 : i32, i32
  }
  func.func @transform_6(%arg0: i32) -> (i32, i32) {
    %c0_i32 = arith.constant 0 : i32
    %c0_i32_0 = arith.constant 0 : i32
    %c0_i32_1 = arith.constant 0 : i32
    return %c0_i32, %c0_i32_0 : i32, i32
  }
  func.func @transform_7(%arg0: i32) -> (i32, i32) {
    %c0_i32 = arith.constant 0 : i32
    %c0_i32_0 = arith.constant 0 : i32
    %c0_i32_1 = arith.constant 0 : i32
    return %c0_i32, %c0_i32_0 : i32, i32
  }
  func.func @transform_8(%arg0: i32) -> (i32, i32) {
    %c0_i32 = arith.constant 0 : i32
    %c0_i32_0 = arith.constant 0 : i32
    %c0_i32_1 = arith.constant 0 : i32
    return %c0_i32, %c0_i32_0 : i32, i32
  }
  func.func @transform_9(%arg0: i32) -> (i32, i32) {
    %c0_i32 = arith.constant 0 : i32
    %c0_i32_0 = arith.constant 0 : i32
    %c0_i32_1 = arith.constant 0 : i32
    return %c0_i32, %c0_i32_0 : i32, i32
  }
  func.func @transform_10(%arg0: i32) -> (i32, i32) {
    %c0_i32 = arith.constant 0 : i32
    %c0_i32_0 = arith.constant 0 : i32
    %c0_i32_1 = arith.constant 0 : i32
    return %c0_i32, %c0_i32_0 : i32, i32
  }
  func.func @transform_11(%arg0: i32) -> (i32, i32) {
    %c0_i32 = arith.constant 0 : i32
    %c0_i32_0 = arith.constant 0 : i32
    %c0_i32_1 = arith.constant 0 : i32
    return %c0_i32, %c0_i32_0 : i32, i32
  }
  func.func @transform_12(%arg0: i32) -> (i32, i32) {
    %c0_i32 = arith.constant 0 : i32
    %c0_i32_0 = arith.constant 0 : i32
    %c0_i32_1 = arith.constant 0 : i32
    return %c0_i32, %c0_i32_0 : i32, i32
  }
  func.func @transform_13(%arg0: i32) -> (i32, i32) {
    %c0_i32 = arith.constant 0 : i32
    %c0_i32_0 = arith.constant 0 : i32
    %c0_i32_1 = arith.constant 0 : i32
    return %c0_i32, %c0_i32_0 : i32, i32
  }
  func.func @transform_14(%arg0: i32) -> i32 {
    %c0_i32 = arith.constant 0 : i32
    %c0_i32_0 = arith.constant 0 : i32
    return %c0_i32 : i32
  }
  func.func @transform_15(%arg0: i32) -> (i32, i32) {
    %c0_i32 = arith.constant 0 : i32
    %c0_i32_0 = arith.constant 0 : i32
    return %arg0, %c0_i32 : i32, i32
  }
}

</mosaic_0001>

<bundles_post_ra>
// kernel: gru_forward.1
= control target key start
LH: loop header
LB: loop body
LE: loop exit
PB: predicated region body
PF: predicated region fallthrough
CT: control target
= control target key end

     0   :  { %21 = vsyncpa [#allocation9], 0  ;;  %s7406_s0 = inlined_call_operand.vmem [shape: f32[8,16], index: 0, kind: input, shape index: {}]   ;;  %s7407_s1 = inlined_call_operand.hbm [shape: f32[16,384], index: 1, kind: input, shape index: {}]   ;;  %s7408_s2 = inlined_call_operand.hbm [shape: f32[32,384], index: 2, kind: input, shape index: {}]   ;;  %s7409_s3 = inlined_call_operand.vmem [shape: f32[1,384], index: 3, kind: input, shape index: {}]   ;;  %s7410_s4 = inlined_call_operand.vmem [shape: f32[1,128], index: 4, kind: input, shape index: {}]   ;;  %s7411_s5 = inlined_call_operand.hbm [shape: f32[32,384], index: 5, kind: input, shape index: {}]   ;;  %s7412_s6 = inlined_call_operand.hbm [shape: f32[32,384], index: 6, kind: input, shape index: {}]   ;;  %s7413_s7 = inlined_call_operand.vmem [shape: f32[1,384], index: 7, kind: input, shape index: {}]   ;;  %s7414_s8 = inlined_call_operand.vmem [shape: f32[1,128], index: 8, kind: input, shape index: {}]   ;;  %s7415_s9 = inlined_call_operand.hbm [shape: f32[32,384], index: 9, kind: input, shape index: {}]   ;;  %s7416_s10 = inlined_call_operand.hbm [shape: f32[32,384], index: 10, kind: input, shape index: {}]   ;;  %s7417_s11 = inlined_call_operand.vmem [shape: f32[1,384], index: 11, kind: input, shape index: {}]   ;;  %s7418_s12 = inlined_call_operand.vmem [shape: f32[1,128], index: 12, kind: input, shape index: {}]   ;;  %s7419_s13 = inlined_call_operand.hbm [shape: f32[32,128], index: 13, kind: input, shape index: {}]   ;;  %s7420_s14 = inlined_call_operand.<no memory space> [shape: f32[1], index: 14, kind: input, shape index: {}]   ;;  %s7421_s15 = inlined_call_operand.vmem [shape: f32[8,128], index: 15, kind: output, shape index: {}]  }
   0x1   :  { %22 = vsyncpa [#allocation11], 0 }
   0x2   :  { %23 = vsyncpa [#allocation14], 0 }
   0x3   :  { %24 = vsyncpa [#allocation17], 0  ;;  %s6530_s18 = smov [#allocation10]   ;;  %s6531_s20 = smov [#allocation13]  }
   0x4   :  { %s44_s19 = sshll.u32 %s6530_s18, 4  ;;  %s72_s21 = sshll.u32 %s6531_s20, 4  ;;  %s45_s19 = int_to_ptr.vmem [resolvable:$true] %s44_s19  ;;  %s6624_s21 = int_to_ptr.vmem [resolvable:$true] %s72_s21 }
   0x5   :  { %s6368_s24 = scalar_lea.hbm %s7408_s2, 1536 }
   0x6   :  { %p6369_p0 = scmp.ne.s32.totalorder %s7408_s2, %s6368_s24  ;;  %p6372_p1 = scmp.lt.u32.totalorder %s6368_s24, %s7408_s2 }
   0x8   :  { %p6374_p2 = pnand %p6372_p1, %p6369_p0 }
   0xa   :  { %6377 = shalt.err (!%p6374_p2)
}
   0xb   :  { %s6378_s29 = scalar_lea.vmem %s45_s19, 1536  ;;  %p6383_p4 = scmp.lt.s32.totalorder %s45_s19, %s45_s19 }
   0xc   :  { %p6379_p3 = scmp.ne.s32.totalorder %s45_s19, %s6378_s29  ;;  %p6384_p5 = scmp.lt.s32.totalorder %s6378_s29, %s6378_s29 }
   0xe   :  { %p6385_p6 = por %p6384_p5, %p6383_p4 }
  0x10   :  { %p6386_p7 = pnand %p6385_p6, %p6379_p3 }
  0x12   :  { %6389 = shalt.err (!%p6386_p7)
}
  0x13   :  { %s6532_s30 = smov 384   ;;  %s6533_s16 = smov 24  }
  0x14   :  { %50 = dma.hbm_to_vmem [thread:$0]  %s7408_s2, 1536, %s45_s19, [#allocation11], %s6532_s30, %s6532_s30, %s6533_s16  }
  0x15   :  { %s6390_s23 = scalar_lea.hbm %s7412_s6, 1536 }
  0x16   :  { %p6391_p8 = scmp.ne.s32.totalorder %s7412_s6, %s6390_s23  ;;  %p6394_p9 = scmp.lt.u32.totalorder %s6390_s23, %s7412_s6 }
  0x18   :  { %p6396_p10 = pnand %p6394_p9, %p6391_p8 }
  0x1a   :  { %6399 = shalt.err (!%p6396_p10)
}
  0x1b   :  { %s6400_s28 = scalar_lea.vmem %s6624_s21, 1536  ;;  %p6405_p12 = scmp.lt.s32.totalorder %s6624_s21, %s6624_s21 }
  0x1c   :  { %p6401_p11 = scmp.ne.s32.totalorder %s6624_s21, %s6400_s28  ;;  %p6406_p13 = scmp.lt.s32.totalorder %s6400_s28, %s6400_s28 }
  0x1e   :  { %p6407_p0 = por %p6406_p13, %p6405_p12 }
  0x20   :  { %p6408_p1 = pnand %p6407_p0, %p6401_p11 }
  0x22   :  { %6411 = shalt.err (!%p6408_p1)
}
  0x23   :  { %78 = dma.hbm_to_vmem [thread:$0]  %s7412_s6, 1536, %s6624_s21, [#allocation14], %s6532_s30, %s6532_s30, %s6533_s16  }
  0x24   :  { %s6534_s29 = smov [#allocation16]   ;;  %s6535_s18 = smov [#allocation8]  }
  0x25   :  { %s100_s17 = sshll.u32 %s6534_s29, 4  ;;  %s32_s20 = sshll.u32 %s6535_s18, 4  ;;  %s101_s17 = int_to_ptr.vmem [resolvable:$true] %s100_s17  ;;  %s6661_s20 = int_to_ptr.vmem [resolvable:$true] %s32_s20 }
  0x26   :  { %s6412_s24 = scalar_lea.hbm %s7416_s10, 1536 }
  0x27   :  { %p6413_p2 = scmp.ne.s32.totalorder %s7416_s10, %s6412_s24  ;;  %p6416_p3 = scmp.lt.u32.totalorder %s6412_s24, %s7416_s10 }
  0x29   :  { %p6418_p4 = pnand %p6416_p3, %p6413_p2 }
  0x2b   :  { %6421 = shalt.err (!%p6418_p4)
}
  0x2c   :  { %s6422_s6 = scalar_lea.vmem %s101_s17, 1536  ;;  %p6427_p6 = scmp.lt.s32.totalorder %s101_s17, %s101_s17 }
  0x2d   :  { %p6423_p5 = scmp.ne.s32.totalorder %s101_s17, %s6422_s6  ;;  %p6428_p7 = scmp.lt.s32.totalorder %s6422_s6, %s6422_s6 }
  0x2f   :  { %p6429_p8 = por %p6428_p7, %p6427_p6 }
  0x31   :  { %p6430_p9 = pnand %p6429_p8, %p6423_p5 }
  0x33   :  { %6433 = shalt.err (!%p6430_p9)
}
  0x34   :  { %106 = dma.hbm_to_vmem [thread:$0]  %s7416_s10, 1536, %s101_s17, [#allocation17], %s6532_s30, %s6532_s30, %s6533_s16  }
  0x35   :  { %s6434_s18 = scalar_lea.hbm %s7407_s1, 768 }
  0x36   :  { %p6435_p10 = scmp.ne.s32.totalorder %s7407_s1, %s6434_s18  ;;  %p6438_p11 = scmp.lt.u32.totalorder %s6434_s18, %s7407_s1 }
  0x38   :  { %p6440_p12 = pnand %p6438_p11, %p6435_p10 }
  0x3a   :  { %6443 = shalt.err (!%p6440_p12)
}
  0x3b   :  { %s6444_s26 = scalar_lea.vmem %s6661_s20, 768  ;;  %p6449_p0 = scmp.lt.s32.totalorder %s6661_s20, %s6661_s20 }
  0x3c   :  { %p6445_p13 = scmp.ne.s32.totalorder %s6661_s20, %s6444_s26  ;;  %p6450_p1 = scmp.lt.s32.totalorder %s6444_s26, %s6444_s26 }
  0x3e   :  { %p6451_p2 = por %p6450_p1, %p6449_p0 }
  0x40   :  { %p6452_p3 = pnand %p6451_p2, %p6445_p13 }
  0x42   :  { %6455 = shalt.err (!%p6452_p3)
}
  0x43   :  { %38 = dma.hbm_to_vmem [thread:$0]  %s7407_s1, 768, %s6661_s20, [#allocation9], %s6532_s30, %s6532_s30, %s6533_s16  }
  0x44   :  { %s6536_s27 = smov [#allocation12]   ;;  %s6537_s6 = smov [#allocation15]  }
  0x45   :  { %s60_s28 = sshll.u32 %s6536_s27, 4  ;;  %s88_s21 = sshll.u32 %s6537_s6, 4  ;;  %s61_s28 = int_to_ptr.vmem [resolvable:$true] %s60_s28  ;;  %s6698_s21 = int_to_ptr.vmem [resolvable:$true] %s88_s21 }
  0x46   :  { %s6456_s29 = scalar_lea.hbm %s7411_s5, 1536 }
  0x47   :  { %p6457_p4 = scmp.ne.s32.totalorder %s7411_s5, %s6456_s29  ;;  %p6460_p5 = scmp.lt.u32.totalorder %s6456_s29, %s7411_s5 }
  0x49   :  { %p6462_p6 = pnand %p6460_p5, %p6457_p4 }
  0x4b   :  { %6465 = shalt.err (!%p6462_p6)
}
  0x4c   :  { %s6466_s1 = scalar_lea.vmem %s61_s28, 1536  ;;  %p6471_p8 = scmp.lt.s32.totalorder %s61_s28, %s61_s28 }
  0x4d   :  { %p6467_p7 = scmp.ne.s32.totalorder %s61_s28, %s6466_s1  ;;  %p6472_p9 = scmp.lt.s32.totalorder %s6466_s1, %s6466_s1 }
  0x4f   :  { %p6473_p10 = por %p6472_p9, %p6471_p8 }
  0x51   :  { %p6474_p11 = pnand %p6473_p10, %p6467_p7 }
  0x53   :  { %6477 = shalt.err (!%p6474_p11)
}
  0x54   :  { %66 = dma.hbm_to_vmem [thread:$0]  %s7411_s5, 1536, %s61_s28, [#allocation11], %s6532_s30, %s6532_s30, %s6533_s16  }
  0x55   :  { %s6478_s17 = scalar_lea.hbm %s7415_s9, 1536 }
  0x56   :  { %p6479_p12 = scmp.ne.s32.totalorder %s7415_s9, %s6478_s17  ;;  %p6482_p13 = scmp.lt.u32.totalorder %s6478_s17, %s7415_s9 }
  0x58   :  { %p6484_p0 = pnand %p6482_p13, %p6479_p12 }
  0x5a   :  { %6487 = shalt.err (!%p6484_p0)
}
  0x5b   :  { %s6488_s29 = scalar_lea.vmem %s6698_s21, 1536  ;;  %p6493_p2 = scmp.lt.s32.totalorder %s6698_s21, %s6698_s21 }
  0x5c   :  { %p6489_p1 = scmp.ne.s32.totalorder %s6698_s21, %s6488_s29  ;;  %p6494_p3 = scmp.lt.s32.totalorder %s6488_s29, %s6488_s29 }
  0x5e   :  { %p6495_p4 = por %p6494_p3, %p6493_p2 }
  0x60   :  { %p6496_p5 = pnand %p6495_p4, %p6489_p1 }
  0x62   :  { %6499 = shalt.err (!%p6496_p5)
}
  0x63   :  { %94 = dma.hbm_to_vmem [thread:$0]  %s7415_s9, 1536, %s6698_s21, [#allocation14], %s6532_s30, %s6532_s30, %s6533_s16  }
  0x64   :  { %s6538_s18 = smov [#allocation18]   ;;  %s6500_s1 = scalar_lea.hbm %s7419_s13, 512 }
  0x65   :  { %s116_s22 = sshll.u32 %s6538_s18, 4  ;;  %p6501_p6 = scmp.ne.s32.totalorder %s7419_s13, %s6500_s1  ;;  %s117_s22 = int_to_ptr.vmem [resolvable:$true] %s116_s22 }
  0x66   :  { %p6504_p7 = scmp.lt.u32.totalorder %s6500_s1, %s7419_s13 }
  0x68   :  { %p6506_p8 = pnand %p6504_p7, %p6501_p6 }
  0x6a   :  { %6509 = shalt.err (!%p6506_p8)
}
  0x6b   :  { %s6510_s17 = scalar_lea.vmem %s117_s22, 512  ;;  %p6515_p10 = scmp.lt.s32.totalorder %s117_s22, %s117_s22 }
  0x6c   :  { %p6511_p9 = scmp.ne.s32.totalorder %s117_s22, %s6510_s17  ;;  %p6516_p11 = scmp.lt.s32.totalorder %s6510_s17, %s6510_s17 }
  0x6e   :  { %p6517_p12 = por %p6516_p11, %p6515_p10 }
  0x70   :  { %p6518_p13 = pnand %p6517_p12, %p6511_p9 }
  0x72   :  { %6521 = shalt.err (!%p6518_p13)
}
  0x73   :  { %s6539_s9 = smov 128   ;;  %s6540_s30 = smov 8  }
  0x74   :  { %122 = dma.hbm_to_vmem [thread:$0]  %s7419_s13, 512, %s117_s22, [#allocation17], %s6539_s9, %s6539_s9, %s6540_s30  }
  0x75   :  { %6522 = dma.done.wait [#allocation9], 768  }
  0x76   :  { %6523 = vsyncadd [#allocation9], 4294966528 }
  0x77   :  { %6524 = dma.done.wait [#allocation11], 3072  }
  0x78   :  { %6525 = vsyncadd [#allocation11], 4294964224 }
  0x79   :  { %6526 = dma.done.wait [#allocation14], 3072  }
  0x7a   :  { %6527 = vsyncadd [#allocation14], 4294964224 }
  0x7b   :  { %6528 = dma.done.wait [#allocation17], 2048  }
  0x7c   :  { %6529 = vsyncadd [#allocation17], 4294965248  ;;  %v6541_v0 = vmov 0.0   ;;  %v336_v1 = vld [vmem:[#allocation10 + $0x8] sm:$0xff]  ;;  %v339_v2 = vld [vmem:[#allocation10 + $0x20] sm:$0xff]  ;;  %vm187_vm0 = vcmask 130048   ;;  %v153_v31 = vlaneseq }
  0x7d   :  { %255 = vmatprep.mubr.f32.mxu1 %v6541_v0  ;;  %150 = vst [vmem:[#allocation4] sm:$0x1] %v6541_v0  ;;  %151 = vst [vmem:[#allocation5] sm:$0x1] %v6541_v0  ;;  %423 = vmatprep.mubr.f32.mxu0 %v6541_v0  ;;  %v165_v3 = vld [vmem:[#allocation8 + $0x8] sm:$0xff]  ;;  %v6752_v4 = vpack.c.bf16 %v339_v2, %v336_v1  ;;  %v168_v5 = vld [vmem:[#allocation8 + $0x20] sm:$0xff] }
  0x7e   :  { %152 = vst [vmem:[#allocation6] sm:$0x1] %v6541_v0  ;;  %v335_v6 = vld [vmem:[#allocation10] sm:$0xff]  ;;  %v338_v7 = vld [vmem:[#allocation10 + $0x18] sm:$0xff]  ;;  %v5737_v8 = vpack.c.bf16 %v168_v5, %v165_v3  ;;  %v164_v10 = vld [vmem:[#allocation8] sm:$0xff]  ;;  %v6542_v22 = vmov 0.0|0.0  }
  0x7f   :  { %v6754_v9 = vpack.c.bf16 %v338_v7, %v335_v6  ;;  %v167_v11 = vld [vmem:[#allocation8 + $0x18] sm:$0xff]  ;;  %v342_v12 = vld [vmem:[#allocation10 + $0x38] sm:$0xff]  ;;  %5745 = vmatprep.subr.bf16.mxu0 %v6752_v4  ;;  %v345_v14 = vld [vmem:[#allocation10 + $0x50] sm:$0xff]  ;;  %vm355_vm1 = vcmask 261120   ;;  %vm6543_vm2 = vmmov 0   ;;  %v6801_v32 = vshrl.u32 %v153_v31, 7 }
  0x80   :  { %v5739_v13 = vpack.c.bf16 %v167_v11, %v164_v10  ;;  %v341_v15 = vld [vmem:[#allocation10 + $0x30] sm:$0xff]  ;;  %5738 = vmatprep.subr.bf16.mxu1 %v5737_v8  ;;  %v6758_v16 = vpack.c.bf16 %v345_v14, %v342_v12  ;;  %v344_v17 = vld [vmem:[#allocation10 + $0x48] sm:$0xff]  ;;  %v166_v18 = vld [vmem:[#allocation8 + $0x10] sm:$0xff] }
  0x81   :  { %5747 = vmatpush1.bf16.msra.mxu0 %v6754_v9  ;;  %v163_v19 = vld [vmem:[%s7406_s0] sm:$0xff]  ;;  %v6763_v20 = vpack.c.bf16 %v344_v17, %v341_v15  ;;  %v169_v21 = vld [vmem:[#allocation8 + $0x28] sm:$0xff]  ;;  %v343_v28 = vld [vmem:[#allocation10 + $0x40] sm:$0xff]  ;;  %v6804_v33 = vsub.s32 0, %v6801_v32  ;;  %v6810_v35 = vsub.s32 1, %v6801_v32  ;;  %v6821_v54 = vsub.s32 2, %v6801_v32 }
  0x82   :  { %5740 = vmatpush1.bf16.msra.mxu1 %v5739_v13  ;;  %5749 = vmatprep.subr.bf16.mxu0 %v6758_v16  ;;  %v5742_v23 = vpack.c.bf16 %v169_v21, %v166_v18  ;;  %v337_v24 = vld [vmem:[#allocation10 + $0x10] sm:$0xff]  ;;  %v340_v25 = vld [vmem:[#allocation10 + $0x28] sm:$0xff]  ;;  %v346_v29 = vld [vmem:[#allocation10 + $0x58] sm:$0xff]  ;;  %vm155_vm3 = vcmp.eq.s32.totalorder %v6801_v32, 0  ;;  %vm156_vm4 = vcmp.eq.s32.totalorder %v6801_v32, 1  ;;  %vm157_vm5 = vcmp.eq.s32.totalorder %v6801_v32, 2 }
  0x83   :  { %5741 = vmatprep.subr.bf16.mxu1 %v6542_v22  ;;  %v6773_v27 = vpack.c.bf16 %v340_v25, %v337_v24  ;;  %v6782_v30 = vpack.c.bf16 %v346_v29, %v343_v28  ;;  %v170_v34 = vld [vmem:[%s7409_s3] sm:$0x7]  ;;  %vm158_vm6 = vcmp.eq.s32.totalorder %v6801_v32, 3  ;;  %vm159_vm7 = vcmp.eq.s32.totalorder %v6801_v32, 4 }
  0x84   :  { %v6769_v26 = vld [vmem:[#allocation4] sm:$0x1]  ;;  %v175_v36 = vrot.slane %v170_v34, %v6804_v33  ;;  %v179_v37 = vrot.slane %v170_v34, %v6810_v35  ;;  %v183_v58 = vrot.slane %v170_v34, %v6821_v54  ;;  %vm160_vm8 = vcmp.eq.s32.totalorder %v6801_v32, 5 }
  0x85   :  { %5192 = vmatmul.mubr.msk.f32.vlgmr.msra.gmra.mrb[0].mxu1 %vm187_vm0, %v163_v19  ;;  %5751 = vmatpush1.bf16.msra.mxu0 %v6763_v20  ;;  %v6826_v56 = vld [vmem:[%s7410_s4] sm:$0x1]  ;;  %vm161_vm9 = vcmp.eq.s32.totalorder %v6801_v32, 6  ;;  %vm162_vm10 = vcmp.eq.s32.totalorder %v6801_v32, 7 }
  0x86   :  { %5743 = vmatpush3.bf16.msra.mxu1 %v5742_v23  ;;  %5437 = vmatprep.mubr.msk.f32.mxu1 %vm6543_vm2, %v6541_v0 }
  0x87   :  { %5752 = vmatprep.subr.bf16.mxu1 %v6542_v22  ;;  %5759 = vmatprep.subr.bf16.mxu0 %v6752_v4 }
  0x88   :  { %5194 = vmatmul.mubr.msk.f32.vlgmr.msra.gmra.mrb[0].mxu0 %vm355_vm1, %v6769_v26 }
  0x89   :  { %5438 = vmatmul.mubr.msk.f32.vlgmr.msra.gmra.mrb[2].mxu1 %vm187_vm0, %v163_v19  ;;  %5761 = vmatpush1.bf16.msra.mxu0 %v6754_v9 }
  0x8a   :  { %5754 = vmatpush3.bf16.msra.mxu1 %v6773_v27  ;;  %5448 = vmatprep.mubr.msk.f32.mxu1 %vm6543_vm2, %v6541_v0 }
  0x8b   :  { %5755 = vmatprep.subr.bf16.mxu1 %v6542_v22  ;;  %5763 = vmatprep.subr.bf16.mxu0 %v6758_v16 }
  0x8c   :  { %594 = vmatprep.mubr.f32.mxu0 %v6541_v0 }
  0x8d   :  { %5765 = vmatpush1.bf16.msra.mxu0 %v6763_v20 }
  0x8e   :  { %5757 = vmatpush3.bf16.msra.mxu1 %v6782_v30  ;;  %5773 = vmatprep.subr.bf16.mxu0 %v6752_v4 }
  0x8f   :  { %5766 = vmatprep.subr.bf16.mxu1 %v6542_v22 }
  0x91   :  { %5449 = vmatmul.mubr.msk.f32.vlgmr.msra.gmra.mrb[4].mxu1 %vm355_vm1, %v6769_v26 }
  0x92   :  { %5768 = vmatpush3.bf16.msra.mxu1 %v6773_v27  ;;  %5459 = vmatprep.mubr.msk.f32.mxu1 %vm6543_vm2, %v6541_v0 }
  0x93   :  { %5769 = vmatprep.subr.bf16.mxu1 %v6542_v22 }
  0x96   :  { %5771 = vmatpush3.bf16.msra.mxu1 %v6782_v30 }
  0x97   :  { %5780 = vmatprep.subr.bf16.mxu1 %v6542_v22 }
 0x158   :  { %v257_v38 = vpop.f32.mrb[0].mxu1 }
 0x159   :  { %v6814_v39 = vadd.f32 %v257_v38, %v175_v36  ;;  %v259_v40 = vpop.f32.mrb[1].mxu1 }
 0x15a   :  { %v6816_v41 = vadd.f32 %v259_v40, %v179_v37 }
 0x15b   :  { %v425_v42 = vpop.f32.mrb[0].mxu0 }
 0x15c   :  { %v500_v43 = vadd.f32 %v425_v42, %v6814_v39  ;;  %v427_v44 = vpop.f32.mrb[1].mxu0  ;;  %v328_v45 = vpop.f32.mrb[2].mxu1 }
 0x15d   :  { %v5439_v46 = vpop.f32.mrb[3].mxu1  ;;  %v501_v48 = vadd.f32 %v427_v44, %v6816_v41  ;;  %v6830_v61 = vadd.f32 %v328_v45, %v183_v58 }
 0x15e   :  { %v5196_v47 = vmul.f32 -1.442695, %v500_v43 }
 0x15f   :  { %v5197_v49 = vmul.f32 -1.442695, %v501_v48 }
 0x160   :  { %6128 = vpow2.f32 %v5196_v47 }
 0x161   :  { %6130 = vpow2.f32 %v5197_v49 }
 0x164   :  { %v496_v50 = vpop.f32.mrb[4].mxu1 }
 0x165   :  { %v5450_v51 = vpop.f32.mrb[5].mxu1  ;;  %v514_v59 = vadd.f32 %v496_v50, %v6826_v56 }
 0x16a   :  { %v6129_v52 = vpop.eup %6128 }
 0x16b   :  { %v508_v53 = vadd.f32 1.0, %v6129_v52  ;;  %v6131_v55 = vpop.eup %6130 }
 0x16c   :  { %v509_v57 = vadd.f32 1.0, %v6131_v55 }
 0x16d   :  { %6132 = vrcp.f32 %v508_v53 }
 0x16e   :  { %6134 = vrcp.f32 %v509_v57 }
 0x177   :  { %v6133_v60 = vpop.eup %6132 }
 0x178   :  { %v515_v62 = vmul.f32 %v6133_v60, %v514_v59  ;;  %v6135_v1 = vpop.eup %6134 }
 0x179   :  { %v518_v2 = vsub.f32 1.0, %v6135_v1  ;;  %v520_v6 = vmul.f32 %v6135_v1, %v6769_v26 }
 0x17a   :  { %v516_v63 = vadd.f32 %v515_v62, %v6830_v61 }
 0x17c   :  { %6136 = vtanh.f32 %v516_v63 }
 0x186   :  { %v6137_v3 = vpop.eup %6136 }
 0x187   :  { %v519_v5 = vmul.f32 %v6137_v3, %v518_v2 }
 0x189   :  { %v521_v7 = vadd.f32 %v520_v6, %v519_v5 }
 0x18b   :  { %5198 = vmatmul.mubr.msk.f32.vlgmr.msra.gmra.mrb[2].mxu0 %vm355_vm1, %v521_v7  ;;  %5460 = vmatmul.mubr.msk.f32.vlgmr.msra.gmra.mrb[6].mxu1 %vm355_vm1, %v521_v7  ;;  %v700_v31 = vrot.slane %v521_v7, 7  ;;  %v525_v44 = vrot.slane %v521_v7, %v6804_v33 }
 0x18c   :  { %5775 = vmatpush1.bf16.msra.mxu0 %v6754_v9  ;;  %5782 = vmatpush3.bf16.msra.mxu1 %v6773_v27 }
 0x18d   :  { %5777 = vmatprep.subr.bf16.mxu0 %v6758_v16  ;;  %5783 = vmatprep.subr.bf16.mxu1 %v6542_v22  ;;  %v526_v48 = vsel %vm155_vm3, %v525_v44, 0.0 }
 0x18e   :  { %777 = vmatprep.mubr.f32.mxu0 %v6541_v0  ;;  %5470 = vmatprep.mubr.msk.f32.mxu1 %vm6543_vm2, %v6541_v0 }
 0x190   :  { %5779 = vmatpush1.bf16.msra.mxu0 %v6763_v20  ;;  %5785 = vmatpush3.bf16.msra.mxu1 %v6782_v30 }
 0x191   :  { %5787 = vmatprep.subr.bf16.mxu0 %v6752_v4  ;;  %5794 = vmatprep.subr.bf16.mxu1 %v6542_v22 }
 0x25e   :  { %v596_v8 = vpop.f32.mrb[2].mxu0  ;;  %v667_v10 = vpop.f32.mrb[6].mxu1 }
 0x25f   :  { %v673_v11 = vrot.slane %v596_v8, 7  ;;  %v598_v12 = vpop.f32.mrb[3].mxu0  ;;  %v5461_v13 = vpop.f32.mrb[7].mxu1  ;;  %v691_v26 = vadd.f32 %v667_v10, %v6826_v56 }
 0x260   :  { %v674_v14 = vrot.slane %v598_v12, 7 }
 0x261   :  { %v677_v15 = vadd.f32 %v673_v11, %v6814_v39  ;;  %v693_v28 = vrot.slane %v691_v26, 7 }
 0x262   :  { %v678_v17 = vadd.f32 %v674_v14, %v6816_v41 }
 0x263   :  { %v5200_v18 = vmul.f32 -1.442695, %v677_v15 }
 0x264   :  { %v5201_v19 = vmul.f32 -1.442695, %v678_v17 }
 0x265   :  { %6138 = vpow2.f32 %v5200_v18 }
 0x266   :  { %6140 = vpow2.f32 %v5201_v19 }
 0x26f   :  { %v6139_v21 = vpop.eup %6138 }
 0x270   :  { %v6141_v23 = vpop.eup %6140  ;;  %v685_v24 = vadd.f32 1.0, %v6139_v21 }
 0x271   :  { %v686_v25 = vadd.f32 1.0, %v6141_v23 }
 0x272   :  { %6142 = vrcp.f32 %v685_v24 }
 0x273   :  { %6144 = vrcp.f32 %v686_v25 }
 0x27c   :  { %v6143_v29 = vpop.eup %6142 }
 0x27d   :  { %v6145_v34 = vpop.eup %6144  ;;  %v695_v36 = vmul.f32 %v6143_v29, %v693_v28 }
 0x27e   :  { %v702_v37 = vmul.f32 %v6145_v34, %v700_v31  ;;  %v698_v40 = vsub.f32 1.0, %v6145_v34 }
 0x27f   :  { %v696_v38 = vadd.f32 %v695_v36, %v6830_v61 }
 0x281   :  { %6146 = vtanh.f32 %v696_v38 }
 0x28b   :  { %v6147_v42 = vpop.eup %6146 }
 0x28c   :  { %v699_v43 = vmul.f32 %v6147_v42, %v698_v40 }
 0x28e   :  { %v703_v45 = vadd.f32 %v702_v37, %v699_v43 }
 0x290   :  { %v707_v46 = vrot.slane %v703_v45, %v6810_v35  ;;  %v710_v47 = vrot.slane %v703_v45, 1  ;;  %v883_v8 = vrot.slane %v703_v45, 7 }
 0x292   :  { %5202 = vmatmul.mubr.msk.f32.vlgmr.msra.gmra.mrb[4].mxu0 %vm355_vm1, %v710_v47  ;;  %5471 = vmatmul.mubr.msk.f32.vlgmr.msra.gmra.mrb[8].mxu1 %vm355_vm1, %v710_v47  ;;  %v708_v49 = vsel %vm156_vm4, %v707_v46, %v526_v48 }
 0x293   :  { %5789 = vmatpush1.bf16.msra.mxu0 %v6754_v9  ;;  %5796 = vmatpush3.bf16.msra.mxu1 %v6773_v27 }
 0x294   :  { %5791 = vmatprep.subr.bf16.mxu0 %v6758_v16  ;;  %5797 = vmatprep.subr.bf16.mxu1 %v6542_v22 }
 0x295   :  { %960 = vmatprep.mubr.f32.mxu0 %v6541_v0  ;;  %5481 = vmatprep.mubr.msk.f32.mxu1 %vm6543_vm2, %v6541_v0 }
 0x297   :  { %5793 = vmatpush1.bf16.msra.mxu0 %v6763_v20  ;;  %5799 = vmatpush3.bf16.msra.mxu1 %v6782_v30 }
 0x298   :  { %5801 = vmatprep.subr.bf16.mxu0 %v6752_v4  ;;  %5808 = vmatprep.subr.bf16.mxu1 %v6542_v22 }
 0x365   :  { %v779_v50 = vpop.f32.mrb[4].mxu0  ;;  %v850_v51 = vpop.f32.mrb[8].mxu1 }
 0x366   :  { %v856_v52 = vrot.slane %v779_v50, 6  ;;  %v781_v53 = vpop.f32.mrb[5].mxu0  ;;  %v5472_v55 = vpop.f32.mrb[9].mxu1  ;;  %v874_v5 = vadd.f32 %v850_v51, %v6826_v56 }
 0x367   :  { %v857_v57 = vrot.slane %v781_v53, 6 }
 0x368   :  { %v860_v58 = vadd.f32 %v856_v52, %v6814_v39  ;;  %v876_v6 = vrot.slane %v874_v5, 6 }
 0x369   :  { %v861_v59 = vadd.f32 %v857_v57, %v6816_v41 }
 0x36a   :  { %v5204_v60 = vmul.f32 -1.442695, %v860_v58  ;;  %v6898_v58 = vsub.s32 3, %v6801_v32 }
 0x36b   :  { %v5205_v62 = vmul.f32 -1.442695, %v861_v59 }
 0x36c   :  { %6148 = vpow2.f32 %v5204_v60 }
 0x36d   :  { %6150 = vpow2.f32 %v5205_v62 }
 0x376   :  { %v6149_v63 = vpop.eup %6148 }
 0x377   :  { %v6151_v1 = vpop.eup %6150  ;;  %v868_v2 = vadd.f32 1.0, %v6149_v63 }
 0x378   :  { %v869_v3 = vadd.f32 1.0, %v6151_v1 }
 0x379   :  { %6152 = vrcp.f32 %v868_v2 }
 0x37a   :  { %6154 = vrcp.f32 %v869_v3 }
 0x383   :  { %v6153_v7 = vpop.eup %6152 }
 0x384   :  { %v6155_v10 = vpop.eup %6154  ;;  %v878_v11 = vmul.f32 %v6153_v7, %v876_v6 }
 0x385   :  { %v885_v12 = vmul.f32 %v6155_v10, %v883_v8  ;;  %v881_v14 = vsub.f32 1.0, %v6155_v10 }
 0x386   :  { %v879_v13 = vadd.f32 %v878_v11, %v6830_v61 }
 0x388   :  { %6156 = vtanh.f32 %v879_v13 }
 0x392   :  { %v6157_v15 = vpop.eup %6156 }
 0x393   :  { %v882_v17 = vmul.f32 %v6157_v15, %v881_v14 }
 0x395   :  { %v886_v18 = vadd.f32 %v885_v12, %v882_v17 }
 0x397   :  { %v890_v19 = vrot.slane %v886_v18, %v6821_v54  ;;  %v893_v21 = vrot.slane %v886_v18, 2  ;;  %v1066_v48 = vrot.slane %v886_v18, 7 }
 0x399   :  { %5206 = vmatmul.mubr.msk.f32.vlgmr.msra.gmra.mrb[6].mxu0 %vm355_vm1, %v893_v21  ;;  %5482 = vmatmul.mubr.msk.f32.vlgmr.msra.gmra.mrb[10].mxu1 %vm355_vm1, %v893_v21  ;;  %v891_v23 = vsel %vm157_vm5, %v890_v19, %v708_v49 }
 0x39a   :  { %5803 = vmatpush1.bf16.msra.mxu0 %v6754_v9  ;;  %5810 = vmatpush3.bf16.msra.mxu1 %v6773_v27 }
 0x39b   :  { %5805 = vmatprep.subr.bf16.mxu0 %v6758_v16  ;;  %5811 = vmatprep.subr.bf16.mxu1 %v6542_v22 }
 0x39c   :  { %1143 = vmatprep.mubr.f32.mxu0 %v6541_v0  ;;  %5492 = vmatprep.mubr.msk.f32.mxu1 %vm6543_vm2, %v6541_v0 }
 0x39e   :  { %5807 = vmatpush1.bf16.msra.mxu0 %v6763_v20  ;;  %5813 = vmatpush3.bf16.msra.mxu1 %v6782_v30 }
 0x39f   :  { %5815 = vmatprep.subr.bf16.mxu0 %v6752_v4  ;;  %5822 = vmatprep.subr.bf16.mxu1 %v6542_v22 }
 0x46c   :  { %v962_v24 = vpop.f32.mrb[6].mxu0  ;;  %v1033_v25 = vpop.f32.mrb[10].mxu1 }
 0x46d   :  { %v1039_v26 = vrot.slane %v962_v24, 5  ;;  %v964_v28 = vpop.f32.mrb[7].mxu0  ;;  %v5483_v29 = vpop.f32.mrb[11].mxu1  ;;  %v1057_v45 = vadd.f32 %v1033_v25, %v6826_v56 }
 0x46e   :  { %v1040_v31 = vrot.slane %v964_v28, 5 }
 0x46f   :  { %v1043_v34 = vadd.f32 %v1039_v26, %v6814_v39  ;;  %v1059_v46 = vrot.slane %v1057_v45, 5 }
 0x470   :  { %v1044_v36 = vadd.f32 %v1040_v31, %v6816_v41 }
 0x471   :  { %v5208_v37 = vmul.f32 -1.442695, %v1043_v34 }
 0x472   :  { %v5209_v38 = vmul.f32 -1.442695, %v1044_v36  ;;  %v6922_v36 = vsub.s32 4, %v6801_v32 }
 0x473   :  { %6158 = vpow2.f32 %v5208_v37 }
 0x474   :  { %6160 = vpow2.f32 %v5209_v38 }
 0x47d   :  { %v6159_v40 = vpop.eup %6158 }
 0x47e   :  { %v6161_v42 = vpop.eup %6160  ;;  %v1051_v43 = vadd.f32 1.0, %v6159_v40 }
 0x47f   :  { %v1052_v44 = vadd.f32 1.0, %v6161_v42 }
 0x480   :  { %6162 = vrcp.f32 %v1051_v43 }
 0x481   :  { %6164 = vrcp.f32 %v1052_v44 }
 0x48a   :  { %v6163_v47 = vpop.eup %6162 }
 0x48b   :  { %v6165_v49 = vpop.eup %6164  ;;  %v1061_v50 = vmul.f32 %v6163_v47, %v1059_v46 }
 0x48c   :  { %v1068_v51 = vmul.f32 %v6165_v49, %v1066_v48  ;;  %v1064_v53 = vsub.f32 1.0, %v6165_v49 }
 0x48d   :  { %v1062_v52 = vadd.f32 %v1061_v50, %v6830_v61 }
 0x48f   :  { %6166 = vtanh.f32 %v1062_v52 }
 0x499   :  { %v6167_v55 = vpop.eup %6166 }
 0x49a   :  { %v1065_v57 = vmul.f32 %v6167_v55, %v1064_v53 }
 0x49c   :  { %v1069_v59 = vadd.f32 %v1068_v51, %v1065_v57 }
 0x49e   :  { %v1076_v60 = vrot.slane %v1069_v59, 3  ;;  %v1073_v62 = vrot.slane %v1069_v59, %v6898_v58 }
 0x4a0   :  { %5210 = vmatmul.mubr.msk.f32.vlgmr.msra.gmra.mrb[8].mxu0 %vm355_vm1, %v1076_v60  ;;  %5493 = vmatmul.mubr.msk.f32.vlgmr.msra.gmra.mrb[12].mxu1 %vm355_vm1, %v1076_v60  ;;  %v1074_v63 = vsel %vm158_vm6, %v1073_v62, %v891_v23  ;;  %v1249_v23 = vrot.slane %v1069_v59, 7 }
 0x4a1   :  { %5817 = vmatpush1.bf16.msra.mxu0 %v6754_v9  ;;  %5824 = vmatpush3.bf16.msra.mxu1 %v6773_v27 }
 0x4a2   :  { %5819 = vmatprep.subr.bf16.mxu0 %v6758_v16  ;;  %5825 = vmatprep.subr.bf16.mxu1 %v6542_v22 }
 0x4a3   :  { %1326 = vmatprep.mubr.f32.mxu0 %v6541_v0  ;;  %5503 = vmatprep.mubr.msk.f32.mxu1 %vm6543_vm2, %v6541_v0 }
 0x4a5   :  { %5821 = vmatpush1.bf16.msra.mxu0 %v6763_v20  ;;  %5827 = vmatpush3.bf16.msra.mxu1 %v6782_v30 }
 0x4a6   :  { %5829 = vmatprep.subr.bf16.mxu0 %v6752_v4  ;;  %5836 = vmatprep.subr.bf16.mxu1 %v6542_v22 }
 0x573   :  { %v1145_v1 = vpop.f32.mrb[8].mxu0  ;;  %v1216_v2 = vpop.f32.mrb[12].mxu1 }
 0x574   :  { %v1222_v3 = vrot.slane %v1145_v1, 4  ;;  %v1147_v5 = vpop.f32.mrb[9].mxu0  ;;  %v5494_v6 = vpop.f32.mrb[13].mxu1  ;;  %v1240_v18 = vadd.f32 %v1216_v2, %v6826_v56 }
 0x575   :  { %v1223_v7 = vrot.slane %v1147_v5, 4 }
 0x576   :  { %v1226_v8 = vadd.f32 %v1222_v3, %v6814_v39  ;;  %v1242_v19 = vrot.slane %v1240_v18, 4 }
 0x577   :  { %v1227_v10 = vadd.f32 %v1223_v7, %v6816_v41 }
 0x578   :  { %v5212_v11 = vmul.f32 -1.442695, %v1226_v8 }
 0x579   :  { %v5213_v12 = vmul.f32 -1.442695, %v1227_v10  ;;  %v6946_v10 = vsub.s32 5, %v6801_v32 }
 0x57a   :  { %6168 = vpow2.f32 %v5212_v11 }
 0x57b   :  { %6170 = vpow2.f32 %v5213_v12 }
 0x584   :  { %v6169_v13 = vpop.eup %6168 }
 0x585   :  { %v6171_v14 = vpop.eup %6170  ;;  %v1234_v15 = vadd.f32 1.0, %v6169_v13 }
 0x586   :  { %v1235_v17 = vadd.f32 1.0, %v6171_v14 }
 0x587   :  { %6172 = vrcp.f32 %v1234_v15 }
 0x588   :  { %6174 = vrcp.f32 %v1235_v17 }
 0x591   :  { %v6173_v21 = vpop.eup %6172 }
 0x592   :  { %v6175_v24 = vpop.eup %6174  ;;  %v1244_v25 = vmul.f32 %v6173_v21, %v1242_v19 }
 0x593   :  { %v1251_v26 = vmul.f32 %v6175_v24, %v1249_v23  ;;  %v1247_v29 = vsub.f32 1.0, %v6175_v24 }
 0x594   :  { %v1245_v28 = vadd.f32 %v1244_v25, %v6830_v61 }
 0x596   :  { %6176 = vtanh.f32 %v1245_v28 }
 0x5a0   :  { %v6177_v31 = vpop.eup %6176 }
 0x5a1   :  { %v1248_v34 = vmul.f32 %v6177_v31, %v1247_v29 }
 0x5a3   :  { %v1252_v37 = vadd.f32 %v1251_v26, %v1248_v34 }
 0x5a5   :  { %v1259_v38 = vrot.slane %v1252_v37, 4  ;;  %v1256_v40 = vrot.slane %v1252_v37, %v6922_v36 }
 0x5a7   :  { %5214 = vmatmul.mubr.msk.f32.vlgmr.msra.gmra.mrb[10].mxu0 %vm355_vm1, %v1259_v38  ;;  %5504 = vmatmul.mubr.msk.f32.vlgmr.msra.gmra.mrb[14].mxu1 %vm355_vm1, %v1259_v38  ;;  %v1257_v42 = vsel %vm159_vm7, %v1256_v40, %v1074_v63  ;;  %v1432_v63 = vrot.slane %v1252_v37, 7 }
 0x5a8   :  { %5831 = vmatpush1.bf16.msra.mxu0 %v6754_v9  ;;  %5838 = vmatpush3.bf16.msra.mxu1 %v6773_v27 }
 0x5a9   :  { %5833 = vmatprep.subr.bf16.mxu0 %v6758_v16  ;;  %5839 = vmatprep.subr.bf16.mxu1 %v6542_v22 }
 0x5aa   :  { %1509 = vmatprep.mubr.f32.mxu0 %v6541_v0  ;;  %5514 = vmatprep.mubr.msk.f32.mxu1 %vm6543_vm2, %v6541_v0 }
 0x5ac   :  { %5835 = vmatpush1.bf16.msra.mxu0 %v6763_v20  ;;  %5841 = vmatpush3.bf16.msra.mxu1 %v6782_v30 }
 0x5ad   :  { %5843 = vmatprep.subr.bf16.mxu0 %v6752_v4  ;;  %5850 = vmatprep.subr.bf16.mxu1 %v6542_v22 }
 0x67a   :  { %v1328_v43 = vpop.f32.mrb[10].mxu0  ;;  %v1399_v44 = vpop.f32.mrb[14].mxu1 }
 0x67b   :  { %v1405_v45 = vrot.slane %v1328_v43, 3  ;;  %v1330_v46 = vpop.f32.mrb[11].mxu0  ;;  %v5505_v47 = vpop.f32.mrb[15].mxu1  ;;  %v1423_v59 = vadd.f32 %v1399_v44, %v6826_v56 }
 0x67c   :  { %v1406_v48 = vrot.slane %v1330_v46, 3  ;;  %v6969_v46 = vsub.s32 6, %v6801_v32 }
 0x67d   :  { %v1409_v49 = vadd.f32 %v1405_v45, %v6814_v39  ;;  %v1425_v60 = vrot.slane %v1423_v59, 3  ;;  %v1815_v59 = vld [vmem:[#allocation12 + $0x28] sm:$0xff] }
 0x67e   :  { %v1410_v50 = vadd.f32 %v1406_v48, %v6816_v41 }
 0x67f   :  { %v5216_v51 = vmul.f32 -1.442695, %v1409_v49 }
 0x680   :  { %v5217_v52 = vmul.f32 -1.442695, %v1410_v50 }
 0x681   :  { %6178 = vpow2.f32 %v5216_v51  ;;  %v1811_v51 = vld [vmem:[#allocation12 + $0x8] sm:$0xff] }
 0x682   :  { %6180 = vpow2.f32 %v5217_v52  ;;  %v1814_v52 = vld [vmem:[#allocation12 + $0x20] sm:$0xff] }
 0x68b   :  { %v6179_v53 = vpop.eup %6178 }
 0x68c   :  { %v6181_v55 = vpop.eup %6180  ;;  %v1417_v57 = vadd.f32 1.0, %v6179_v53  ;;  %v1810_v53 = vld [vmem:[#allocation12] sm:$0xff] }
 0x68d   :  { %v1418_v4 = vadd.f32 1.0, %v6181_v55  ;;  %v5856_v55 = vpack.c.bf16 %v1814_v52, %v1811_v51  ;;  %v1996_v51 = vld [vmem:[#allocation13 + $0x50] sm:$0xff] }
 0x68e   :  { %6182 = vrcp.f32 %v1417_v57  ;;  %v1813_v57 = vld [vmem:[#allocation12 + $0x18] sm:$0xff]  ;;  %v1988_v52 = vld [vmem:[#allocation13 + $0x10] sm:$0xff] }
 0x68f   :  { %6184 = vrcp.f32 %v1418_v4  ;;  %v1812_v4 = vld [vmem:[#allocation12 + $0x10] sm:$0xff] }
 0x698   :  { %v6183_v62 = vpop.eup %6182 }
 0x699   :  { %v6185_v1 = vpop.eup %6184  ;;  %v1427_v2 = vmul.f32 %v6183_v62, %v1425_v60  ;;  %v5858_v60 = vpack.c.bf16 %v1813_v57, %v1810_v53  ;;  %v5865_v62 = vpack.c.bf16 %v1815_v59, %v1812_v4  ;;  %v1991_v53 = vld [vmem:[#allocation13 + $0x28] sm:$0xff]  ;;  %v1992_v57 = vld [vmem:[#allocation13 + $0x30] sm:$0xff] }
 0x69a   :  { %v1434_v3 = vmul.f32 %v6185_v1, %v1432_v63  ;;  %v1430_v6 = vsub.f32 1.0, %v6185_v1  ;;  %v1817_v63 = vld [vmem:[#allocation12 + $0x38] sm:$0xff]  ;;  %v1820_v1 = vld [vmem:[#allocation12 + $0x50] sm:$0xff]  ;;  %v1995_v4 = vld [vmem:[#allocation13 + $0x48] sm:$0xff]  ;;  %v7005_v59 = vpack.c.bf16 %v1991_v53, %v1988_v52 }
 0x69b   :  { %v1428_v5 = vadd.f32 %v1427_v2, %v6830_v61  ;;  %v1816_v2 = vld [vmem:[#allocation12 + $0x30] sm:$0xff] }
 0x69d   :  { %6186 = vtanh.f32 %v1428_v5  ;;  %v1819_v5 = vld [vmem:[#allocation12 + $0x48] sm:$0xff] }
 0x6a7   :  { %v6187_v7 = vpop.eup %6186 }
 0x6a8   :  { %v1431_v8 = vmul.f32 %v6187_v7, %v1430_v6  ;;  %v1818_v6 = vld [vmem:[#allocation12 + $0x40] sm:$0xff]  ;;  %v1821_v7 = vld [vmem:[#allocation12 + $0x58] sm:$0xff] }
 0x6aa   :  { %v1435_v11 = vadd.f32 %v1434_v3, %v1431_v8  ;;  %v5860_v3 = vpack.c.bf16 %v1820_v1, %v1817_v63  ;;  %v5862_v8 = vpack.c.bf16 %v1819_v5, %v1816_v2  ;;  %v1997_v63 = vld [vmem:[#allocation13 + $0x58] sm:$0xff]  ;;  %v7013_v1 = vpack.c.bf16 %v1995_v4, %v1992_v57 }
 0x6ac   :  { %v1442_v12 = vrot.slane %v1435_v11, 5  ;;  %v1439_v13 = vrot.slane %v1435_v11, %v6946_v10  ;;  %v1615_v34 = vrot.slane %v1435_v11, 7  ;;  %v5868_v11 = vpack.c.bf16 %v1821_v7, %v1818_v6 }
 0x6ae   :  { %5218 = vmatmul.mubr.msk.f32.vlgmr.msra.gmra.mrb[12].mxu0 %vm355_vm1, %v1442_v12  ;;  %5515 = vmatmul.mubr.msk.f32.vlgmr.msra.gmra.mrb[16].mxu1 %vm355_vm1, %v1442_v12  ;;  %v1440_v14 = vsel %vm160_vm8, %v1439_v13, %v1257_v42  ;;  %v1987_v12 = vld [vmem:[#allocation13 + $0x8] sm:$0xff]  ;;  %v1990_v13 = vld [vmem:[#allocation13 + $0x20] sm:$0xff] }
 0x6af   :  { %5845 = vmatpush1.bf16.msra.mxu0 %v6754_v9  ;;  %5852 = vmatpush3.bf16.msra.mxu1 %v6773_v27 }
 0x6b0   :  { %5847 = vmatprep.subr.bf16.mxu0 %v6758_v16  ;;  %5853 = vmatprep.subr.bf16.mxu1 %v6542_v22 }
 0x6b1   :  { %1692 = vmatprep.mubr.f32.mxu0 %v6541_v0  ;;  %5525 = vmatprep.mubr.msk.f32.mxu1 %vm6543_vm2, %v6541_v0 }
 0x6b3   :  { %5849 = vmatpush1.bf16.msra.mxu0 %v6763_v20  ;;  %5855 = vmatpush3.bf16.msra.mxu1 %v6782_v30 }
 0x6b4   :  { %5864 = vmatprep.subr.bf16.mxu1 %v6542_v22  ;;  %5857 = vmatprep.subr.bf16.mxu0 %v5856_v55 }
 0x781   :  { %v1511_v15 = vpop.f32.mrb[12].mxu0  ;;  %v1582_v17 = vpop.f32.mrb[16].mxu1 }
 0x782   :  { %v1588_v9 = vrot.slane %v1511_v15, 2  ;;  %v1513_v18 = vpop.f32.mrb[13].mxu0  ;;  %v5516_v27 = vpop.f32.mrb[17].mxu1  ;;  %v1606_v28 = vadd.f32 %v1582_v17, %v6826_v56 }
 0x783   :  { %v1589_v19 = vrot.slane %v1513_v18, 2 }
 0x784   :  { %v1592_v16 = vadd.f32 %v1588_v9, %v6814_v39  ;;  %v1608_v29 = vrot.slane %v1606_v28, 2 }
 0x785   :  { %v1593_v21 = vadd.f32 %v1589_v19, %v6816_v41 }
 0x786   :  { %v5220_v23 = vmul.f32 -1.442695, %v1592_v16 }
 0x787   :  { %v5221_v24 = vmul.f32 -1.442695, %v1593_v21 }
 0x788   :  { %6188 = vpow2.f32 %v5220_v23 }
 0x789   :  { %6190 = vpow2.f32 %v5221_v24 }
 0x792   :  { %v6189_v25 = vpop.eup %6188 }
 0x793   :  { %v6191_v20 = vpop.eup %6190  ;;  %v1600_v26 = vadd.f32 1.0, %v6189_v25 }
 0x794   :  { %v1601_v30 = vadd.f32 1.0, %v6191_v20 }
 0x795   :  { %6192 = vrcp.f32 %v1600_v26 }
 0x796   :  { %6194 = vrcp.f32 %v1601_v30 }
 0x79f   :  { %v6193_v31 = vpop.eup %6192 }
 0x7a0   :  { %v6195_v37 = vpop.eup %6194  ;;  %v1610_v38 = vmul.f32 %v6193_v31, %v1608_v29 }
 0x7a1   :  { %v1617_v40 = vmul.f32 %v6195_v37, %v1615_v34  ;;  %v1613_v43 = vsub.f32 1.0, %v6195_v37 }
 0x7a2   :  { %v1611_v42 = vadd.f32 %v1610_v38, %v6830_v61 }
 0x7a4   :  { %6196 = vtanh.f32 %v1611_v42 }
 0x7ae   :  { %v6197_v44 = vpop.eup %6196 }
 0x7af   :  { %v1614_v45 = vmul.f32 %v6197_v44, %v1613_v43  ;;  %v6997_v44 = vsub.s32 7, %v6801_v32 }
 0x7b1   :  { %v6971_v47 = vadd.f32 %v1617_v40, %v1614_v45  ;;  %v1986_v45 = vld [vmem:[#allocation13] sm:$0xff] }
 0x7b3   :  { %v1625_v48 = vrot.slane %v6971_v47, 6  ;;  %v1622_v49 = vrot.slane %v6971_v47, %v6969_v46  ;;  %v1798_v34 = vrot.slane %v6971_v47, 7 }
 0x7b5   :  { %5222 = vmatmul.mubr.msk.f32.vlgmr.msra.gmra.mrb[14].mxu0 %vm355_vm1, %v1625_v48  ;;  %5526 = vmatmul.mubr.msk.f32.vlgmr.msra.gmra.mrb[18].mxu1 %vm355_vm1, %v1625_v48  ;;  %v6981_v50 = vsel %vm161_vm9, %v1622_v49, %v1440_v14  ;;  %v6987_v14 = vpack.c.bf16 %v1990_v13, %v1987_v12  ;;  %v1989_v48 = vld [vmem:[#allocation13 + $0x18] sm:$0xff] }
 0x7b6   :  { %1906 = vmatprep.mubr.f32.mxu0 %v6541_v0  ;;  %5536 = vmatprep.mubr.msk.f32.mxu1 %vm6543_vm2, %v6541_v0  ;;  %v1993_v49 = vld [vmem:[#allocation13 + $0x38] sm:$0xff] }
 0x7b7   :  { %5859 = vmatpush1.bf16.msra.mxu0 %v5858_v60  ;;  %5866 = vmatpush3.bf16.msra.mxu1 %v5865_v62  ;;  %v7003_v55 = vpack.c.bf16 %v1996_v51, %v1993_v49  ;;  %v1994_v62 = vld [vmem:[#allocation13 + $0x40] sm:$0xff] }
 0x7b8   :  { %5861 = vmatprep.subr.bf16.mxu0 %v5860_v3  ;;  %5867 = vmatprep.subr.bf16.mxu1 %v6542_v22  ;;  %v7018_v2 = vpack.c.bf16 %v1997_v63, %v1994_v62  ;;  %v1822_v3 = vld [vmem:[%s7413_s7] sm:$0x7] }
 0x7b9   :  { %v1831_v12 = vrot.slane %v1822_v3, %v6810_v35 }
 0x7bb   :  { %5863 = vmatpush1.bf16.msra.mxu0 %v5862_v8  ;;  %5869 = vmatpush3.bf16.msra.mxu1 %v5868_v11  ;;  %v1827_v11 = vrot.slane %v1822_v3, %v6804_v33 }
 0x7bc   :  { %5871 = vmatprep.subr.bf16.mxu0 %v6987_v14  ;;  %5878 = vmatprep.subr.bf16.mxu1 %v6542_v22 }
 0x888   :  { %v1694_v15 = vpop.f32.mrb[14].mxu0  ;;  %v1765_v17 = vpop.f32.mrb[18].mxu1 }
 0x889   :  { %v1771_v9 = vrot.slane %v1694_v15, 1  ;;  %v1696_v18 = vpop.f32.mrb[15].mxu0  ;;  %v5527_v27 = vpop.f32.mrb[19].mxu1  ;;  %v1789_v28 = vadd.f32 %v1765_v17, %v6826_v56 }
 0x88a   :  { %v1772_v19 = vrot.slane %v1696_v18, 1 }
 0x88b   :  { %v1775_v16 = vadd.f32 %v1771_v9, %v6814_v39  ;;  %v1791_v29 = vrot.slane %v1789_v28, 1 }
 0x88c   :  { %v1776_v21 = vadd.f32 %v1772_v19, %v6816_v41 }
 0x88d   :  { %v5224_v23 = vmul.f32 -1.442695, %v1775_v16 }
 0x88e   :  { %v5225_v24 = vmul.f32 -1.442695, %v1776_v21 }
 0x88f   :  { %6198 = vpow2.f32 %v5224_v23 }
 0x890   :  { %6200 = vpow2.f32 %v5225_v24 }
 0x899   :  { %v6199_v25 = vpop.eup %6198 }
 0x89a   :  { %v6201_v20 = vpop.eup %6200  ;;  %v1783_v26 = vadd.f32 1.0, %v6199_v25 }
 0x89b   :  { %v1784_v30 = vadd.f32 1.0, %v6201_v20 }
 0x89c   :  { %6202 = vrcp.f32 %v1783_v26  ;;  %v7054_v26 = vld [vmem:[%s7414_s8] sm:$0x1] }
 0x89d   :  { %6204 = vrcp.f32 %v1784_v30  ;;  %v1835_v30 = vrot.slane %v1822_v3, %v6821_v54 }
 0x8a6   :  { %v6203_v31 = vpop.eup %6202 }
 0x8a7   :  { %v6205_v37 = vpop.eup %6204  ;;  %v1793_v39 = vmul.f32 %v6203_v31, %v1791_v29 }
 0x8a8   :  { %v1800_v38 = vmul.f32 %v6205_v37, %v1798_v34  ;;  %v1796_v40 = vsub.f32 1.0, %v6205_v37 }
 0x8a9   :  { %v1794_v41 = vadd.f32 %v1793_v39, %v6830_v61  ;;  %v7001_v61 = vpack.c.bf16 %v1989_v48, %v1986_v45 }
 0x8ab   :  { %6206 = vtanh.f32 %v1794_v41 }
 0x8b5   :  { %v6207_v42 = vpop.eup %6206 }
 0x8b6   :  { %v1797_v43 = vmul.f32 %v6207_v42, %v1796_v40 }
 0x8b8   :  { %v1801_v56 = vadd.f32 %v1800_v38, %v1797_v43 }
 0x8ba   :  { %v1805_v47 = vrot.slane %v1801_v56, %v6997_v44  ;;  %1808 = vst [vmem:[#allocation4 - $0x7] sm:$0x80] %v1801_v56 }
 0x8bc   :  { %v1806_v60 = vsel %vm162_vm10, %v1805_v47, %v6981_v50  ;;  %v1999_v50 = vld [vmem:[#allocation5] sm:$0x1] }
 0x8bd   :  { %5226 = vmatmul.mubr.msk.f32.vlgmr.msra.gmra.mrb[16].mxu0 %vm355_vm1, %v1806_v60  ;;  %5537 = vmatmul.mubr.msk.f32.vlgmr.msra.gmra.mrb[20].mxu1 %vm355_vm1, %v1806_v60 }
 0x8be   :  { %5873 = vmatpush1.bf16.msra.mxu0 %v7001_v61  ;;  %2070 = vmatprep.mubr.f32.mxu0 %v6541_v0 }
 0x8bf   :  { %5875 = vmatprep.subr.bf16.mxu0 %v7003_v55  ;;  %5880 = vmatpush3.bf16.msra.mxu1 %v7005_v59 }
 0x8c0   :  { %5881 = vmatprep.subr.bf16.mxu1 %v6542_v22  ;;  %5547 = vmatprep.mubr.msk.f32.mxu1 %vm6543_vm2, %v6541_v0 }
 0x8c2   :  { %5877 = vmatpush1.bf16.msra.mxu0 %v7013_v1 }
 0x8c3   :  { %5883 = vmatpush3.bf16.msra.mxu1 %v7018_v2  ;;  %5885 = vmatprep.subr.bf16.mxu0 %v6987_v14 }
 0x8c4   :  { %5892 = vmatprep.subr.bf16.mxu1 %v6542_v22 }
 0x8c5   :  { %5228 = vmatmul.mubr.msk.f32.vlgmr.msra.gmra.mrb[18].mxu0 %vm355_vm1, %v1999_v50 }
 0x8c6   :  { %5548 = vmatmul.mubr.msk.f32.vlgmr.msra.gmra.mrb[22].mxu1 %vm355_vm1, %v1999_v50  ;;  %5887 = vmatpush1.bf16.msra.mxu0 %v7001_v61 }
 0x8c7   :  { %5894 = vmatpush3.bf16.msra.mxu1 %v7005_v59  ;;  %5889 = vmatprep.subr.bf16.mxu0 %v7003_v55 }
 0x8c8   :  { %5895 = vmatprep.subr.bf16.mxu1 %v6542_v22  ;;  %2241 = vmatprep.mubr.f32.mxu0 %v6541_v0 }
 0x8c9   :  { %5558 = vmatprep.mubr.msk.f32.mxu1 %vm6543_vm2, %v6541_v0 }
 0x8ca   :  { %5891 = vmatpush1.bf16.msra.mxu0 %v7013_v1 }
 0x8cb   :  { %5897 = vmatpush3.bf16.msra.mxu1 %v7018_v2  ;;  %5899 = vmatprep.subr.bf16.mxu0 %v6987_v14 }
 0x8cc   :  { %5906 = vmatprep.subr.bf16.mxu1 %v6542_v22 }
 0x990   :  { %v1908_v5 = vpop.f32.mrb[16].mxu0  ;;  %v1979_v6 = vpop.f32.mrb[20].mxu1 }
 0x991   :  { %v1910_v7 = vpop.f32.mrb[17].mxu0  ;;  %v5538_v8 = vpop.f32.mrb[21].mxu1  ;;  %v7045_v13 = vadd.f32 %v1908_v5, %v1827_v11  ;;  %v7058_v34 = vadd.f32 %v1979_v6, %v1835_v30 }
 0x992   :  { %v7048_v27 = vadd.f32 %v1910_v7, %v1831_v12 }
 0x998   :  { %v2072_v15 = vpop.f32.mrb[18].mxu0 }
 0x999   :  { %v2147_v17 = vadd.f32 %v2072_v15, %v7045_v13  ;;  %v2074_v9 = vpop.f32.mrb[19].mxu0  ;;  %v2143_v18 = vpop.f32.mrb[22].mxu1 }
 0x99a   :  { %v5549_v19 = vpop.f32.mrb[23].mxu1  ;;  %v2148_v21 = vadd.f32 %v2074_v9, %v7048_v27  ;;  %v2161_v29 = vadd.f32 %v2143_v18, %v7054_v26 }
 0x99b   :  { %v5230_v16 = vmul.f32 -1.442695, %v2147_v17 }
 0x99c   :  { %v5231_v23 = vmul.f32 -1.442695, %v2148_v21 }
 0x99d   :  { %6208 = vpow2.f32 %v5230_v16 }
 0x99e   :  { %6210 = vpow2.f32 %v5231_v23 }
 0x9a7   :  { %v6209_v24 = vpop.eup %6208 }
 0x9a8   :  { %v2155_v25 = vadd.f32 1.0, %v6209_v24  ;;  %v6211_v20 = vpop.eup %6210 }
 0x9a9   :  { %v2156_v28 = vadd.f32 1.0, %v6211_v20 }
 0x9aa   :  { %6212 = vrcp.f32 %v2155_v25 }
 0x9ab   :  { %6214 = vrcp.f32 %v2156_v28 }
 0x9b4   :  { %v6213_v31 = vpop.eup %6212 }
 0x9b5   :  { %v2162_v37 = vmul.f32 %v6213_v31, %v2161_v29  ;;  %v6215_v38 = vpop.eup %6214 }
 0x9b6   :  { %v2165_v41 = vsub.f32 1.0, %v6215_v38  ;;  %v2167_v43 = vmul.f32 %v6215_v38, %v1999_v50 }
 0x9b7   :  { %v2163_v39 = vadd.f32 %v2162_v37, %v7058_v34 }
 0x9b9   :  { %6216 = vtanh.f32 %v2163_v39 }
 0x9c3   :  { %v6217_v40 = vpop.eup %6216 }
 0x9c4   :  { %v2166_v42 = vmul.f32 %v6217_v40, %v2165_v41 }
 0x9c6   :  { %v2168_v45 = vadd.f32 %v2167_v43, %v2166_v42 }
 0x9c8   :  { %5232 = vmatmul.mubr.msk.f32.vlgmr.msra.gmra.mrb[20].mxu0 %vm355_vm1, %v2168_v45  ;;  %5559 = vmatmul.mubr.msk.f32.vlgmr.msra.gmra.mrb[24].mxu1 %vm355_vm1, %v2168_v45  ;;  %v2347_v8 = vrot.slane %v2168_v45, 7  ;;  %v2172_v16 = vrot.slane %v2168_v45, %v6804_v33 }
 0x9c9   :  { %5901 = vmatpush1.bf16.msra.mxu0 %v7001_v61  ;;  %5908 = vmatpush3.bf16.msra.mxu1 %v7005_v59 }
 0x9ca   :  { %5903 = vmatprep.subr.bf16.mxu0 %v7003_v55  ;;  %5909 = vmatprep.subr.bf16.mxu1 %v6542_v22  ;;  %v2173_v25 = vsel %vm155_vm3, %v2172_v16, 0.0 }
 0x9cb   :  { %2424 = vmatprep.mubr.f32.mxu0 %v6541_v0  ;;  %5569 = vmatprep.mubr.msk.f32.mxu1 %vm6543_vm2, %v6541_v0 }
 0x9cd   :  { %5905 = vmatpush1.bf16.msra.mxu0 %v7013_v1  ;;  %5911 = vmatpush3.bf16.msra.mxu1 %v7018_v2 }
 0x9ce   :  { %5913 = vmatprep.subr.bf16.mxu0 %v6987_v14  ;;  %5920 = vmatprep.subr.bf16.mxu1 %v6542_v22 }
 0xa9b   :  { %v2243_v48 = vpop.f32.mrb[20].mxu0  ;;  %v2314_v49 = vpop.f32.mrb[24].mxu1 }
 0xa9c   :  { %v2320_v56 = vrot.slane %v2243_v48, 7  ;;  %v2245_v51 = vpop.f32.mrb[21].mxu0  ;;  %v5560_v52 = vpop.f32.mrb[25].mxu1  ;;  %v2338_v5 = vadd.f32 %v2314_v49, %v7054_v26 }
 0xa9d   :  { %v2321_v53 = vrot.slane %v2245_v51, 7 }
 0xa9e   :  { %v2324_v47 = vadd.f32 %v2320_v56, %v7045_v13  ;;  %v2340_v6 = vrot.slane %v2338_v5, 7 }
 0xa9f   :  { %v2325_v57 = vadd.f32 %v2321_v53, %v7048_v27 }
 0xaa0   :  { %v5234_v4 = vmul.f32 -1.442695, %v2324_v47 }
 0xaa1   :  { %v5235_v60 = vmul.f32 -1.442695, %v2325_v57 }
 0xaa2   :  { %6218 = vpow2.f32 %v5234_v4 }
 0xaa3   :  { %6220 = vpow2.f32 %v5235_v60 }
 0xaac   :  { %v6219_v62 = vpop.eup %6218 }
 0xaad   :  { %v6221_v63 = vpop.eup %6220  ;;  %v2332_v50 = vadd.f32 1.0, %v6219_v62 }
 0xaae   :  { %v2333_v3 = vadd.f32 1.0, %v6221_v63 }
 0xaaf   :  { %6222 = vrcp.f32 %v2332_v50 }
 0xab0   :  { %6224 = vrcp.f32 %v2333_v3 }
 0xab9   :  { %v6223_v7 = vpop.eup %6222 }
 0xaba   :  { %v6225_v11 = vpop.eup %6224  ;;  %v2342_v12 = vmul.f32 %v6223_v7, %v2340_v6 }
 0xabb   :  { %v2349_v15 = vmul.f32 %v6225_v11, %v2347_v8  ;;  %v2345_v9 = vsub.f32 1.0, %v6225_v11 }
 0xabc   :  { %v2343_v17 = vadd.f32 %v2342_v12, %v7058_v34 }
 0xabe   :  { %6226 = vtanh.f32 %v2343_v17 }
 0xac8   :  { %v6227_v18 = vpop.eup %6226 }
 0xac9   :  { %v2346_v19 = vmul.f32 %v6227_v18, %v2345_v9 }
 0xacb   :  { %v2350_v21 = vadd.f32 %v2349_v15, %v2346_v19 }
 0xacd   :  { %v2354_v23 = vrot.slane %v2350_v21, %v6810_v35  ;;  %v2357_v24 = vrot.slane %v2350_v21, 1  ;;  %v2530_v53 = vrot.slane %v2350_v21, 7 }
 0xacf   :  { %5236 = vmatmul.mubr.msk.f32.vlgmr.msra.gmra.mrb[22].mxu0 %vm355_vm1, %v2357_v24  ;;  %5570 = vmatmul.mubr.msk.f32.vlgmr.msra.gmra.mrb[26].mxu1 %vm355_vm1, %v2357_v24  ;;  %v2355_v20 = vsel %vm156_vm4, %v2354_v23, %v2173_v25 }
 0xad0   :  { %5915 = vmatpush1.bf16.msra.mxu0 %v7001_v61  ;;  %5922 = vmatpush3.bf16.msra.mxu1 %v7005_v59 }
 0xad1   :  { %5917 = vmatprep.subr.bf16.mxu0 %v7003_v55  ;;  %5923 = vmatprep.subr.bf16.mxu1 %v6542_v22 }
 0xad2   :  { %2607 = vmatprep.mubr.f32.mxu0 %v6541_v0  ;;  %5580 = vmatprep.mubr.msk.f32.mxu1 %vm6543_vm2, %v6541_v0 }
 0xad4   :  { %5919 = vmatpush1.bf16.msra.mxu0 %v7013_v1  ;;  %5925 = vmatpush3.bf16.msra.mxu1 %v7018_v2 }
 0xad5   :  { %5927 = vmatprep.subr.bf16.mxu0 %v6987_v14  ;;  %5934 = vmatprep.subr.bf16.mxu1 %v6542_v22 }
 0xba2   :  { %v2426_v30 = vpop.f32.mrb[22].mxu0  ;;  %v2497_v28 = vpop.f32.mrb[26].mxu1 }
 0xba3   :  { %v2503_v29 = vrot.slane %v2426_v30, 6  ;;  %v2428_v31 = vpop.f32.mrb[23].mxu0  ;;  %v5571_v37 = vpop.f32.mrb[27].mxu1  ;;  %v2521_v56 = vadd.f32 %v2497_v28, %v7054_v26 }
 0xba4   :  { %v2504_v39 = vrot.slane %v2428_v31, 6 }
 0xba5   :  { %v2507_v38 = vadd.f32 %v2503_v29, %v7045_v13  ;;  %v2523_v51 = vrot.slane %v2521_v56, 6 }
 0xba6   :  { %v2508_v41 = vadd.f32 %v2504_v39, %v7048_v27 }
 0xba7   :  { %v5238_v40 = vmul.f32 -1.442695, %v2507_v38 }
 0xba8   :  { %v5239_v42 = vmul.f32 -1.442695, %v2508_v41 }
 0xba9   :  { %6228 = vpow2.f32 %v5238_v40 }
 0xbaa   :  { %6230 = vpow2.f32 %v5239_v42 }
 0xbb3   :  { %v6229_v43 = vpop.eup %6228 }
 0xbb4   :  { %v6231_v45 = vpop.eup %6230  ;;  %v2515_v48 = vadd.f32 1.0, %v6229_v43 }
 0xbb5   :  { %v2516_v49 = vadd.f32 1.0, %v6231_v45 }
 0xbb6   :  { %6232 = vrcp.f32 %v2515_v48 }
 0xbb7   :  { %6234 = vrcp.f32 %v2516_v49 }
 0xbc0   :  { %v6233_v52 = vpop.eup %6232 }
 0xbc1   :  { %v6235_v47 = vpop.eup %6234  ;;  %v2525_v57 = vmul.f32 %v6233_v52, %v2523_v51 }
 0xbc2   :  { %v2532_v4 = vmul.f32 %v6235_v47, %v2530_v53  ;;  %v2528_v62 = vsub.f32 1.0, %v6235_v47 }
 0xbc3   :  { %v2526_v60 = vadd.f32 %v2525_v57, %v7058_v34 }
 0xbc5   :  { %6236 = vtanh.f32 %v2526_v60 }
 0xbcf   :  { %v6237_v63 = vpop.eup %6236 }
 0xbd0   :  { %v2529_v50 = vmul.f32 %v6237_v63, %v2528_v62 }
 0xbd2   :  { %v2533_v3 = vadd.f32 %v2532_v4, %v2529_v50 }
 0xbd4   :  { %v2537_v5 = vrot.slane %v2533_v3, %v6821_v54  ;;  %v2540_v6 = vrot.slane %v2533_v3, 2  ;;  %v2713_v31 = vrot.slane %v2533_v3, 7 }
 0xbd6   :  { %5240 = vmatmul.mubr.msk.f32.vlgmr.msra.gmra.mrb[24].mxu0 %vm355_vm1, %v2540_v6  ;;  %5581 = vmatmul.mubr.msk.f32.vlgmr.msra.gmra.mrb[28].mxu1 %vm355_vm1, %v2540_v6  ;;  %v2538_v7 = vsel %vm157_vm5, %v2537_v5, %v2355_v20 }
 0xbd7   :  { %5929 = vmatpush1.bf16.msra.mxu0 %v7001_v61  ;;  %5936 = vmatpush3.bf16.msra.mxu1 %v7005_v59 }
 0xbd8   :  { %5931 = vmatprep.subr.bf16.mxu0 %v7003_v55  ;;  %5937 = vmatprep.subr.bf16.mxu1 %v6542_v22 }
 0xbd9   :  { %2790 = vmatprep.mubr.f32.mxu0 %v6541_v0  ;;  %5591 = vmatprep.mubr.msk.f32.mxu1 %vm6543_vm2, %v6541_v0 }
 0xbdb   :  { %5933 = vmatpush1.bf16.msra.mxu0 %v7013_v1  ;;  %5939 = vmatpush3.bf16.msra.mxu1 %v7018_v2 }
 0xbdc   :  { %5941 = vmatprep.subr.bf16.mxu0 %v6987_v14  ;;  %5948 = vmatprep.subr.bf16.mxu1 %v6542_v22 }
 0xca9   :  { %v2609_v8 = vpop.f32.mrb[24].mxu0  ;;  %v2680_v11 = vpop.f32.mrb[28].mxu1 }
 0xcaa   :  { %v2686_v12 = vrot.slane %v2609_v8, 5  ;;  %v2611_v15 = vpop.f32.mrb[25].mxu0  ;;  %v5582_v17 = vpop.f32.mrb[29].mxu1  ;;  %v2704_v30 = vadd.f32 %v2680_v11, %v7054_v26 }
 0xcab   :  { %v2687_v9 = vrot.slane %v2611_v15, 5 }
 0xcac   :  { %v2690_v18 = vadd.f32 %v2686_v12, %v7045_v13  ;;  %v2706_v28 = vrot.slane %v2704_v30, 5 }
 0xcad   :  { %v2691_v19 = vadd.f32 %v2687_v9, %v7048_v27 }
 0xcae   :  { %v5242_v16 = vmul.f32 -1.442695, %v2690_v18 }
 0xcaf   :  { %v5243_v21 = vmul.f32 -1.442695, %v2691_v19 }
 0xcb0   :  { %6238 = vpow2.f32 %v5242_v16 }
 0xcb1   :  { %6240 = vpow2.f32 %v5243_v21 }
 0xcba   :  { %v6239_v23 = vpop.eup %6238 }
 0xcbb   :  { %v6241_v24 = vpop.eup %6240  ;;  %v2698_v25 = vadd.f32 1.0, %v6239_v23 }
 0xcbc   :  { %v2699_v20 = vadd.f32 1.0, %v6241_v24 }
 0xcbd   :  { %6242 = vrcp.f32 %v2698_v25 }
 0xcbe   :  { %6244 = vrcp.f32 %v2699_v20 }
 0xcc7   :  { %v6243_v29 = vpop.eup %6242 }
 0xcc8   :  { %v6245_v37 = vpop.eup %6244  ;;  %v2708_v39 = vmul.f32 %v6243_v29, %v2706_v28 }
 0xcc9   :  { %v2715_v38 = vmul.f32 %v6245_v37, %v2713_v31  ;;  %v2711_v40 = vsub.f32 1.0, %v6245_v37 }
 0xcca   :  { %v2709_v41 = vadd.f32 %v2708_v39, %v7058_v34 }
 0xccc   :  { %6246 = vtanh.f32 %v2709_v41 }
 0xcd6   :  { %v6247_v42 = vpop.eup %6246 }
 0xcd7   :  { %v2712_v43 = vmul.f32 %v6247_v42, %v2711_v40 }
 0xcd9   :  { %v2716_v45 = vadd.f32 %v2715_v38, %v2712_v43 }
 0xcdb   :  { %v2723_v48 = vrot.slane %v2716_v45, 3  ;;  %v2720_v49 = vrot.slane %v2716_v45, %v6898_v58  ;;  %v2896_v15 = vrot.slane %v2716_v45, 7 }
 0xcdd   :  { %5244 = vmatmul.mubr.msk.f32.vlgmr.msra.gmra.mrb[26].mxu0 %vm355_vm1, %v2723_v48  ;;  %5592 = vmatmul.mubr.msk.f32.vlgmr.msra.gmra.mrb[30].mxu1 %vm355_vm1, %v2723_v48  ;;  %v2721_v56 = vsel %vm158_vm6, %v2720_v49, %v2538_v7 }
 0xcde   :  { %5943 = vmatpush1.bf16.msra.mxu0 %v7001_v61  ;;  %5950 = vmatpush3.bf16.msra.mxu1 %v7005_v59 }
 0xcdf   :  { %5945 = vmatprep.subr.bf16.mxu0 %v7003_v55  ;;  %5951 = vmatprep.subr.bf16.mxu1 %v6542_v22 }
 0xce0   :  { %2973 = vmatprep.mubr.f32.mxu0 %v6541_v0  ;;  %5602 = vmatprep.mubr.msk.f32.mxu1 %vm6543_vm2, %v6541_v0 }
 0xce2   :  { %5947 = vmatpush1.bf16.msra.mxu0 %v7013_v1  ;;  %5953 = vmatpush3.bf16.msra.mxu1 %v7018_v2 }
 0xce3   :  { %5955 = vmatprep.subr.bf16.mxu0 %v6987_v14  ;;  %5962 = vmatprep.subr.bf16.mxu1 %v6542_v22 }
 0xdb0   :  { %v2792_v51 = vpop.f32.mrb[26].mxu0  ;;  %v2863_v52 = vpop.f32.mrb[30].mxu1 }
 0xdb1   :  { %v2869_v53 = vrot.slane %v2792_v51, 4  ;;  %v2794_v47 = vpop.f32.mrb[27].mxu0  ;;  %v5593_v57 = vpop.f32.mrb[31].mxu1  ;;  %v2887_v8 = vadd.f32 %v2863_v52, %v7054_v26 }
 0xdb2   :  { %v2870_v4 = vrot.slane %v2794_v47, 4 }
 0xdb3   :  { %v2873_v60 = vadd.f32 %v2869_v53, %v7045_v13  ;;  %v2889_v11 = vrot.slane %v2887_v8, 4 }
 0xdb4   :  { %v2874_v62 = vadd.f32 %v2870_v4, %v7048_v27 }
 0xdb5   :  { %v5246_v63 = vmul.f32 -1.442695, %v2873_v60 }
 0xdb6   :  { %v5247_v50 = vmul.f32 -1.442695, %v2874_v62 }
 0xdb7   :  { %6248 = vpow2.f32 %v5246_v63 }
 0xdb8   :  { %6250 = vpow2.f32 %v5247_v50 }
 0xdc1   :  { %v6249_v3 = vpop.eup %6248 }
 0xdc2   :  { %v6251_v5 = vpop.eup %6250  ;;  %v2881_v6 = vadd.f32 1.0, %v6249_v3 }
 0xdc3   :  { %v2882_v7 = vadd.f32 1.0, %v6251_v5 }
 0xdc4   :  { %6252 = vrcp.f32 %v2881_v6 }
 0xdc5   :  { %6254 = vrcp.f32 %v2882_v7 }
 0xdce   :  { %v6253_v12 = vpop.eup %6252 }
 0xdcf   :  { %v6255_v17 = vpop.eup %6254  ;;  %v2891_v9 = vmul.f32 %v6253_v12, %v2889_v11 }
 0xdd0   :  { %v2898_v18 = vmul.f32 %v6255_v17, %v2896_v15  ;;  %v2894_v16 = vsub.f32 1.0, %v6255_v17 }
 0xdd1   :  { %v2892_v19 = vadd.f32 %v2891_v9, %v7058_v34 }
 0xdd3   :  { %6256 = vtanh.f32 %v2892_v19 }
 0xddd   :  { %v6257_v21 = vpop.eup %6256 }
 0xdde   :  { %v2895_v23 = vmul.f32 %v6257_v21, %v2894_v16 }
 0xde0   :  { %v2899_v24 = vadd.f32 %v2898_v18, %v2895_v23 }
 0xde2   :  { %v2906_v25 = vrot.slane %v2899_v24, 4  ;;  %v2903_v20 = vrot.slane %v2899_v24, %v6922_v36  ;;  %v3079_v53 = vrot.slane %v2899_v24, 7 }
 0xde4   :  { %5248 = vmatmul.mubr.msk.f32.vlgmr.msra.gmra.mrb[28].mxu0 %vm355_vm1, %v2906_v25  ;;  %5603 = vmatmul.mubr.msk.f32.vlgmr.msra.gmra.mrb[32].mxu1 %vm355_vm1, %v2906_v25  ;;  %v2904_v30 = vsel %vm159_vm7, %v2903_v20, %v2721_v56 }
 0xde5   :  { %5957 = vmatpush1.bf16.msra.mxu0 %v7001_v61  ;;  %5964 = vmatpush3.bf16.msra.mxu1 %v7005_v59 }
 0xde6   :  { %5959 = vmatprep.subr.bf16.mxu0 %v7003_v55  ;;  %5965 = vmatprep.subr.bf16.mxu1 %v6542_v22 }
 0xde7   :  { %3156 = vmatprep.mubr.f32.mxu0 %v6541_v0  ;;  %5613 = vmatprep.mubr.msk.f32.mxu1 %vm6543_vm2, %v6541_v0 }
 0xde9   :  { %5961 = vmatpush1.bf16.msra.mxu0 %v7013_v1  ;;  %5967 = vmatpush3.bf16.msra.mxu1 %v7018_v2 }
 0xdea   :  { %5969 = vmatprep.subr.bf16.mxu0 %v6987_v14  ;;  %5976 = vmatprep.subr.bf16.mxu1 %v6542_v22 }
 0xeb7   :  { %v2975_v28 = vpop.f32.mrb[28].mxu0  ;;  %v3046_v29 = vpop.f32.mrb[32].mxu1 }
 0xeb8   :  { %v3052_v31 = vrot.slane %v2975_v28, 3  ;;  %v2977_v37 = vpop.f32.mrb[29].mxu0  ;;  %v5604_v39 = vpop.f32.mrb[33].mxu1  ;;  %v3070_v56 = vadd.f32 %v3046_v29, %v7054_v26 }
 0xeb9   :  { %v3053_v38 = vrot.slane %v2977_v37, 3 }
 0xeba   :  { %v3056_v41 = vadd.f32 %v3052_v31, %v7045_v13  ;;  %v3072_v51 = vrot.slane %v3070_v56, 3  ;;  %v3459_v56 = vld [vmem:[#allocation15 + $0x10] sm:$0xff] }
 0xebb   :  { %v3057_v40 = vadd.f32 %v3053_v38, %v7048_v27 }
 0xebc   :  { %v5250_v42 = vmul.f32 -1.442695, %v3056_v41 }
 0xebd   :  { %v5251_v43 = vmul.f32 -1.442695, %v3057_v40 }
 0xebe   :  { %6258 = vpow2.f32 %v5250_v42 }
 0xebf   :  { %6260 = vpow2.f32 %v5251_v43  ;;  %v3458_v43 = vld [vmem:[#allocation15 + $0x8] sm:$0xff] }
 0xec8   :  { %v6259_v45 = vpop.eup %6258 }
 0xec9   :  { %v6261_v48 = vpop.eup %6260  ;;  %v3064_v49 = vadd.f32 1.0, %v6259_v45  ;;  %v3461_v45 = vld [vmem:[#allocation15 + $0x20] sm:$0xff] }
 0xeca   :  { %v3065_v14 = vadd.f32 1.0, %v6261_v48  ;;  %v3457_v48 = vld [vmem:[#allocation15] sm:$0xff] }
 0xecb   :  { %6262 = vrcp.f32 %v3064_v49  ;;  %v5982_v49 = vpack.c.bf16 %v3461_v45, %v3458_v43  ;;  %v3643_v45 = vld [vmem:[#allocation16 + $0x50] sm:$0xff] }
 0xecc   :  { %6264 = vrcp.f32 %v3065_v14  ;;  %v3460_v14 = vld [vmem:[#allocation15 + $0x18] sm:$0xff] }
 0xed5   :  { %v6263_v52 = vpop.eup %6262 }
 0xed6   :  { %v6265_v47 = vpop.eup %6264  ;;  %v3074_v57 = vmul.f32 %v6263_v52, %v3072_v51  ;;  %v3462_v51 = vld [vmem:[#allocation15 + $0x28] sm:$0xff]  ;;  %v5984_v52 = vpack.c.bf16 %v3460_v14, %v3457_v48  ;;  %v3635_v48 = vld [vmem:[#allocation16 + $0x10] sm:$0xff] }
 0xed7   :  { %v3081_v4 = vmul.f32 %v6265_v47, %v3079_v53  ;;  %v3077_v62 = vsub.f32 1.0, %v6265_v47  ;;  %v5991_v53 = vpack.c.bf16 %v3462_v51, %v3459_v56  ;;  %v3464_v47 = vld [vmem:[#allocation15 + $0x38] sm:$0xff]  ;;  %v3639_v56 = vld [vmem:[#allocation16 + $0x30] sm:$0xff] }
 0xed8   :  { %v3075_v60 = vadd.f32 %v3074_v57, %v7058_v34  ;;  %v3467_v57 = vld [vmem:[#allocation15 + $0x50] sm:$0xff] }
 0xeda   :  { %6266 = vtanh.f32 %v3075_v60  ;;  %v5986_v60 = vpack.c.bf16 %v3467_v57, %v3464_v47  ;;  %v3644_v47 = vld [vmem:[#allocation16 + $0x58] sm:$0xff] }
 0xee4   :  { %v6267_v63 = vpop.eup %6266 }
 0xee5   :  { %v3078_v50 = vmul.f32 %v6267_v63, %v3077_v62  ;;  %v3466_v62 = vld [vmem:[#allocation15 + $0x48] sm:$0xff]  ;;  %v3465_v63 = vld [vmem:[#allocation15 + $0x40] sm:$0xff] }
 0xee7   :  { %v3082_v3 = vadd.f32 %v3081_v4, %v3078_v50  ;;  %v3463_v4 = vld [vmem:[#allocation15 + $0x30] sm:$0xff]  ;;  %v3468_v50 = vld [vmem:[#allocation15 + $0x58] sm:$0xff] }
 0xee9   :  { %v3089_v5 = vrot.slane %v3082_v3, 5  ;;  %v3086_v6 = vrot.slane %v3082_v3, %v6946_v10  ;;  %v3262_v25 = vrot.slane %v3082_v3, 7  ;;  %v5988_v3 = vpack.c.bf16 %v3466_v62, %v3463_v4 }
 0xeeb   :  { %5252 = vmatmul.mubr.msk.f32.vlgmr.msra.gmra.mrb[30].mxu0 %vm355_vm1, %v3089_v5  ;;  %5614 = vmatmul.mubr.msk.f32.vlgmr.msra.gmra.mrb[34].mxu1 %vm355_vm1, %v3089_v5  ;;  %v3087_v7 = vsel %vm160_vm8, %v3086_v6, %v2904_v30  ;;  %v5994_v5 = vpack.c.bf16 %v3468_v50, %v3465_v63  ;;  %v3634_v6 = vld [vmem:[#allocation16 + $0x8] sm:$0xff] }
 0xeec   :  { %5971 = vmatpush1.bf16.msra.mxu0 %v7001_v61  ;;  %5978 = vmatpush3.bf16.msra.mxu1 %v7005_v59 }
 0xeed   :  { %5973 = vmatprep.subr.bf16.mxu0 %v7003_v55  ;;  %5979 = vmatprep.subr.bf16.mxu1 %v6542_v22 }
 0xeee   :  { %3339 = vmatprep.mubr.f32.mxu0 %v6541_v0  ;;  %5624 = vmatprep.mubr.msk.f32.mxu1 %vm6543_vm2, %v6541_v0 }
 0xef0   :  { %5975 = vmatpush1.bf16.msra.mxu0 %v7013_v1  ;;  %5981 = vmatpush3.bf16.msra.mxu1 %v7018_v2 }
 0xef1   :  { %5990 = vmatprep.subr.bf16.mxu1 %v6542_v22  ;;  %5983 = vmatprep.subr.bf16.mxu0 %v5982_v49 }
 0xfbe   :  { %v3158_v8 = vpop.f32.mrb[30].mxu0  ;;  %v3229_v11 = vpop.f32.mrb[34].mxu1 }
 0xfbf   :  { %v3235_v61 = vrot.slane %v3158_v8, 2  ;;  %v3160_v12 = vpop.f32.mrb[31].mxu0  ;;  %v5615_v59 = vpop.f32.mrb[35].mxu1  ;;  %v3253_v21 = vadd.f32 %v3229_v11, %v7054_v26 }
 0xfc0   :  { %v3236_v15 = vrot.slane %v3160_v12, 2 }
 0xfc1   :  { %v3239_v55 = vadd.f32 %v3235_v61, %v7045_v13  ;;  %v3255_v23 = vrot.slane %v3253_v21, 2 }
 0xfc2   :  { %v3240_v17 = vadd.f32 %v3236_v15, %v7048_v27 }
 0xfc3   :  { %v5254_v9 = vmul.f32 -1.442695, %v3239_v55 }
 0xfc4   :  { %v5255_v18 = vmul.f32 -1.442695, %v3240_v17 }
 0xfc5   :  { %6268 = vpow2.f32 %v5254_v9 }
 0xfc6   :  { %6270 = vpow2.f32 %v5255_v18 }
 0xfcf   :  { %v6269_v19 = vpop.eup %6268 }
 0xfd0   :  { %v6271_v1 = vpop.eup %6270  ;;  %v3247_v16 = vadd.f32 1.0, %v6269_v19 }
 0xfd1   :  { %v3248_v2 = vadd.f32 1.0, %v6271_v1 }
 0xfd2   :  { %6272 = vrcp.f32 %v3247_v16 }
 0xfd3   :  { %6274 = vrcp.f32 %v3248_v2 }
 0xfdc   :  { %v6273_v24 = vpop.eup %6272 }
 0xfdd   :  { %v6275_v20 = vpop.eup %6274  ;;  %v3257_v30 = vmul.f32 %v6273_v24, %v3255_v23 }
 0xfde   :  { %v3264_v28 = vmul.f32 %v6275_v20, %v3262_v25  ;;  %v3260_v31 = vsub.f32 1.0, %v6275_v20 }
 0xfdf   :  { %v3258_v29 = vadd.f32 %v3257_v30, %v7058_v34 }
 0xfe1   :  { %6276 = vtanh.f32 %v3258_v29 }
 0xfeb   :  { %v6277_v37 = vpop.eup %6276 }
 0xfec   :  { %v3261_v39 = vmul.f32 %v6277_v37, %v3260_v31 }
 0xfee   :  { %v7180_v38 = vadd.f32 %v3264_v28, %v3261_v39  ;;  %v3633_v39 = vld [vmem:[#allocation16] sm:$0xff] }
 0xff0   :  { %v3272_v41 = vrot.slane %v7180_v38, 6  ;;  %v3269_v40 = vrot.slane %v7180_v38, %v6969_v46  ;;  %v3445_v20 = vrot.slane %v7180_v38, 7 }
 0xff2   :  { %5256 = vmatmul.mubr.msk.f32.vlgmr.msra.gmra.mrb[32].mxu0 %vm355_vm1, %v3272_v41  ;;  %5625 = vmatmul.mubr.msk.f32.vlgmr.msra.gmra.mrb[36].mxu1 %vm355_vm1, %v3272_v41  ;;  %v7189_v42 = vsel %vm161_vm9, %v3269_v40, %v3087_v7  ;;  %v3637_v7 = vld [vmem:[#allocation16 + $0x20] sm:$0xff]  ;;  %v3636_v41 = vld [vmem:[#allocation16 + $0x18] sm:$0xff] }
 0xff3   :  { %3553 = vmatprep.mubr.f32.mxu0 %v6541_v0  ;;  %5635 = vmatprep.mubr.msk.f32.mxu1 %vm6543_vm2, %v6541_v0  ;;  %v7195_v8 = vpack.c.bf16 %v3637_v7, %v3634_v6  ;;  %v3640_v40 = vld [vmem:[#allocation16 + $0x38] sm:$0xff]  ;;  %v7205_v38 = vpack.c.bf16 %v3636_v41, %v3633_v39 }
 0xff4   :  { %5985 = vmatpush1.bf16.msra.mxu0 %v5984_v52  ;;  %5992 = vmatpush3.bf16.msra.mxu1 %v5991_v53  ;;  %v7207_v14 = vpack.c.bf16 %v3643_v45, %v3640_v40  ;;  %v3641_v53 = vld [vmem:[#allocation16 + $0x40] sm:$0xff] }
 0xff5   :  { %5987 = vmatprep.subr.bf16.mxu0 %v5986_v60  ;;  %5993 = vmatprep.subr.bf16.mxu1 %v6542_v22  ;;  %v7222_v4 = vpack.c.bf16 %v3644_v47, %v3641_v53  ;;  %v3469_v60 = vld [vmem:[%s7417_s11] sm:$0x7] }
 0xff6   :  { %v3478_v6 = vrot.slane %v3469_v60, %v6810_v35 }
 0xff8   :  { %5989 = vmatpush1.bf16.msra.mxu0 %v5988_v3  ;;  %5995 = vmatpush3.bf16.msra.mxu1 %v5994_v5  ;;  %v3474_v5 = vrot.slane %v3469_v60, %v6804_v33 }
 0xff9   :  { %5997 = vmatprep.subr.bf16.mxu0 %v7195_v8  ;;  %6004 = vmatprep.subr.bf16.mxu1 %v6542_v22 }
0x10c5   :  { %v3341_v11 = vpop.f32.mrb[32].mxu0  ;;  %v3412_v61 = vpop.f32.mrb[36].mxu1 }
0x10c6   :  { %v3418_v12 = vrot.slane %v3341_v11, 1  ;;  %v3343_v59 = vpop.f32.mrb[33].mxu0  ;;  %v5626_v15 = vpop.f32.mrb[37].mxu1  ;;  %v3436_v23 = vadd.f32 %v3412_v61, %v7054_v26  ;;  %v3638_v26 = vld [vmem:[#allocation16 + $0x28] sm:$0xff] }
0x10c7   :  { %v3419_v55 = vrot.slane %v3343_v59, 1  ;;  %v7209_v51 = vpack.c.bf16 %v3638_v26, %v3635_v48 }
0x10c8   :  { %v3422_v17 = vadd.f32 %v3418_v12, %v7045_v13  ;;  %v3438_v24 = vrot.slane %v3436_v23, 1 }
0x10c9   :  { %v3423_v9 = vadd.f32 %v3419_v55, %v7048_v27 }
0x10ca   :  { %v5258_v18 = vmul.f32 -1.442695, %v3422_v17 }
0x10cb   :  { %v5259_v19 = vmul.f32 -1.442695, %v3423_v9 }
0x10cc   :  { %6278 = vpow2.f32 %v5258_v18 }
0x10cd   :  { %6280 = vpow2.f32 %v5259_v19 }
0x10d6   :  { %v6279_v1 = vpop.eup %6278 }
0x10d7   :  { %v6281_v16 = vpop.eup %6280  ;;  %v3430_v2 = vadd.f32 1.0, %v6279_v1 }
0x10d8   :  { %v3431_v21 = vadd.f32 1.0, %v6281_v16 }
0x10d9   :  { %6282 = vrcp.f32 %v3430_v2  ;;  %v7258_v2 = vld [vmem:[%s7418_s12] sm:$0x1] }
0x10da   :  { %6284 = vrcp.f32 %v3431_v21  ;;  %v3482_v21 = vrot.slane %v3469_v60, %v6821_v54 }
0x10e3   :  { %v6283_v25 = vpop.eup %6282 }
0x10e4   :  { %v6285_v30 = vpop.eup %6284  ;;  %v3440_v13 = vmul.f32 %v6283_v25, %v3438_v24 }
0x10e5   :  { %v3447_v28 = vmul.f32 %v6285_v30, %v3445_v20  ;;  %v3443_v29 = vsub.f32 1.0, %v6285_v30 }
0x10e6   :  { %v3441_v27 = vadd.f32 %v3440_v13, %v7058_v34  ;;  %v3642_v34 = vld [vmem:[#allocation16 + $0x48] sm:$0xff] }
0x10e7   :  { %v7217_v57 = vpack.c.bf16 %v3642_v34, %v3639_v56 }
0x10e8   :  { %6286 = vtanh.f32 %v3441_v27 }
0x10f2   :  { %v6287_v31 = vpop.eup %6286 }
0x10f3   :  { %v3444_v37 = vmul.f32 %v6287_v31, %v3443_v29 }
0x10f5   :  { %v3448_v43 = vadd.f32 %v3447_v28, %v3444_v37 }
0x10f7   :  { %v3452_v49 = vrot.slane %v3448_v43, %v6997_v44  ;;  %3455 = vst [vmem:[#allocation5 - $0x7] sm:$0x80] %v3448_v43 }
0x10f9   :  { %v3453_v52 = vsel %vm162_vm10, %v3452_v49, %v7189_v42  ;;  %v3646_v42 = vld [vmem:[#allocation6] sm:$0x1] }
0x10fa   :  { %5260 = vmatmul.mubr.msk.f32.vlgmr.msra.gmra.mrb[34].mxu0 %vm355_vm1, %v3453_v52  ;;  %5636 = vmatmul.mubr.msk.f32.vlgmr.msra.gmra.mrb[38].mxu1 %vm355_vm1, %v3453_v52 }
0x10fb   :  { %5999 = vmatpush1.bf16.msra.mxu0 %v7205_v38  ;;  %3717 = vmatprep.mubr.f32.mxu0 %v6541_v0 }
0x10fc   :  { %6001 = vmatprep.subr.bf16.mxu0 %v7207_v14  ;;  %6006 = vmatpush3.bf16.msra.mxu1 %v7209_v51 }
0x10fd   :  { %6007 = vmatprep.subr.bf16.mxu1 %v6542_v22  ;;  %5646 = vmatprep.mubr.msk.f32.mxu1 %vm6543_vm2, %v6541_v0 }
0x10ff   :  { %6003 = vmatpush1.bf16.msra.mxu0 %v7217_v57 }
0x1100   :  { %6009 = vmatpush3.bf16.msra.mxu1 %v7222_v4  ;;  %6011 = vmatprep.subr.bf16.mxu0 %v7195_v8 }
0x1101   :  { %6018 = vmatprep.subr.bf16.mxu1 %v6542_v22 }
0x1102   :  { %5262 = vmatmul.mubr.msk.f32.vlgmr.msra.gmra.mrb[36].mxu0 %vm355_vm1, %v3646_v42 }
0x1103   :  { %5647 = vmatmul.mubr.msk.f32.vlgmr.msra.gmra.mrb[40].mxu1 %vm355_vm1, %v3646_v42  ;;  %6013 = vmatpush1.bf16.msra.mxu0 %v7205_v38 }
0x1104   :  { %6020 = vmatpush3.bf16.msra.mxu1 %v7209_v51  ;;  %6015 = vmatprep.subr.bf16.mxu0 %v7207_v14 }
0x1105   :  { %6021 = vmatprep.subr.bf16.mxu1 %v6542_v22  ;;  %3888 = vmatprep.mubr.f32.mxu0 %v6541_v0 }
0x1106   :  { %5657 = vmatprep.mubr.msk.f32.mxu1 %vm6543_vm2, %v6541_v0 }
0x1107   :  { %6017 = vmatpush1.bf16.msra.mxu0 %v7217_v57 }
0x1108   :  { %6023 = vmatpush3.bf16.msra.mxu1 %v7222_v4  ;;  %6025 = vmatprep.subr.bf16.mxu0 %v7195_v8 }
0x1109   :  { %6032 = vmatprep.subr.bf16.mxu1 %v6542_v22 }
0x11cd   :  { %v3555_v62 = vpop.f32.mrb[34].mxu0  ;;  %v3626_v63 = vpop.f32.mrb[38].mxu1 }
0x11ce   :  { %v3557_v50 = vpop.f32.mrb[35].mxu0  ;;  %v5637_v3 = vpop.f32.mrb[39].mxu1  ;;  %v7249_v7 = vadd.f32 %v3555_v62, %v3474_v5  ;;  %v7262_v20 = vadd.f32 %v3626_v63, %v3482_v21 }
0x11cf   :  { %v7252_v15 = vadd.f32 %v3557_v50, %v3478_v6 }
0x11d5   :  { %v3719_v11 = vpop.f32.mrb[36].mxu0 }
0x11d6   :  { %v3794_v61 = vadd.f32 %v3719_v11, %v7249_v7  ;;  %v3721_v12 = vpop.f32.mrb[37].mxu0  ;;  %v3790_v59 = vpop.f32.mrb[40].mxu1 }
0x11d7   :  { %v5648_v55 = vpop.f32.mrb[41].mxu1  ;;  %v3795_v9 = vadd.f32 %v3721_v12, %v7252_v15  ;;  %v3808_v24 = vadd.f32 %v3790_v59, %v7258_v2 }
0x11d8   :  { %v5264_v17 = vmul.f32 -1.442695, %v3794_v61 }
0x11d9   :  { %v5265_v18 = vmul.f32 -1.442695, %v3795_v9 }
0x11da   :  { %6288 = vpow2.f32 %v5264_v17 }
0x11db   :  { %6290 = vpow2.f32 %v5265_v18 }
0x11e4   :  { %v6289_v19 = vpop.eup %6288 }
0x11e5   :  { %v3802_v1 = vadd.f32 1.0, %v6289_v19  ;;  %v6291_v16 = vpop.eup %6290 }
0x11e6   :  { %v3803_v23 = vadd.f32 1.0, %v6291_v16 }
0x11e7   :  { %6292 = vrcp.f32 %v3802_v1 }
0x11e8   :  { %6294 = vrcp.f32 %v3803_v23 }
0x11f1   :  { %v6293_v25 = vpop.eup %6292 }
0x11f2   :  { %v3809_v30 = vmul.f32 %v6293_v25, %v3808_v24  ;;  %v6295_v28 = vpop.eup %6294 }
0x11f3   :  { %v3812_v27 = vsub.f32 1.0, %v6295_v28  ;;  %v3814_v37 = vmul.f32 %v6295_v28, %v3646_v42 }
0x11f4   :  { %v3810_v13 = vadd.f32 %v3809_v30, %v7262_v20 }
0x11f6   :  { %6296 = vtanh.f32 %v3810_v13 }
0x1200   :  { %v6297_v29 = vpop.eup %6296 }
0x1201   :  { %v3813_v31 = vmul.f32 %v6297_v29, %v3812_v27 }
0x1203   :  { %v3815_v39 = vadd.f32 %v3814_v37, %v3813_v31 }
0x1205   :  { %5266 = vmatmul.mubr.msk.f32.vlgmr.msra.gmra.mrb[38].mxu0 %vm355_vm1, %v3815_v39  ;;  %5658 = vmatmul.mubr.msk.f32.vlgmr.msra.gmra.mrb[42].mxu1 %vm355_vm1, %v3815_v39  ;;  %v3994_v3 = vrot.slane %v3815_v39, 7  ;;  %v3819_v17 = vrot.slane %v3815_v39, %v6804_v33 }
0x1206   :  { %6027 = vmatpush1.bf16.msra.mxu0 %v7205_v38  ;;  %6034 = vmatpush3.bf16.msra.mxu1 %v7209_v51 }
0x1207   :  { %6029 = vmatprep.subr.bf16.mxu0 %v7207_v14  ;;  %6035 = vmatprep.subr.bf16.mxu1 %v6542_v22  ;;  %v3820_v1 = vsel %vm155_vm3, %v3819_v17, 0.0 }
0x1208   :  { %4071 = vmatprep.mubr.f32.mxu0 %v6541_v0  ;;  %5668 = vmatprep.mubr.msk.f32.mxu1 %vm6543_vm2, %v6541_v0 }
0x120a   :  { %6031 = vmatpush1.bf16.msra.mxu0 %v7217_v57  ;;  %6037 = vmatpush3.bf16.msra.mxu1 %v7222_v4 }
0x120b   :  { %6039 = vmatprep.subr.bf16.mxu0 %v7195_v8  ;;  %6046 = vmatprep.subr.bf16.mxu1 %v6542_v22 }
0x12d8   :  { %v3890_v41 = vpop.f32.mrb[38].mxu0  ;;  %v3961_v40 = vpop.f32.mrb[42].mxu1 }
0x12d9   :  { %v3967_v43 = vrot.slane %v3890_v41, 7  ;;  %v3892_v45 = vpop.f32.mrb[39].mxu0  ;;  %v5659_v48 = vpop.f32.mrb[43].mxu1  ;;  %v3985_v62 = vadd.f32 %v3961_v40, %v7258_v2 }
0x12da   :  { %v3968_v26 = vrot.slane %v3892_v45, 7 }
0x12db   :  { %v3971_v49 = vadd.f32 %v3967_v43, %v7249_v7  ;;  %v3987_v63 = vrot.slane %v3985_v62, 7 }
0x12dc   :  { %v3972_v56 = vadd.f32 %v3968_v26, %v7252_v15 }
0x12dd   :  { %v5268_v34 = vmul.f32 -1.442695, %v3971_v49 }
0x12de   :  { %v5269_v52 = vmul.f32 -1.442695, %v3972_v56 }
0x12df   :  { %6298 = vpow2.f32 %v5268_v34 }
0x12e0   :  { %6300 = vpow2.f32 %v5269_v52 }
0x12e9   :  { %v6299_v53 = vpop.eup %6298 }
0x12ea   :  { %v6301_v47 = vpop.eup %6300  ;;  %v3979_v42 = vadd.f32 1.0, %v6299_v53 }
0x12eb   :  { %v3980_v60 = vadd.f32 1.0, %v6301_v47 }
0x12ec   :  { %6302 = vrcp.f32 %v3979_v42 }
0x12ed   :  { %6304 = vrcp.f32 %v3980_v60 }
0x12f6   :  { %v6303_v50 = vpop.eup %6302 }
0x12f7   :  { %v6305_v5 = vpop.eup %6304  ;;  %v3989_v6 = vmul.f32 %v6303_v50, %v3987_v63 }
0x12f8   :  { %v3996_v11 = vmul.f32 %v6305_v5, %v3994_v3  ;;  %v3992_v12 = vsub.f32 1.0, %v6305_v5 }
0x12f9   :  { %v3990_v61 = vadd.f32 %v3989_v6, %v7262_v20 }
0x12fb   :  { %6306 = vtanh.f32 %v3990_v61 }
0x1305   :  { %v6307_v59 = vpop.eup %6306 }
0x1306   :  { %v3993_v55 = vmul.f32 %v6307_v59, %v3992_v12 }
0x1308   :  { %v3997_v9 = vadd.f32 %v3996_v11, %v3993_v55 }
0x130a   :  { %v4001_v18 = vrot.slane %v3997_v9, %v6810_v35  ;;  %v4004_v19 = vrot.slane %v3997_v9, 1  ;;  %v4177_v45 = vrot.slane %v3997_v9, 7 }
0x130c   :  { %5270 = vmatmul.mubr.msk.f32.vlgmr.msra.gmra.mrb[40].mxu0 %vm355_vm1, %v4004_v19  ;;  %5669 = vmatmul.mubr.msk.f32.vlgmr.msra.gmra.mrb[44].mxu1 %vm355_vm1, %v4004_v19  ;;  %v4002_v16 = vsel %vm156_vm4, %v4001_v18, %v3820_v1 }
0x130d   :  { %6041 = vmatpush1.bf16.msra.mxu0 %v7205_v38  ;;  %6048 = vmatpush3.bf16.msra.mxu1 %v7209_v51 }
0x130e   :  { %6043 = vmatprep.subr.bf16.mxu0 %v7207_v14  ;;  %6049 = vmatprep.subr.bf16.mxu1 %v6542_v22 }
0x130f   :  { %4254 = vmatprep.mubr.f32.mxu0 %v6541_v0  ;;  %5679 = vmatprep.mubr.msk.f32.mxu1 %vm6543_vm2, %v6541_v0 }
0x1311   :  { %6045 = vmatpush1.bf16.msra.mxu0 %v7217_v57  ;;  %6051 = vmatpush3.bf16.msra.mxu1 %v7222_v4 }
0x1312   :  { %6053 = vmatprep.subr.bf16.mxu0 %v7195_v8  ;;  %6060 = vmatprep.subr.bf16.mxu1 %v6542_v22 }
0x13df   :  { %v4073_v33 = vpop.f32.mrb[40].mxu0  ;;  %v4144_v35 = vpop.f32.mrb[44].mxu1 }
0x13e0   :  { %v4150_v21 = vrot.slane %v4073_v33, 6  ;;  %v4075_v23 = vpop.f32.mrb[41].mxu0  ;;  %v5670_v24 = vpop.f32.mrb[45].mxu1  ;;  %v4168_v41 = vadd.f32 %v4144_v35, %v7258_v2 }
0x13e1   :  { %v4151_v25 = vrot.slane %v4075_v23, 6 }
0x13e2   :  { %v4154_v30 = vadd.f32 %v4150_v21, %v7249_v7  ;;  %v4170_v40 = vrot.slane %v4168_v41, 6 }
0x13e3   :  { %v4155_v13 = vadd.f32 %v4151_v25, %v7252_v15 }
0x13e4   :  { %v5272_v28 = vmul.f32 -1.442695, %v4154_v30 }
0x13e5   :  { %v5273_v27 = vmul.f32 -1.442695, %v4155_v13 }
0x13e6   :  { %6308 = vpow2.f32 %v5272_v28 }
0x13e7   :  { %6310 = vpow2.f32 %v5273_v27 }
0x13f0   :  { %v6309_v29 = vpop.eup %6308 }
0x13f1   :  { %v6311_v31 = vpop.eup %6310  ;;  %v4162_v37 = vadd.f32 1.0, %v6309_v29 }
0x13f2   :  { %v4163_v39 = vadd.f32 1.0, %v6311_v31 }
0x13f3   :  { %6312 = vrcp.f32 %v4162_v37 }
0x13f4   :  { %6314 = vrcp.f32 %v4163_v39 }
0x13fd   :  { %v6313_v43 = vpop.eup %6312 }
0x13fe   :  { %v6315_v48 = vpop.eup %6314  ;;  %v4172_v26 = vmul.f32 %v6313_v43, %v4170_v40 }
0x13ff   :  { %v4179_v49 = vmul.f32 %v6315_v48, %v4177_v45  ;;  %v4175_v34 = vsub.f32 1.0, %v6315_v48 }
0x1400   :  { %v4173_v56 = vadd.f32 %v4172_v26, %v7262_v20 }
0x1402   :  { %6316 = vtanh.f32 %v4173_v56 }
0x140c   :  { %v6317_v52 = vpop.eup %6316 }
0x140d   :  { %v4176_v53 = vmul.f32 %v6317_v52, %v4175_v34 }
0x140f   :  { %v4180_v47 = vadd.f32 %v4179_v49, %v4176_v53 }
0x1411   :  { %v4184_v42 = vrot.slane %v4180_v47, %v6821_v54  ;;  %v4187_v60 = vrot.slane %v4180_v47, 2  ;;  %v4360_v33 = vrot.slane %v4180_v47, 7 }
0x1413   :  { %5274 = vmatmul.mubr.msk.f32.vlgmr.msra.gmra.mrb[42].mxu0 %vm355_vm1, %v4187_v60  ;;  %5680 = vmatmul.mubr.msk.f32.vlgmr.msra.gmra.mrb[46].mxu1 %vm355_vm1, %v4187_v60  ;;  %v4185_v62 = vsel %vm157_vm5, %v4184_v42, %v4002_v16 }
0x1414   :  { %6055 = vmatpush1.bf16.msra.mxu0 %v7205_v38  ;;  %6062 = vmatpush3.bf16.msra.mxu1 %v7209_v51 }
0x1415   :  { %6057 = vmatprep.subr.bf16.mxu0 %v7207_v14  ;;  %6063 = vmatprep.subr.bf16.mxu1 %v6542_v22 }
0x1416   :  { %4437 = vmatprep.mubr.f32.mxu0 %v6541_v0  ;;  %5690 = vmatprep.mubr.msk.f32.mxu1 %vm6543_vm2, %v6541_v0 }
0x1418   :  { %6059 = vmatpush1.bf16.msra.mxu0 %v7217_v57  ;;  %6065 = vmatpush3.bf16.msra.mxu1 %v7222_v4 }
0x1419   :  { %6067 = vmatprep.subr.bf16.mxu0 %v7195_v8  ;;  %6074 = vmatprep.subr.bf16.mxu1 %v6542_v22 }
0x14e6   :  { %v4256_v54 = vpop.f32.mrb[42].mxu0  ;;  %v4327_v63 = vpop.f32.mrb[46].mxu1 }
0x14e7   :  { %v4333_v50 = vrot.slane %v4256_v54, 5  ;;  %v4258_v3 = vpop.f32.mrb[43].mxu0  ;;  %v5681_v5 = vpop.f32.mrb[47].mxu1  ;;  %v4351_v19 = vadd.f32 %v4327_v63, %v7258_v2 }
0x14e8   :  { %v4334_v6 = vrot.slane %v4258_v3, 5 }
0x14e9   :  { %v4337_v11 = vadd.f32 %v4333_v50, %v7249_v7  ;;  %v4353_v1 = vrot.slane %v4351_v19, 5 }
0x14ea   :  { %v4338_v61 = vadd.f32 %v4334_v6, %v7252_v15 }
0x14eb   :  { %v5276_v12 = vmul.f32 -1.442695, %v4337_v11 }
0x14ec   :  { %v5277_v59 = vmul.f32 -1.442695, %v4338_v61 }
0x14ed   :  { %6318 = vpow2.f32 %v5276_v12 }
0x14ee   :  { %6320 = vpow2.f32 %v5277_v59 }
0x14f7   :  { %v6319_v55 = vpop.eup %6318 }
0x14f8   :  { %v6321_v17 = vpop.eup %6320  ;;  %v4345_v9 = vadd.f32 1.0, %v6319_v55 }
0x14f9   :  { %v4346_v18 = vadd.f32 1.0, %v6321_v17 }
0x14fa   :  { %6322 = vrcp.f32 %v4345_v9 }
0x14fb   :  { %6324 = vrcp.f32 %v4346_v18 }
0x1504   :  { %v6323_v16 = vpop.eup %6322 }
0x1505   :  { %v6325_v35 = vpop.eup %6324  ;;  %v4355_v21 = vmul.f32 %v6323_v16, %v4353_v1 }
0x1506   :  { %v4362_v23 = vmul.f32 %v6325_v35, %v4360_v33  ;;  %v4358_v25 = vsub.f32 1.0, %v6325_v35 }
0x1507   :  { %v4356_v24 = vadd.f32 %v4355_v21, %v7262_v20 }
0x1509   :  { %6326 = vtanh.f32 %v4356_v24 }
0x1513   :  { %v6327_v30 = vpop.eup %6326 }
0x1514   :  { %v4359_v13 = vmul.f32 %v6327_v30, %v4358_v25 }
0x1516   :  { %v4363_v28 = vadd.f32 %v4362_v23, %v4359_v13 }
0x1518   :  { %v4370_v27 = vrot.slane %v4363_v28, 3  ;;  %v4367_v29 = vrot.slane %v4363_v28, %v6898_v58 }
0x151a   :  { %5278 = vmatmul.mubr.msk.f32.vlgmr.msra.gmra.mrb[44].mxu0 %vm355_vm1, %v4370_v27  ;;  %5691 = vmatmul.mubr.msk.f32.vlgmr.msra.gmra.mrb[48].mxu1 %vm355_vm1, %v4370_v27  ;;  %v4368_v31 = vsel %vm158_vm6, %v4367_v29, %v4185_v62  ;;  %v4543_v62 = vrot.slane %v4363_v28, 7 }
0x151b   :  { %6069 = vmatpush1.bf16.msra.mxu0 %v7205_v38  ;;  %6076 = vmatpush3.bf16.msra.mxu1 %v7209_v51 }
0x151c   :  { %6071 = vmatprep.subr.bf16.mxu0 %v7207_v14  ;;  %6077 = vmatprep.subr.bf16.mxu1 %v6542_v22 }
0x151d   :  { %4620 = vmatprep.mubr.f32.mxu0 %v6541_v0  ;;  %5701 = vmatprep.mubr.msk.f32.mxu1 %vm6543_vm2, %v6541_v0 }
0x151f   :  { %6073 = vmatpush1.bf16.msra.mxu0 %v7217_v57  ;;  %6079 = vmatpush3.bf16.msra.mxu1 %v7222_v4 }
0x1520   :  { %6081 = vmatprep.subr.bf16.mxu0 %v7195_v8  ;;  %6088 = vmatprep.subr.bf16.mxu1 %v6542_v22 }
0x15ed   :  { %v4439_v58 = vpop.f32.mrb[44].mxu0  ;;  %v4510_v37 = vpop.f32.mrb[48].mxu1 }
0x15ee   :  { %v4516_v39 = vrot.slane %v4439_v58, 4  ;;  %v4441_v41 = vpop.f32.mrb[45].mxu0  ;;  %v5692_v40 = vpop.f32.mrb[49].mxu1  ;;  %v4534_v47 = vadd.f32 %v4510_v37, %v7258_v2 }
0x15ef   :  { %v4517_v43 = vrot.slane %v4441_v41, 4 }
0x15f0   :  { %v4520_v45 = vadd.f32 %v4516_v39, %v7249_v7  ;;  %v4536_v42 = vrot.slane %v4534_v47, 4 }
0x15f1   :  { %v4521_v48 = vadd.f32 %v4517_v43, %v7252_v15 }
0x15f2   :  { %v5280_v26 = vmul.f32 -1.442695, %v4520_v45 }
0x15f3   :  { %v5281_v49 = vmul.f32 -1.442695, %v4521_v48 }
0x15f4   :  { %6328 = vpow2.f32 %v5280_v26 }
0x15f5   :  { %6330 = vpow2.f32 %v5281_v49 }
0x15fe   :  { %v6329_v56 = vpop.eup %6328 }
0x15ff   :  { %v6331_v34 = vpop.eup %6330  ;;  %v4528_v52 = vadd.f32 1.0, %v6329_v56 }
0x1600   :  { %v4529_v53 = vadd.f32 1.0, %v6331_v34 }
0x1601   :  { %6332 = vrcp.f32 %v4528_v52 }
0x1602   :  { %6334 = vrcp.f32 %v4529_v53 }
0x160b   :  { %v6333_v60 = vpop.eup %6332 }
0x160c   :  { %v6335_v54 = vpop.eup %6334  ;;  %v4538_v63 = vmul.f32 %v6333_v60, %v4536_v42 }
0x160d   :  { %v4545_v50 = vmul.f32 %v6335_v54, %v4543_v62  ;;  %v4541_v5 = vsub.f32 1.0, %v6335_v54 }
0x160e   :  { %v4539_v3 = vadd.f32 %v4538_v63, %v7262_v20 }
0x1610   :  { %6336 = vtanh.f32 %v4539_v3 }
0x161a   :  { %v6337_v6 = vpop.eup %6336 }
0x161b   :  { %v4542_v11 = vmul.f32 %v6337_v6, %v4541_v5 }
0x161d   :  { %v4546_v61 = vadd.f32 %v4545_v50, %v4542_v11 }
0x161f   :  { %v4553_v12 = vrot.slane %v4546_v61, 4  ;;  %v4550_v59 = vrot.slane %v4546_v61, %v6922_v36  ;;  %v4726_v27 = vrot.slane %v4546_v61, 7 }
0x1621   :  { %5282 = vmatmul.mubr.msk.f32.vlgmr.msra.gmra.mrb[46].mxu0 %vm355_vm1, %v4553_v12  ;;  %5702 = vmatmul.mubr.msk.f32.vlgmr.msra.gmra.mrb[50].mxu1 %vm355_vm1, %v4553_v12  ;;  %v4551_v55 = vsel %vm159_vm7, %v4550_v59, %v4368_v31 }
0x1622   :  { %6083 = vmatpush1.bf16.msra.mxu0 %v7205_v38  ;;  %6090 = vmatpush3.bf16.msra.mxu1 %v7209_v51 }
0x1623   :  { %6085 = vmatprep.subr.bf16.mxu0 %v7207_v14  ;;  %6091 = vmatprep.subr.bf16.mxu1 %v6542_v22 }
0x1624   :  { %4803 = vmatprep.mubr.f32.mxu0 %v6541_v0  ;;  %5712 = vmatprep.mubr.msk.f32.mxu1 %vm6543_vm2, %v6541_v0 }
0x1626   :  { %6087 = vmatpush1.bf16.msra.mxu0 %v7217_v57  ;;  %6093 = vmatpush3.bf16.msra.mxu1 %v7222_v4 }
0x1627   :  { %6095 = vmatprep.subr.bf16.mxu0 %v7195_v8  ;;  %6102 = vmatprep.subr.bf16.mxu1 %v6542_v22 }
0x16f4   :  { %v4622_v36 = vpop.f32.mrb[46].mxu0  ;;  %v4693_v17 = vpop.f32.mrb[50].mxu1 }
0x16f5   :  { %v4699_v9 = vrot.slane %v4622_v36, 3  ;;  %v4624_v18 = vpop.f32.mrb[47].mxu0  ;;  %v5703_v19 = vpop.f32.mrb[51].mxu1  ;;  %v4717_v30 = vadd.f32 %v4693_v17, %v7258_v2 }
0x16f6   :  { %v4700_v1 = vrot.slane %v4624_v18, 3  ;;  %v5104_v18 = vld [vmem:[#allocation18] sm:$0xff]  ;;  %v5105_v19 = vld [vmem:[#allocation18 + $0x8] sm:$0xff] }
0x16f7   :  { %v4703_v16 = vadd.f32 %v4699_v9, %v7249_v7  ;;  %v4719_v13 = vrot.slane %v4717_v30, 3 }
0x16f8   :  { %v4704_v33 = vadd.f32 %v4700_v1, %v7252_v15  ;;  %v5106_v1 = vld [vmem:[#allocation18 + $0x10] sm:$0xff] }
0x16f9   :  { %v5284_v35 = vmul.f32 -1.442695, %v4703_v16  ;;  %v6109_v16 = vpack.c.bf16 %v5105_v19, %v5104_v18 }
0x16fa   :  { %v5285_v21 = vmul.f32 -1.442695, %v4704_v33  ;;  %v5107_v33 = vld [vmem:[#allocation18 + $0x18] sm:$0xff] }
0x16fb   :  { %6338 = vpow2.f32 %v5284_v35  ;;  %v6112_v35 = vpack.c.bf16 %v5107_v33, %v5106_v1 }
0x16fc   :  { %6340 = vpow2.f32 %v5285_v21 }
0x1705   :  { %v6339_v23 = vpop.eup %6338 }
0x1706   :  { %v6341_v24 = vpop.eup %6340  ;;  %v4711_v25 = vadd.f32 1.0, %v6339_v23 }
0x1707   :  { %v4712_v8 = vadd.f32 1.0, %v6341_v24 }
0x1708   :  { %6342 = vrcp.f32 %v4711_v25 }
0x1709   :  { %6344 = vrcp.f32 %v4712_v8 }
0x1712   :  { %v6343_v28 = vpop.eup %6342 }
0x1713   :  { %v6345_v29 = vpop.eup %6344  ;;  %v4721_v31 = vmul.f32 %v6343_v28, %v4719_v13 }
0x1714   :  { %v4728_v58 = vmul.f32 %v6345_v29, %v4726_v27  ;;  %v4724_v39 = vsub.f32 1.0, %v6345_v29 }
0x1715   :  { %v4722_v37 = vadd.f32 %v4721_v31, %v7262_v20 }
0x1717   :  { %6346 = vtanh.f32 %v4722_v37 }
0x1721   :  { %v6347_v41 = vpop.eup %6346 }
0x1722   :  { %v4725_v40 = vmul.f32 %v6347_v41, %v4724_v39 }
0x1724   :  { %v4729_v43 = vadd.f32 %v4728_v58, %v4725_v40 }
0x1726   :  { %v4736_v45 = vrot.slane %v4729_v43, 5  ;;  %v4733_v48 = vrot.slane %v4729_v43, %v6946_v10  ;;  %v4909_v50 = vrot.slane %v4729_v43, 7 }
0x1728   :  { %5286 = vmatmul.mubr.msk.f32.vlgmr.msra.gmra.mrb[48].mxu0 %vm355_vm1, %v4736_v45  ;;  %5713 = vmatmul.mubr.msk.f32.vlgmr.msra.gmra.mrb[52].mxu1 %vm355_vm1, %v4736_v45  ;;  %v4734_v26 = vsel %vm160_vm8, %v4733_v48, %v4551_v55 }
0x1729   :  { %6097 = vmatpush1.bf16.msra.mxu0 %v7205_v38  ;;  %6104 = vmatpush3.bf16.msra.mxu1 %v7209_v51 }
0x172a   :  { %6099 = vmatprep.subr.bf16.mxu0 %v7207_v14  ;;  %6105 = vmatprep.subr.bf16.mxu1 %v6542_v22 }
0x172b   :  { %4986 = vmatprep.mubr.f32.mxu0 %v6541_v0  ;;  %5723 = vmatprep.mubr.msk.f32.mxu1 %vm6543_vm2, %v6541_v0 }
0x172d   :  { %6101 = vmatpush1.bf16.msra.mxu0 %v7217_v57  ;;  %6107 = vmatpush3.bf16.msra.mxu1 %v7222_v4 }
0x172e   :  { %6108 = vmatprep.subr.bf16.mxu0 %v6542_v22 }
0x17fb   :  { %v4805_v10 = vpop.f32.mrb[48].mxu0  ;;  %v4876_v49 = vpop.f32.mrb[52].mxu1 }
0x17fc   :  { %v4882_v38 = vrot.slane %v4805_v10, 2  ;;  %v4807_v56 = vpop.f32.mrb[49].mxu0  ;;  %v5714_v51 = vpop.f32.mrb[53].mxu1  ;;  %v4900_v62 = vadd.f32 %v4876_v49, %v7258_v2 }
0x17fd   :  { %v4883_v34 = vrot.slane %v4807_v56, 2 }
0x17fe   :  { %v4886_v14 = vadd.f32 %v4882_v38, %v7249_v7  ;;  %v4902_v54 = vrot.slane %v4900_v62, 2 }
0x17ff   :  { %v4887_v52 = vadd.f32 %v4883_v34, %v7252_v15 }
0x1800   :  { %v5288_v53 = vmul.f32 -1.442695, %v4886_v14 }
0x1801   :  { %v5289_v47 = vmul.f32 -1.442695, %v4887_v52 }
0x1802   :  { %6348 = vpow2.f32 %v5288_v53 }
0x1803   :  { %6350 = vpow2.f32 %v5289_v47 }
0x180c   :  { %v6349_v42 = vpop.eup %6348 }
0x180d   :  { %v6351_v57 = vpop.eup %6350  ;;  %v4894_v60 = vadd.f32 1.0, %v6349_v42 }
0x180e   :  { %v4895_v4 = vadd.f32 1.0, %v6351_v57 }
0x180f   :  { %6352 = vrcp.f32 %v4894_v60 }
0x1810   :  { %6354 = vrcp.f32 %v4895_v4 }
0x1819   :  { %v6353_v63 = vpop.eup %6352 }
0x181a   :  { %v6355_v3 = vpop.eup %6354  ;;  %v4904_v5 = vmul.f32 %v6353_v63, %v4902_v54 }
0x181b   :  { %v4911_v6 = vmul.f32 %v6355_v3, %v4909_v50  ;;  %v4907_v61 = vsub.f32 1.0, %v6355_v3 }
0x181c   :  { %v4905_v11 = vadd.f32 %v4904_v5, %v7262_v20 }
0x181e   :  { %6356 = vtanh.f32 %v4905_v11 }
0x1828   :  { %v6357_v12 = vpop.eup %6356 }
0x1829   :  { %v4908_v59 = vmul.f32 %v6357_v12, %v4907_v61 }
0x182b   :  { %v4912_v55 = vadd.f32 %v4911_v6, %v4908_v59 }
0x182d   :  { %v4919_v36 = vrot.slane %v4912_v55, 6  ;;  %v4916_v17 = vrot.slane %v4912_v55, %v6969_v46  ;;  %v5092_v41 = vrot.slane %v4912_v55, 7 }
0x182f   :  { %5290 = vmatmul.mubr.msk.f32.vlgmr.msra.gmra.mrb[50].mxu0 %vm355_vm1, %v4919_v36  ;;  %5724 = vmatmul.mubr.msk.f32.vlgmr.msra.gmra.mrb[54].mxu1 %vm355_vm1, %v4919_v36  ;;  %v4917_v9 = vsel %vm161_vm9, %v4916_v17, %v4734_v26 }
0x1830   :  { %5734 = vmatprep.mubr.msk.f32.mxu0 %vm6543_vm2, %v6541_v0  ;;  %6110 = vmatpush3.bf16.msra.mxu0 %v6109_v16 }
0x1831   :  { %6111 = vmatprep.subr.bf16.mxu0 %v6542_v22 }
0x1834   :  { %6113 = vmatpush3.bf16.msra.mxu0 %v6112_v35 }
0x1902   :  { %v4988_v46 = vpop.f32.mrb[50].mxu0  ;;  %v5059_v21 = vpop.f32.mrb[54].mxu1 }
0x1903   :  { %v5065_v23 = vrot.slane %v4988_v46, 1  ;;  %v4990_v24 = vpop.f32.mrb[51].mxu0  ;;  %v5725_v25 = vpop.f32.mrb[55].mxu1  ;;  %v5083_v22 = vadd.f32 %v5059_v21, %v7258_v2  ;;  %v5109_v2 = vstv %s7420_s14 }
0x1904   :  { %v5066_v8 = vrot.slane %v4990_v24, 1 }
0x1905   :  { %v5069_v30 = vadd.f32 %v5065_v23, %v7249_v7  ;;  %v5085_v37 = vrot.slane %v5083_v22, 1 }
0x1906   :  { %v5070_v0 = vadd.f32 %v5066_v8, %v7252_v15 }
0x1907   :  { %v5292_v13 = vmul.f32 -1.442695, %v5069_v30 }
0x1908   :  { %v5293_v28 = vmul.f32 -1.442695, %v5070_v0 }
0x1909   :  { %6358 = vpow2.f32 %v5292_v13 }
0x190a   :  { %6360 = vpow2.f32 %v5293_v28 }
0x1913   :  { %v6359_v27 = vpop.eup %6358 }
0x1914   :  { %v6361_v29 = vpop.eup %6360  ;;  %v5077_v31 = vadd.f32 1.0, %v6359_v27 }
0x1915   :  { %v5078_v58 = vadd.f32 1.0, %v6361_v29 }
0x1916   :  { %6362 = vrcp.f32 %v5077_v31 }
0x1917   :  { %6364 = vrcp.f32 %v5078_v58 }
0x1920   :  { %v6363_v39 = vpop.eup %6362 }
0x1921   :  { %v6365_v40 = vpop.eup %6364  ;;  %v5087_v43 = vmul.f32 %v6363_v39, %v5085_v37 }
0x1922   :  { %v5094_v7 = vmul.f32 %v6365_v40, %v5092_v41  ;;  %v5090_v45 = vsub.f32 1.0, %v6365_v40 }
0x1923   :  { %v5088_v15 = vadd.f32 %v5087_v43, %v7262_v20 }
0x1925   :  { %6366 = vtanh.f32 %v5088_v15 }
0x192f   :  { %v6367_v48 = vpop.eup %6366 }
0x1930   :  { %v5091_v26 = vmul.f32 %v6367_v48, %v5090_v45 }
0x1932   :  { %v5095_v10 = vadd.f32 %v5094_v7, %v5091_v26 }
0x1934   :  { %v5099_v49 = vrot.slane %v5095_v10, %v6997_v44  ;;  %5102 = vst [vmem:[#allocation6 - $0x7] sm:$0x80] %v5095_v10 }
0x1936   :  { %v5100_v38 = vsel %vm162_vm10, %v5099_v49, %v4917_v9 }
0x1937   :  { %5735 = vmatmul.mubr.msk.f32.vlgmr.msra.gmra.mrb[52].mxu0 %vm355_vm1, %v5100_v38 }
0x1a0a   :  { %v5179_v56 = vpop.f32.mrb[52].mxu0 }
0x1a0b   :  { %v5180_v51 = vadd.f32 %v5179_v56, %v5109_v2  ;;  %v5736_v20 = vpop.f32.mrb[53].mxu0 }
0x1a0d   :  { %5183 = vst [vmem:[%s7421_s15] sm:$0xff] %v5180_v51 }
0x1a0e   :  { %5188 = vsyncpa [#allocation9], 1 }
0x1a0f   :  { %5189 = vsyncpa [#allocation11], 1 }
0x1a10   :  { %5190 = vsyncpa [#allocation14], 1 }
0x1a11   :  { %5191 = vsyncpa [#allocation17], 1 }

</bundles_post_ra>
